<compile_context>
chip_gen: v6e
topology: v6e:2x2x1
jax: 0.10.0
libtpu: 0.0.40
codegen_flags: <defaults>
</compile_context>

<pallas_src>
import functools

import jax
import jax.numpy as jnp
import numpy as np
from jax.experimental import pallas as pl
from jax.experimental.pallas import tpu as pltpu

HIDDEN_DIM = 32
LAMDA = 1.0


def calc_laplacian_with_self_loop(adj, alpha):
    # normalized = ((A+I) D^alpha)^T D^alpha  (mirrors the torch helper)
    n = adj.shape[0]
    m = adj + jnp.eye(n, dtype=adj.dtype)
    row_sum = m.sum(axis=1)
    d = jnp.power(row_sum, alpha)
    d = jnp.where(jnp.isinf(d), 0.0, d)
    dmat = jnp.diag(d)
    return (m @ dmat).T @ dmat


def xavier_uniform(key, shape):
    fan_in, fan_out = shape[0], shape[1]
    bound = float(np.sqrt(6.0 / (fan_in + fan_out)))
    return jax.random.uniform(key, shape, jnp.float32, -bound, bound)


# --------------------------- Pallas kernel: one batch tile, full sequence ---------------------------
def tgcn_kernel(lamda, hidden_dim,
                x_ref,      # (1, kN, T) f32 : inputs for this batch tile, node rows on sublanes
                lbh_ref,    # (kN, kN)  bf16 : kron(I_k, L_{-1/2})  (graph_conv1 AND RTGCN mean path)
                w1h_ref,    # (H, 2H)   bf16 : graph_conv1 weights, hidden rows
                wmv_ref,    # (2H, 2H)  bf16 : blockdiag(Wm[1:], Wv[1:])
                rows_ref,   # (4, 2H)   f32  : [w1x ; b1 ; w_im*Wm[0]|w_iv*Wv[0] ; bm|bv]
                dvec_ref,   # (kN, 1)   f32  : D^{-1/2} per row  (L_{-1} = D^{-1/2} L_{-1/2} D^{-1/2})
                out_ref,    # (1, kN, 2H) f32: final hidden state [mean | var]
                stage_sc):  # VMEM (kN, 2H) bf16 : staging slab for the fused MXU inputs
    H = hidden_dim
    kN = x_ref.shape[1]
    T = x_ref.shape[2]

    # tiny row constants, hoisted once (1 vreg each)
    w1x = rows_ref[0:1, :]          # (1, 2H)
    b1 = rows_ref[1:2, :]
    wx2 = rows_ref[2:3, :]
    b2 = rows_ref[3:4, :]

    hm = jnp.zeros((kN, H), jnp.float32)
    hv = jnp.zeros((kN, H), jnp.float32)

    # T is small & static here -> fully unrolled (static slices, LLO can overlap step tails).
    # For long sequences this would become a lax.fori_loop / time grid axis.
    for t in range(T):
        x_col = x_ref[0, :, t:t + 1]                              # (kN, 1) f32, static slice
        dv = dvec_ref[...]                                        # (kN, 1) f32

        # ---- graph_conv1: sigmoid( Lb @ ([x | hm] W1) + b1 ) -> (kN, 2H) ----
        pre1 = x_col * w1x + jnp.dot(hm.astype(jnp.bfloat16), w1h_ref[...],
                                     preferred_element_type=jnp.float32)
        gc1 = jnp.dot(lbh_ref[...], pre1.astype(jnp.bfloat16),
                      preferred_element_type=jnp.float32) + b1
        ru = jax.nn.sigmoid(gc1)
        r = ru[:, :H]
        u = ru[:, H:]

        # ---- graph_conv2 (RTGCN), merged mean/var dense layer ----
        # gated hidden staged into one bf16 slab (no value-level lane concat)
        stage_sc[:, :H] = (r * hm).astype(jnp.bfloat16)
        stage_sc[:, H:] = (r * hv).astype(jnp.bfloat16)
        c = (x_col * wx2
             + jnp.dot(stage_sc[...], wmv_ref[...], preferred_element_type=jnp.float32)
             + b2)                                                # (kN, 2H) = [cm | cv]
        cm = c[:, :H]
        cv = c[:, H:]
        nw = jnp.exp(-lamda * cv)

        # fused post-gate laplacian matmul: [ L@(cm*nw) | L@(dvec*cv*nw^2) ]
        stage_sc[:, :H] = (cm * nw).astype(jnp.bfloat16)
        stage_sc[:, H:] = (dv * (cv * nw * nw)).astype(jnp.bfloat16)
        oc = jnp.dot(lbh_ref[...], stage_sc[...], preferred_element_type=jnp.float32)
        c_mean = jnp.tanh(oc[:, :H])
        c_var = jnp.maximum(dv * oc[:, H:], 0.0)                  # relu( D^{-1/2} * (...) )

        hm = u * hm + (1.0 - u) * c_mean
        hv = u * hv + (1.0 - u) * c_var

    # single lane-dense (kN, 2H) output block, written once
    out_ref[0, :, :H] = hm
    out_ref[0, :, H:] = hv


def _choose_batch_tile(batch, num_nodes, target_rows=256):
    """Largest k dividing batch with k*num_nodes <= ~256 (MXU row fill; >=128 suffices on v5e)."""
    k = 1
    for cand in range(1, batch + 1):
        if batch % cand == 0 and cand * num_nodes <= max(target_rows, num_nodes):
            k = cand
    return k


def pack_params(adj, raw, batch_tile):
    """Fold/pack the module's parameters for the fused kernel (done once, outside the hot loop)."""
    H = raw["Wm"].shape[1]
    N = adj.shape[0]
    k = batch_tile

    L_h = calc_laplacian_with_self_loop(adj, -0.5)        # graph_conv1 lap == RTGCN laplacian0
    # D^{-1/2} vector: L_{-1} = diag(d) @ L_{-0.5} @ diag(d)  (RTGCN laplacian1 never materialized)
    row_sum = (adj + jnp.eye(N, dtype=adj.dtype)).sum(axis=1)
    d_h = jnp.power(row_sum, -0.5)
    d_h = jnp.where(jnp.isinf(d_h), 0.0, d_h)

    w_mv = jnp.zeros((2 * H, 2 * H), jnp.float32)
    w_mv = w_mv.at[:H, :H].set(raw["Wm"][1:, :]).at[H:, H:].set(raw["Wv"][1:, :])

    rows = jnp.stack([
        raw["W1"][0],                                                    # w1x            (2H,)
        raw["b1"],                                                       # b1             (2H,)
        jnp.concatenate([raw["w_im"] * raw["Wm"][0],
                         raw["w_iv"] * raw["Wv"][0]]),                   # scaled wmx|wvx (2H,)
        jnp.concatenate([raw["bm"], raw["bv"]]),                         # bm|bv          (2H,)
    ], axis=0).astype(jnp.float32)                                       # (4, 2H)

    return {
        "Lb_h": jnp.kron(jnp.eye(k, dtype=jnp.float32), L_h).astype(jnp.bfloat16),  # (kN, kN)
        "dvec": jnp.tile(d_h, (k,)).reshape(k * N, 1).astype(jnp.float32),          # (kN, 1)
        "w1h": raw["W1"][1:, :].astype(jnp.bfloat16),                               # (H, 2H)
        "w_mv": w_mv.astype(jnp.bfloat16),                                          # (2H, 2H)
        "rows": rows,                                                               # (4, 2H) f32
    }


@functools.partial(jax.jit, static_argnames=("batch_tile",))
def tgcn_forward(params, inputs, batch_tile):
    """TGCN forward: inputs (B, T, N) -> output (B, N, 2H) (final hidden state, mean|var)."""
    B, T, N = inputs.shape
    H = params["w1h"].shape[0]
    k = batch_tile
    nb = B // k
    kN = k * N

    # (B, T, N) -> (nb, kN, T): batch-major rows within a tile (matches kron(I_k, L) layout),
    # node rows on sublanes so per-step column extraction in-kernel is a free static slice.
    x = jnp.transpose(inputs, (0, 2, 1)).reshape(nb, kN, T).astype(jnp.float32)

    kernel = functools.partial(tgcn_kernel, LAMDA, H)

    def const2d(shape):   # DMA'd once, single-buffered (biggest VMEM lever for the laplacian)
        return pl.BlockSpec(shape, lambda b: (0, 0), pipeline_mode=pl.Buffered(1))

    out = pl.pallas_call(
        kernel,
        out_shape=jax.ShapeDtypeStruct((nb, kN, 2 * H), jnp.float32),
        grid=(nb,),
        in_specs=[
            pl.BlockSpec((1, kN, T), lambda b: (b, 0, 0)),       # x, per batch tile
            const2d((kN, kN)),                                   # Lb_h (bf16)
            const2d((H, 2 * H)),                                 # w1h
            const2d((2 * H, 2 * H)),                             # w_mv
            const2d((4, 2 * H)),                                 # packed rows
            const2d((kN, 1)),                                    # dvec
        ],
        out_specs=pl.BlockSpec((1, kN, 2 * H), lambda b: (b, 0, 0)),
        scratch_shapes=[pltpu.VMEM((kN, 2 * H), jnp.bfloat16)],  # staging slab
        compiler_params=pltpu.CompilerParams(
            dimension_semantics=("parallel",),                   # batch tiles are independent
            vmem_limit_bytes=32 * 1024 * 1024,
        ),
    )(x, params["Lb_h"], params["w1h"], params["w_mv"], params["rows"], params["dvec"])

    return out.reshape(B, N, 2 * H)


# --------------------------- pure-JAX reference (torch-faithful op order, f32) ---------------------------
def tgcn_reference(adj, raw, inputs):
    B, T, N = inputs.shape
    H = raw["Wm"].shape[1]
    lap = calc_laplacian_with_self_loop(adj, -0.5)
    lap0 = calc_laplacian_with_self_loop(adj, -0.5)
    lap1 = calc_laplacian_with_self_loop(adj, -1.0)
    W1, b1 = raw["W1"], raw["b1"]
    Wm, bm, Wv, bv = raw["Wm"], raw["bm"], raw["Wv"], raw["bv"]
    w_im, w_iv = raw["w_im"], raw["w_iv"]
    h = jnp.zeros((B, N, 2 * H), jnp.float32)
    for t in range(T):
        x = inputs[:, t, :]
        hm, hv = h[..., :H], h[..., H:]
        concat1 = jnp.concatenate([x[..., None], hm], axis=-1)
        ag = jnp.einsum("mn,bnk->bmk", lap, concat1)
        ru = jax.nn.sigmoid(ag @ W1 + b1)
        r, u = ru[..., :H], ru[..., H:]
        hm2, hv2 = r * hm, r * hv
        cm_in = jnp.concatenate([(x * w_im)[..., None], hm2], axis=-1)
        cv_in = jnp.concatenate([(x * w_iv)[..., None], hv2], axis=-1)
        cm = cm_in @ Wm + bm
        cv = cv_in @ Wv + bv
        nw = jnp.exp(-LAMDA * cv)
        om = jnp.einsum("mn,bnh->bmh", lap0, cm * nw)
        ov = jnp.einsum("mn,bnh->bmh", lap1, cv * nw * nw)
        c_mean = jnp.tanh(om)
        c_var = jax.nn.relu(ov)
        h = jnp.concatenate([u * hm + (1.0 - u) * c_mean,
                             u * hv + (1.0 - u) * c_var], axis=-1)
    return h


if __name__ == "__main__":
    B, T, N, H = 2, 8, 16, HIDDEN_DIM

    key = jax.random.PRNGKey(0)
    k_adj, k_x, k_w1, k_wm, k_wv, k_im, k_iv = jax.random.split(key, 7)

    # deterministic synthetic adjacency (symmetric, non-negative)
    a = jax.random.uniform(k_adj, (N, N), jnp.float32)
    adj = (a + a.T) * 0.5

    # parameters (match the PyTorch module's __init__ shapes / init scheme)
    raw = {
        "W1": xavier_uniform(k_w1, (H + 1, 2 * H)),       # TGCNGraphConvolution.weights
        "b1": jnp.ones((2 * H,), jnp.float32),            # bias init = 1.0
        "Wm": xavier_uniform(k_wm, (H + 1, H)),           # RTGCN weights_mean
        "bm": jnp.zeros((H,), jnp.float32),               # bias init = 0.0
        "Wv": xavier_uniform(k_wv, (H + 1, H)),           # RTGCN weights_var
        "bv": jnp.zeros((H,), jnp.float32),               # bias init = 0.0
        "w_im": xavier_uniform(k_im, (1, 1))[0, 0],       # inputs_weights_mean
        "w_iv": xavier_uniform(k_iv, (1, 1))[0, 0],       # inputs_weights_var
    }

    batch_tile = _choose_batch_tile(B, N)                 # k*N <= ~256 (toy size -> k = B = 2)
    params = pack_params(adj, raw, batch_tile=batch_tile)
    inputs = jax.random.normal(k_x, (B, T, N), jnp.float32)

    out = tgcn_forward(params, inputs, batch_tile=batch_tile)
    out = jax.block_until_ready(out)
    assert out.shape == (B, N, 2 * H)

    ref = tgcn_reference(adj, raw, inputs)
    # bf16 MXU operands + float reassociation -> loose tolerance vs the f32 torch-faithful ref
    np.testing.assert_allclose(np.asarray(out), np.asarray(ref), rtol=5e-2, atol=5e-2)

    print("KERNEL_OK")
</pallas_src>

<mosaic_0001>
module attributes {stable_mosaic.version = 11 : i64} {
  func.func @tgcn_kernel(%arg0: i32, %arg1: memref<1x32x8xf32, #tpu.memory_space<vmem>>, %arg2: memref<32x32xbf16, #tpu.memory_space<vmem>>, %arg3: memref<32x64xbf16, #tpu.memory_space<vmem>>, %arg4: memref<64x64xbf16, #tpu.memory_space<vmem>>, %arg5: memref<4x64xf32, #tpu.memory_space<vmem>>, %arg6: memref<32x1xf32, #tpu.memory_space<vmem>>, %arg7: memref<1x32x64xf32, #tpu.memory_space<vmem>>, %arg8: memref<32x64xbf16, #tpu.memory_space<vmem>>) attributes {dimension_semantics = [#tpu.dimension_semantics<parallel>], iteration_bounds = array<i64: 1>, scalar_prefetch = 0 : i64, scratch_operands = 1 : i64, tpu.core_type = #tpu.core_type<tc>, window_params = [{transform_indices = @transform_0, window_bounds = array<i64: 1, 32, 8>}, {pipeline_mode = #tpu.pipeline_mode<synchronous>, transform_indices = @transform_1, window_bounds = array<i64: 32, 32>}, {pipeline_mode = #tpu.pipeline_mode<synchronous>, transform_indices = @transform_2, window_bounds = array<i64: 32, 64>}, {pipeline_mode = #tpu.pipeline_mode<synchronous>, transform_indices = @transform_3, window_bounds = array<i64: 64, 64>}, {pipeline_mode = #tpu.pipeline_mode<synchronous>, transform_indices = @transform_4, window_bounds = array<i64: 4, 64>}, {pipeline_mode = #tpu.pipeline_mode<synchronous>, transform_indices = @transform_5, window_bounds = array<i64: 32, 1>}, {transform_indices = @transform_6, window_bounds = array<i64: 1, 32, 64>}]} {
    %c0 = arith.constant 0 : index
    %c0_0 = arith.constant 0 : index
    %0 = vector.load %arg5[%c0, %c0_0] : memref<4x64xf32, #tpu.memory_space<vmem>>, vector<1x64xf32>
    %c1 = arith.constant 1 : index
    %c0_1 = arith.constant 0 : index
    %1 = vector.load %arg5[%c1, %c0_1] : memref<4x64xf32, #tpu.memory_space<vmem>>, vector<1x64xf32>
    %c2 = arith.constant 2 : index
    %c0_2 = arith.constant 0 : index
    %2 = vector.load %arg5[%c2, %c0_2] : memref<4x64xf32, #tpu.memory_space<vmem>>, vector<1x64xf32>
    %c3 = arith.constant 3 : index
    %c0_3 = arith.constant 0 : index
    %3 = vector.load %arg5[%c3, %c0_3] : memref<4x64xf32, #tpu.memory_space<vmem>>, vector<1x64xf32>
    %cst = arith.constant 0.000000e+00 : f32
    %4 = vector.broadcast %cst : f32 to vector<32x32xf32>
    %cst_4 = arith.constant 0.000000e+00 : f32
    %5 = vector.broadcast %cst_4 : f32 to vector<32x32xf32>
    %c0_5 = arith.constant 0 : index
    %c0_6 = arith.constant 0 : index
    %c0_7 = arith.constant 0 : index
    %6 = vector.load %arg1[%c0_5, %c0_6, %c0_7] : memref<1x32x8xf32, #tpu.memory_space<vmem>>, vector<1x32x1xf32>
    %7 = vector.shape_cast %6 : vector<1x32x1xf32> to vector<32x1xf32>
    %c0_8 = arith.constant 0 : index
    %c0_9 = arith.constant 0 : index
    %8 = vector.load %arg6[%c0_8, %c0_9] : memref<32x1xf32, #tpu.memory_space<vmem>>, vector<32x1xf32>
    %9 = vector.broadcast %7 : vector<32x1xf32> to vector<32x64xf32>
    %10 = vector.broadcast %0 : vector<1x64xf32> to vector<32x64xf32>
    %11 = arith.mulf %9, %10 : vector<32x64xf32>
    %12 = arith.truncf %4 : vector<32x32xf32> to vector<32x32xbf16>
    %c0_10 = arith.constant 0 : index
    %c0_11 = arith.constant 0 : index
    %13 = vector.load %arg3[%c0_10, %c0_11] : memref<32x64xbf16, #tpu.memory_space<vmem>>, vector<32x64xbf16>
    %cst_12 = arith.constant dense<0.000000e+00> : vector<32x64xf32>
    %14 = tpu.matmul %12, %13, %cst_12 {dimension_numbers = #tpu.dot_dimension_numbers<[1], [0], [0], [1], [0, 0, 1, 1], [], []>} : vector<32x32xbf16>, vector<32x64xbf16>, vector<32x64xf32> -> vector<32x64xf32>
    %15 = arith.addf %11, %14 : vector<32x64xf32>
    %c0_13 = arith.constant 0 : index
    %c0_14 = arith.constant 0 : index
    %16 = vector.load %arg2[%c0_13, %c0_14] : memref<32x32xbf16, #tpu.memory_space<vmem>>, vector<32x32xbf16>
    %17 = arith.truncf %15 : vector<32x64xf32> to vector<32x64xbf16>
    %cst_15 = arith.constant dense<0.000000e+00> : vector<32x64xf32>
    %18 = tpu.matmul %16, %17, %cst_15 {dimension_numbers = #tpu.dot_dimension_numbers<[1], [0], [0], [1], [0, 0, 1, 1], [], []>} : vector<32x32xbf16>, vector<32x64xbf16>, vector<32x64xf32> -> vector<32x64xf32>
    %19 = vector.broadcast %1 : vector<1x64xf32> to vector<32x64xf32>
    %20 = arith.addf %18, %19 : vector<32x64xf32>
    %21 = arith.negf %20 : vector<32x64xf32>
    %22 = math.exp %21 : vector<32x64xf32>
    %cst_16 = arith.constant 1.000000e+00 : f32
    %23 = vector.broadcast %cst_16 : f32 to vector<32x64xf32>
    %24 = arith.addf %23, %22 : vector<32x64xf32>
    %25 = arith.divf %23, %24 : vector<32x64xf32>
    %26 = vector.extract_strided_slice %25 {offsets = [0, 0], sizes = [32, 32], strides = [1, 1]} : vector<32x64xf32> to vector<32x32xf32>
    %27 = vector.extract_strided_slice %25 {offsets = [0, 32], sizes = [32, 32], strides = [1, 1]} : vector<32x64xf32> to vector<32x32xf32>
    %28 = arith.mulf %26, %4 : vector<32x32xf32>
    %29 = arith.truncf %28 : vector<32x32xf32> to vector<32x32xbf16>
    %c0_17 = arith.constant 0 : index
    %c0_18 = arith.constant 0 : index
    %30 = vector.load %arg8[%c0_17, %c0_18] : memref<32x64xbf16, #tpu.memory_space<vmem>>, vector<32x32xbf16>
    tpu.vector_store %arg8[%c0_17, %c0_18], %29 {strides = array<i32>} : memref<32x64xbf16, #tpu.memory_space<vmem>>, vector<32x32xbf16>,
    %31 = arith.mulf %26, %5 : vector<32x32xf32>
    %32 = arith.truncf %31 : vector<32x32xf32> to vector<32x32xbf16>
    %c0_19 = arith.constant 0 : index
    %c32 = arith.constant 32 : index
    %33 = vector.load %arg8[%c0_19, %c32] : memref<32x64xbf16, #tpu.memory_space<vmem>>, vector<32x32xbf16>
    tpu.vector_store %arg8[%c0_19, %c32], %32 {strides = array<i32>} : memref<32x64xbf16, #tpu.memory_space<vmem>>, vector<32x32xbf16>,
    %34 = vector.broadcast %7 : vector<32x1xf32> to vector<32x64xf32>
    %35 = vector.broadcast %2 : vector<1x64xf32> to vector<32x64xf32>
    %36 = arith.mulf %34, %35 : vector<32x64xf32>
    %c0_20 = arith.constant 0 : index
    %c0_21 = arith.constant 0 : index
    %37 = vector.load %arg8[%c0_20, %c0_21] : memref<32x64xbf16, #tpu.memory_space<vmem>>, vector<32x64xbf16>
    %c0_22 = arith.constant 0 : index
    %c0_23 = arith.constant 0 : index
    %38 = vector.load %arg4[%c0_22, %c0_23] : memref<64x64xbf16, #tpu.memory_space<vmem>>, vector<64x64xbf16>
    %cst_24 = arith.constant dense<0.000000e+00> : vector<32x64xf32>
    %39 = tpu.matmul %37, %38, %cst_24 {dimension_numbers = #tpu.dot_dimension_numbers<[1], [0], [0], [1], [0, 0, 1, 1], [], []>} : vector<32x64xbf16>, vector<64x64xbf16>, vector<32x64xf32> -> vector<32x64xf32>
    %40 = arith.addf %36, %39 : vector<32x64xf32>
    %41 = vector.broadcast %3 : vector<1x64xf32> to vector<32x64xf32>
    %42 = arith.addf %40, %41 : vector<32x64xf32>
    %43 = vector.extract_strided_slice %42 {offsets = [0, 0], sizes = [32, 32], strides = [1, 1]} : vector<32x64xf32> to vector<32x32xf32>
    %44 = vector.extract_strided_slice %42 {offsets = [0, 32], sizes = [32, 32], strides = [1, 1]} : vector<32x64xf32> to vector<32x32xf32>
    %cst_25 = arith.constant -1.000000e+00 : f32
    %45 = vector.broadcast %cst_25 : f32 to vector<32x32xf32>
    %46 = arith.mulf %45, %44 : vector<32x32xf32>
    %47 = math.exp %46 : vector<32x32xf32>
    %48 = arith.mulf %43, %47 : vector<32x32xf32>
    %49 = arith.truncf %48 : vector<32x32xf32> to vector<32x32xbf16>
    %c0_26 = arith.constant 0 : index
    %c0_27 = arith.constant 0 : index
    %50 = vector.load %arg8[%c0_26, %c0_27] : memref<32x64xbf16, #tpu.memory_space<vmem>>, vector<32x32xbf16>
    tpu.vector_store %arg8[%c0_26, %c0_27], %49 {strides = array<i32>} : memref<32x64xbf16, #tpu.memory_space<vmem>>, vector<32x32xbf16>,
    %51 = arith.mulf %44, %47 : vector<32x32xf32>
    %52 = arith.mulf %51, %47 : vector<32x32xf32>
    %53 = vector.broadcast %8 : vector<32x1xf32> to vector<32x32xf32>
    %54 = arith.mulf %53, %52 : vector<32x32xf32>
    %55 = arith.truncf %54 : vector<32x32xf32> to vector<32x32xbf16>
    %c0_28 = arith.constant 0 : index
    %c32_29 = arith.constant 32 : index
    %56 = vector.load %arg8[%c0_28, %c32_29] : memref<32x64xbf16, #tpu.memory_space<vmem>>, vector<32x32xbf16>
    tpu.vector_store %arg8[%c0_28, %c32_29], %55 {strides = array<i32>} : memref<32x64xbf16, #tpu.memory_space<vmem>>, vector<32x32xbf16>,
    %c0_30 = arith.constant 0 : index
    %c0_31 = arith.constant 0 : index
    %57 = vector.load %arg2[%c0_30, %c0_31] : memref<32x32xbf16, #tpu.memory_space<vmem>>, vector<32x32xbf16>
    %c0_32 = arith.constant 0 : index
    %c0_33 = arith.constant 0 : index
    %58 = vector.load %arg8[%c0_32, %c0_33] : memref<32x64xbf16, #tpu.memory_space<vmem>>, vector<32x64xbf16>
    %cst_34 = arith.constant dense<0.000000e+00> : vector<32x64xf32>
    %59 = tpu.matmul %57, %58, %cst_34 {dimension_numbers = #tpu.dot_dimension_numbers<[1], [0], [0], [1], [0, 0, 1, 1], [], []>} : vector<32x32xbf16>, vector<32x64xbf16>, vector<32x64xf32> -> vector<32x64xf32>
    %60 = vector.extract_strided_slice %59 {offsets = [0, 0], sizes = [32, 32], strides = [1, 1]} : vector<32x64xf32> to vector<32x32xf32>
    %61 = math.tanh %60 : vector<32x32xf32>
    %62 = vector.extract_strided_slice %59 {offsets = [0, 32], sizes = [32, 32], strides = [1, 1]} : vector<32x64xf32> to vector<32x32xf32>
    %63 = vector.broadcast %8 : vector<32x1xf32> to vector<32x32xf32>
    %64 = arith.mulf %63, %62 : vector<32x32xf32>
    %cst_35 = arith.constant 0.000000e+00 : f32
    %65 = vector.broadcast %cst_35 : f32 to vector<32x32xf32>
    %66 = arith.maximumf %64, %65 : vector<32x32xf32>
    %67 = arith.mulf %27, %4 : vector<32x32xf32>
    %cst_36 = arith.constant 1.000000e+00 : f32
    %68 = vector.broadcast %cst_36 : f32 to vector<32x32xf32>
    %69 = arith.subf %68, %27 : vector<32x32xf32>
    %70 = arith.mulf %69, %61 : vector<32x32xf32>
    %71 = arith.addf %67, %70 : vector<32x32xf32>
    %72 = arith.mulf %27, %5 : vector<32x32xf32>
    %cst_37 = arith.constant 1.000000e+00 : f32
    %73 = vector.broadcast %cst_37 : f32 to vector<32x32xf32>
    %74 = arith.subf %73, %27 : vector<32x32xf32>
    %75 = arith.mulf %74, %66 : vector<32x32xf32>
    %76 = arith.addf %72, %75 : vector<32x32xf32>
    %c0_38 = arith.constant 0 : index
    %c0_39 = arith.constant 0 : index
    %c1_40 = arith.constant 1 : index
    %77 = vector.load %arg1[%c0_38, %c0_39, %c1_40] : memref<1x32x8xf32, #tpu.memory_space<vmem>>, vector<1x32x1xf32>
    %78 = vector.shape_cast %77 : vector<1x32x1xf32> to vector<32x1xf32>
    %c0_41 = arith.constant 0 : index
    %c0_42 = arith.constant 0 : index
    %79 = vector.load %arg6[%c0_41, %c0_42] : memref<32x1xf32, #tpu.memory_space<vmem>>, vector<32x1xf32>
    %80 = vector.broadcast %78 : vector<32x1xf32> to vector<32x64xf32>
    %81 = vector.broadcast %0 : vector<1x64xf32> to vector<32x64xf32>
    %82 = arith.mulf %80, %81 : vector<32x64xf32>
    %83 = arith.truncf %71 : vector<32x32xf32> to vector<32x32xbf16>
    %c0_43 = arith.constant 0 : index
    %c0_44 = arith.constant 0 : index
    %84 = vector.load %arg3[%c0_43, %c0_44] : memref<32x64xbf16, #tpu.memory_space<vmem>>, vector<32x64xbf16>
    %cst_45 = arith.constant dense<0.000000e+00> : vector<32x64xf32>
    %85 = tpu.matmul %83, %84, %cst_45 {dimension_numbers = #tpu.dot_dimension_numbers<[1], [0], [0], [1], [0, 0, 1, 1], [], []>} : vector<32x32xbf16>, vector<32x64xbf16>, vector<32x64xf32> -> vector<32x64xf32>
    %86 = arith.addf %82, %85 : vector<32x64xf32>
    %c0_46 = arith.constant 0 : index
    %c0_47 = arith.constant 0 : index
    %87 = vector.load %arg2[%c0_46, %c0_47] : memref<32x32xbf16, #tpu.memory_space<vmem>>, vector<32x32xbf16>
    %88 = arith.truncf %86 : vector<32x64xf32> to vector<32x64xbf16>
    %cst_48 = arith.constant dense<0.000000e+00> : vector<32x64xf32>
    %89 = tpu.matmul %87, %88, %cst_48 {dimension_numbers = #tpu.dot_dimension_numbers<[1], [0], [0], [1], [0, 0, 1, 1], [], []>} : vector<32x32xbf16>, vector<32x64xbf16>, vector<32x64xf32> -> vector<32x64xf32>
    %90 = vector.broadcast %1 : vector<1x64xf32> to vector<32x64xf32>
    %91 = arith.addf %89, %90 : vector<32x64xf32>
    %92 = arith.negf %91 : vector<32x64xf32>
    %93 = math.exp %92 : vector<32x64xf32>
    %cst_49 = arith.constant 1.000000e+00 : f32
    %94 = vector.broadcast %cst_49 : f32 to vector<32x64xf32>
    %95 = arith.addf %94, %93 : vector<32x64xf32>
    %96 = arith.divf %94, %95 : vector<32x64xf32>
    %97 = vector.extract_strided_slice %96 {offsets = [0, 0], sizes = [32, 32], strides = [1, 1]} : vector<32x64xf32> to vector<32x32xf32>
    %98 = vector.extract_strided_slice %96 {offsets = [0, 32], sizes = [32, 32], strides = [1, 1]} : vector<32x64xf32> to vector<32x32xf32>
    %99 = arith.mulf %97, %71 : vector<32x32xf32>
    %100 = arith.truncf %99 : vector<32x32xf32> to vector<32x32xbf16>
    %c0_50 = arith.constant 0 : index
    %c0_51 = arith.constant 0 : index
    %101 = vector.load %arg8[%c0_50, %c0_51] : memref<32x64xbf16, #tpu.memory_space<vmem>>, vector<32x32xbf16>
    tpu.vector_store %arg8[%c0_50, %c0_51], %100 {strides = array<i32>} : memref<32x64xbf16, #tpu.memory_space<vmem>>, vector<32x32xbf16>,
    %102 = arith.mulf %97, %76 : vector<32x32xf32>
    %103 = arith.truncf %102 : vector<32x32xf32> to vector<32x32xbf16>
    %c0_52 = arith.constant 0 : index
    %c32_53 = arith.constant 32 : index
    %104 = vector.load %arg8[%c0_52, %c32_53] : memref<32x64xbf16, #tpu.memory_space<vmem>>, vector<32x32xbf16>
    tpu.vector_store %arg8[%c0_52, %c32_53], %103 {strides = array<i32>} : memref<32x64xbf16, #tpu.memory_space<vmem>>, vector<32x32xbf16>,
    %105 = vector.broadcast %78 : vector<32x1xf32> to vector<32x64xf32>
    %106 = vector.broadcast %2 : vector<1x64xf32> to vector<32x64xf32>
    %107 = arith.mulf %105, %106 : vector<32x64xf32>
    %c0_54 = arith.constant 0 : index
    %c0_55 = arith.constant 0 : index
    %108 = vector.load %arg8[%c0_54, %c0_55] : memref<32x64xbf16, #tpu.memory_space<vmem>>, vector<32x64xbf16>
    %c0_56 = arith.constant 0 : index
    %c0_57 = arith.constant 0 : index
    %109 = vector.load %arg4[%c0_56, %c0_57] : memref<64x64xbf16, #tpu.memory_space<vmem>>, vector<64x64xbf16>
    %cst_58 = arith.constant dense<0.000000e+00> : vector<32x64xf32>
    %110 = tpu.matmul %108, %109, %cst_58 {dimension_numbers = #tpu.dot_dimension_numbers<[1], [0], [0], [1], [0, 0, 1, 1], [], []>} : vector<32x64xbf16>, vector<64x64xbf16>, vector<32x64xf32> -> vector<32x64xf32>
    %111 = arith.addf %107, %110 : vector<32x64xf32>
    %112 = vector.broadcast %3 : vector<1x64xf32> to vector<32x64xf32>
    %113 = arith.addf %111, %112 : vector<32x64xf32>
    %114 = vector.extract_strided_slice %113 {offsets = [0, 0], sizes = [32, 32], strides = [1, 1]} : vector<32x64xf32> to vector<32x32xf32>
    %115 = vector.extract_strided_slice %113 {offsets = [0, 32], sizes = [32, 32], strides = [1, 1]} : vector<32x64xf32> to vector<32x32xf32>
    %cst_59 = arith.constant -1.000000e+00 : f32
    %116 = vector.broadcast %cst_59 : f32 to vector<32x32xf32>
    %117 = arith.mulf %116, %115 : vector<32x32xf32>
    %118 = math.exp %117 : vector<32x32xf32>
    %119 = arith.mulf %114, %118 : vector<32x32xf32>
    %120 = arith.truncf %119 : vector<32x32xf32> to vector<32x32xbf16>
    %c0_60 = arith.constant 0 : index
    %c0_61 = arith.constant 0 : index
    %121 = vector.load %arg8[%c0_60, %c0_61] : memref<32x64xbf16, #tpu.memory_space<vmem>>, vector<32x32xbf16>
    tpu.vector_store %arg8[%c0_60, %c0_61], %120 {strides = array<i32>} : memref<32x64xbf16, #tpu.memory_space<vmem>>, vector<32x32xbf16>,
    %122 = arith.mulf %115, %118 : vector<32x32xf32>
    %123 = arith.mulf %122, %118 : vector<32x32xf32>
    %124 = vector.broadcast %79 : vector<32x1xf32> to vector<32x32xf32>
    %125 = arith.mulf %124, %123 : vector<32x32xf32>
    %126 = arith.truncf %125 : vector<32x32xf32> to vector<32x32xbf16>
    %c0_62 = arith.constant 0 : index
    %c32_63 = arith.constant 32 : index
    %127 = vector.load %arg8[%c0_62, %c32_63] : memref<32x64xbf16, #tpu.memory_space<vmem>>, vector<32x32xbf16>
    tpu.vector_store %arg8[%c0_62, %c32_63], %126 {strides = array<i32>} : memref<32x64xbf16, #tpu.memory_space<vmem>>, vector<32x32xbf16>,
    %c0_64 = arith.constant 0 : index
    %c0_65 = arith.constant 0 : index
    %128 = vector.load %arg2[%c0_64, %c0_65] : memref<32x32xbf16, #tpu.memory_space<vmem>>, vector<32x32xbf16>
    %c0_66 = arith.constant 0 : index
    %c0_67 = arith.constant 0 : index
    %129 = vector.load %arg8[%c0_66, %c0_67] : memref<32x64xbf16, #tpu.memory_space<vmem>>, vector<32x64xbf16>
    %cst_68 = arith.constant dense<0.000000e+00> : vector<32x64xf32>
    %130 = tpu.matmul %128, %129, %cst_68 {dimension_numbers = #tpu.dot_dimension_numbers<[1], [0], [0], [1], [0, 0, 1, 1], [], []>} : vector<32x32xbf16>, vector<32x64xbf16>, vector<32x64xf32> -> vector<32x64xf32>
    %131 = vector.extract_strided_slice %130 {offsets = [0, 0], sizes = [32, 32], strides = [1, 1]} : vector<32x64xf32> to vector<32x32xf32>
    %132 = math.tanh %131 : vector<32x32xf32>
    %133 = vector.extract_strided_slice %130 {offsets = [0, 32], sizes = [32, 32], strides = [1, 1]} : vector<32x64xf32> to vector<32x32xf32>
    %134 = vector.broadcast %79 : vector<32x1xf32> to vector<32x32xf32>
    %135 = arith.mulf %134, %133 : vector<32x32xf32>
    %cst_69 = arith.constant 0.000000e+00 : f32
    %136 = vector.broadcast %cst_69 : f32 to vector<32x32xf32>
    %137 = arith.maximumf %135, %136 : vector<32x32xf32>
    %138 = arith.mulf %98, %71 : vector<32x32xf32>
    %cst_70 = arith.constant 1.000000e+00 : f32
    %139 = vector.broadcast %cst_70 : f32 to vector<32x32xf32>
    %140 = arith.subf %139, %98 : vector<32x32xf32>
    %141 = arith.mulf %140, %132 : vector<32x32xf32>
    %142 = arith.addf %138, %141 : vector<32x32xf32>
    %143 = arith.mulf %98, %76 : vector<32x32xf32>
    %cst_71 = arith.constant 1.000000e+00 : f32
    %144 = vector.broadcast %cst_71 : f32 to vector<32x32xf32>
    %145 = arith.subf %144, %98 : vector<32x32xf32>
    %146 = arith.mulf %145, %137 : vector<32x32xf32>
    %147 = arith.addf %143, %146 : vector<32x32xf32>
    %c0_72 = arith.constant 0 : index
    %c0_73 = arith.constant 0 : index
    %c2_74 = arith.constant 2 : index
    %148 = vector.load %arg1[%c0_72, %c0_73, %c2_74] : memref<1x32x8xf32, #tpu.memory_space<vmem>>, vector<1x32x1xf32>
    %149 = vector.shape_cast %148 : vector<1x32x1xf32> to vector<32x1xf32>
    %c0_75 = arith.constant 0 : index
    %c0_76 = arith.constant 0 : index
    %150 = vector.load %arg6[%c0_75, %c0_76] : memref<32x1xf32, #tpu.memory_space<vmem>>, vector<32x1xf32>
    %151 = vector.broadcast %149 : vector<32x1xf32> to vector<32x64xf32>
    %152 = vector.broadcast %0 : vector<1x64xf32> to vector<32x64xf32>
    %153 = arith.mulf %151, %152 : vector<32x64xf32>
    %154 = arith.truncf %142 : vector<32x32xf32> to vector<32x32xbf16>
    %c0_77 = arith.constant 0 : index
    %c0_78 = arith.constant 0 : index
    %155 = vector.load %arg3[%c0_77, %c0_78] : memref<32x64xbf16, #tpu.memory_space<vmem>>, vector<32x64xbf16>
    %cst_79 = arith.constant dense<0.000000e+00> : vector<32x64xf32>
    %156 = tpu.matmul %154, %155, %cst_79 {dimension_numbers = #tpu.dot_dimension_numbers<[1], [0], [0], [1], [0, 0, 1, 1], [], []>} : vector<32x32xbf16>, vector<32x64xbf16>, vector<32x64xf32> -> vector<32x64xf32>
    %157 = arith.addf %153, %156 : vector<32x64xf32>
    %c0_80 = arith.constant 0 : index
    %c0_81 = arith.constant 0 : index
    %158 = vector.load %arg2[%c0_80, %c0_81] : memref<32x32xbf16, #tpu.memory_space<vmem>>, vector<32x32xbf16>
    %159 = arith.truncf %157 : vector<32x64xf32> to vector<32x64xbf16>
    %cst_82 = arith.constant dense<0.000000e+00> : vector<32x64xf32>
    %160 = tpu.matmul %158, %159, %cst_82 {dimension_numbers = #tpu.dot_dimension_numbers<[1], [0], [0], [1], [0, 0, 1, 1], [], []>} : vector<32x32xbf16>, vector<32x64xbf16>, vector<32x64xf32> -> vector<32x64xf32>
    %161 = vector.broadcast %1 : vector<1x64xf32> to vector<32x64xf32>
    %162 = arith.addf %160, %161 : vector<32x64xf32>
    %163 = arith.negf %162 : vector<32x64xf32>
    %164 = math.exp %163 : vector<32x64xf32>
    %cst_83 = arith.constant 1.000000e+00 : f32
    %165 = vector.broadcast %cst_83 : f32 to vector<32x64xf32>
    %166 = arith.addf %165, %164 : vector<32x64xf32>
    %167 = arith.divf %165, %166 : vector<32x64xf32>
    %168 = vector.extract_strided_slice %167 {offsets = [0, 0], sizes = [32, 32], strides = [1, 1]} : vector<32x64xf32> to vector<32x32xf32>
    %169 = vector.extract_strided_slice %167 {offsets = [0, 32], sizes = [32, 32], strides = [1, 1]} : vector<32x64xf32> to vector<32x32xf32>
    %170 = arith.mulf %168, %142 : vector<32x32xf32>
    %171 = arith.truncf %170 : vector<32x32xf32> to vector<32x32xbf16>
    %c0_84 = arith.constant 0 : index
    %c0_85 = arith.constant 0 : index
    %172 = vector.load %arg8[%c0_84, %c0_85] : memref<32x64xbf16, #tpu.memory_space<vmem>>, vector<32x32xbf16>
    tpu.vector_store %arg8[%c0_84, %c0_85], %171 {strides = array<i32>} : memref<32x64xbf16, #tpu.memory_space<vmem>>, vector<32x32xbf16>,
    %173 = arith.mulf %168, %147 : vector<32x32xf32>
    %174 = arith.truncf %173 : vector<32x32xf32> to vector<32x32xbf16>
    %c0_86 = arith.constant 0 : index
    %c32_87 = arith.constant 32 : index
    %175 = vector.load %arg8[%c0_86, %c32_87] : memref<32x64xbf16, #tpu.memory_space<vmem>>, vector<32x32xbf16>
    tpu.vector_store %arg8[%c0_86, %c32_87], %174 {strides = array<i32>} : memref<32x64xbf16, #tpu.memory_space<vmem>>, vector<32x32xbf16>,
    %176 = vector.broadcast %149 : vector<32x1xf32> to vector<32x64xf32>
    %177 = vector.broadcast %2 : vector<1x64xf32> to vector<32x64xf32>
    %178 = arith.mulf %176, %177 : vector<32x64xf32>
    %c0_88 = arith.constant 0 : index
    %c0_89 = arith.constant 0 : index
    %179 = vector.load %arg8[%c0_88, %c0_89] : memref<32x64xbf16, #tpu.memory_space<vmem>>, vector<32x64xbf16>
    %c0_90 = arith.constant 0 : index
    %c0_91 = arith.constant 0 : index
    %180 = vector.load %arg4[%c0_90, %c0_91] : memref<64x64xbf16, #tpu.memory_space<vmem>>, vector<64x64xbf16>
    %cst_92 = arith.constant dense<0.000000e+00> : vector<32x64xf32>
    %181 = tpu.matmul %179, %180, %cst_92 {dimension_numbers = #tpu.dot_dimension_numbers<[1], [0], [0], [1], [0, 0, 1, 1], [], []>} : vector<32x64xbf16>, vector<64x64xbf16>, vector<32x64xf32> -> vector<32x64xf32>
    %182 = arith.addf %178, %181 : vector<32x64xf32>
    %183 = vector.broadcast %3 : vector<1x64xf32> to vector<32x64xf32>
    %184 = arith.addf %182, %183 : vector<32x64xf32>
    %185 = vector.extract_strided_slice %184 {offsets = [0, 0], sizes = [32, 32], strides = [1, 1]} : vector<32x64xf32> to vector<32x32xf32>
    %186 = vector.extract_strided_slice %184 {offsets = [0, 32], sizes = [32, 32], strides = [1, 1]} : vector<32x64xf32> to vector<32x32xf32>
    %cst_93 = arith.constant -1.000000e+00 : f32
    %187 = vector.broadcast %cst_93 : f32 to vector<32x32xf32>
    %188 = arith.mulf %187, %186 : vector<32x32xf32>
    %189 = math.exp %188 : vector<32x32xf32>
    %190 = arith.mulf %185, %189 : vector<32x32xf32>
    %191 = arith.truncf %190 : vector<32x32xf32> to vector<32x32xbf16>
    %c0_94 = arith.constant 0 : index
    %c0_95 = arith.constant 0 : index
    %192 = vector.load %arg8[%c0_94, %c0_95] : memref<32x64xbf16, #tpu.memory_space<vmem>>, vector<32x32xbf16>
    tpu.vector_store %arg8[%c0_94, %c0_95], %191 {strides = array<i32>} : memref<32x64xbf16, #tpu.memory_space<vmem>>, vector<32x32xbf16>,
    %193 = arith.mulf %186, %189 : vector<32x32xf32>
    %194 = arith.mulf %193, %189 : vector<32x32xf32>
    %195 = vector.broadcast %150 : vector<32x1xf32> to vector<32x32xf32>
    %196 = arith.mulf %195, %194 : vector<32x32xf32>
    %197 = arith.truncf %196 : vector<32x32xf32> to vector<32x32xbf16>
    %c0_96 = arith.constant 0 : index
    %c32_97 = arith.constant 32 : index
    %198 = vector.load %arg8[%c0_96, %c32_97] : memref<32x64xbf16, #tpu.memory_space<vmem>>, vector<32x32xbf16>
    tpu.vector_store %arg8[%c0_96, %c32_97], %197 {strides = array<i32>} : memref<32x64xbf16, #tpu.memory_space<vmem>>, vector<32x32xbf16>,
    %c0_98 = arith.constant 0 : index
    %c0_99 = arith.constant 0 : index
    %199 = vector.load %arg2[%c0_98, %c0_99] : memref<32x32xbf16, #tpu.memory_space<vmem>>, vector<32x32xbf16>
    %c0_100 = arith.constant 0 : index
    %c0_101 = arith.constant 0 : index
    %200 = vector.load %arg8[%c0_100, %c0_101] : memref<32x64xbf16, #tpu.memory_space<vmem>>, vector<32x64xbf16>
    %cst_102 = arith.constant dense<0.000000e+00> : vector<32x64xf32>
    %201 = tpu.matmul %199, %200, %cst_102 {dimension_numbers = #tpu.dot_dimension_numbers<[1], [0], [0], [1], [0, 0, 1, 1], [], []>} : vector<32x32xbf16>, vector<32x64xbf16>, vector<32x64xf32> -> vector<32x64xf32>
    %202 = vector.extract_strided_slice %201 {offsets = [0, 0], sizes = [32, 32], strides = [1, 1]} : vector<32x64xf32> to vector<32x32xf32>
    %203 = math.tanh %202 : vector<32x32xf32>
    %204 = vector.extract_strided_slice %201 {offsets = [0, 32], sizes = [32, 32], strides = [1, 1]} : vector<32x64xf32> to vector<32x32xf32>
    %205 = vector.broadcast %150 : vector<32x1xf32> to vector<32x32xf32>
    %206 = arith.mulf %205, %204 : vector<32x32xf32>
    %cst_103 = arith.constant 0.000000e+00 : f32
    %207 = vector.broadcast %cst_103 : f32 to vector<32x32xf32>
    %208 = arith.maximumf %206, %207 : vector<32x32xf32>
    %209 = arith.mulf %169, %142 : vector<32x32xf32>
    %cst_104 = arith.constant 1.000000e+00 : f32
    %210 = vector.broadcast %cst_104 : f32 to vector<32x32xf32>
    %211 = arith.subf %210, %169 : vector<32x32xf32>
    %212 = arith.mulf %211, %203 : vector<32x32xf32>
    %213 = arith.addf %209, %212 : vector<32x32xf32>
    %214 = arith.mulf %169, %147 : vector<32x32xf32>
    %cst_105 = arith.constant 1.000000e+00 : f32
    %215 = vector.broadcast %cst_105 : f32 to vector<32x32xf32>
    %216 = arith.subf %215, %169 : vector<32x32xf32>
    %217 = arith.mulf %216, %208 : vector<32x32xf32>
    %218 = arith.addf %214, %217 : vector<32x32xf32>
    %c0_106 = arith.constant 0 : index
    %c0_107 = arith.constant 0 : index
    %c3_108 = arith.constant 3 : index
    %219 = vector.load %arg1[%c0_106, %c0_107, %c3_108] : memref<1x32x8xf32, #tpu.memory_space<vmem>>, vector<1x32x1xf32>
    %220 = vector.shape_cast %219 : vector<1x32x1xf32> to vector<32x1xf32>
    %c0_109 = arith.constant 0 : index
    %c0_110 = arith.constant 0 : index
    %221 = vector.load %arg6[%c0_109, %c0_110] : memref<32x1xf32, #tpu.memory_space<vmem>>, vector<32x1xf32>
    %222 = vector.broadcast %220 : vector<32x1xf32> to vector<32x64xf32>
    %223 = vector.broadcast %0 : vector<1x64xf32> to vector<32x64xf32>
    %224 = arith.mulf %222, %223 : vector<32x64xf32>
    %225 = arith.truncf %213 : vector<32x32xf32> to vector<32x32xbf16>
    %c0_111 = arith.constant 0 : index
    %c0_112 = arith.constant 0 : index
    %226 = vector.load %arg3[%c0_111, %c0_112] : memref<32x64xbf16, #tpu.memory_space<vmem>>, vector<32x64xbf16>
    %cst_113 = arith.constant dense<0.000000e+00> : vector<32x64xf32>
    %227 = tpu.matmul %225, %226, %cst_113 {dimension_numbers = #tpu.dot_dimension_numbers<[1], [0], [0], [1], [0, 0, 1, 1], [], []>} : vector<32x32xbf16>, vector<32x64xbf16>, vector<32x64xf32> -> vector<32x64xf32>
    %228 = arith.addf %224, %227 : vector<32x64xf32>
    %c0_114 = arith.constant 0 : index
    %c0_115 = arith.constant 0 : index
    %229 = vector.load %arg2[%c0_114, %c0_115] : memref<32x32xbf16, #tpu.memory_space<vmem>>, vector<32x32xbf16>
    %230 = arith.truncf %228 : vector<32x64xf32> to vector<32x64xbf16>
    %cst_116 = arith.constant dense<0.000000e+00> : vector<32x64xf32>
    %231 = tpu.matmul %229, %230, %cst_116 {dimension_numbers = #tpu.dot_dimension_numbers<[1], [0], [0], [1], [0, 0, 1, 1], [], []>} : vector<32x32xbf16>, vector<32x64xbf16>, vector<32x64xf32> -> vector<32x64xf32>
    %232 = vector.broadcast %1 : vector<1x64xf32> to vector<32x64xf32>
    %233 = arith.addf %231, %232 : vector<32x64xf32>
    %234 = arith.negf %233 : vector<32x64xf32>
    %235 = math.exp %234 : vector<32x64xf32>
    %cst_117 = arith.constant 1.000000e+00 : f32
    %236 = vector.broadcast %cst_117 : f32 to vector<32x64xf32>
    %237 = arith.addf %236, %235 : vector<32x64xf32>
    %238 = arith.divf %236, %237 : vector<32x64xf32>
    %239 = vector.extract_strided_slice %238 {offsets = [0, 0], sizes = [32, 32], strides = [1, 1]} : vector<32x64xf32> to vector<32x32xf32>
    %240 = vector.extract_strided_slice %238 {offsets = [0, 32], sizes = [32, 32], strides = [1, 1]} : vector<32x64xf32> to vector<32x32xf32>
    %241 = arith.mulf %239, %213 : vector<32x32xf32>
    %242 = arith.truncf %241 : vector<32x32xf32> to vector<32x32xbf16>
    %c0_118 = arith.constant 0 : index
    %c0_119 = arith.constant 0 : index
    %243 = vector.load %arg8[%c0_118, %c0_119] : memref<32x64xbf16, #tpu.memory_space<vmem>>, vector<32x32xbf16>
    tpu.vector_store %arg8[%c0_118, %c0_119], %242 {strides = array<i32>} : memref<32x64xbf16, #tpu.memory_space<vmem>>, vector<32x32xbf16>,
    %244 = arith.mulf %239, %218 : vector<32x32xf32>
    %245 = arith.truncf %244 : vector<32x32xf32> to vector<32x32xbf16>
    %c0_120 = arith.constant 0 : index
    %c32_121 = arith.constant 32 : index
    %246 = vector.load %arg8[%c0_120, %c32_121] : memref<32x64xbf16, #tpu.memory_space<vmem>>, vector<32x32xbf16>
    tpu.vector_store %arg8[%c0_120, %c32_121], %245 {strides = array<i32>} : memref<32x64xbf16, #tpu.memory_space<vmem>>, vector<32x32xbf16>,
    %247 = vector.broadcast %220 : vector<32x1xf32> to vector<32x64xf32>
    %248 = vector.broadcast %2 : vector<1x64xf32> to vector<32x64xf32>
    %249 = arith.mulf %247, %248 : vector<32x64xf32>
    %c0_122 = arith.constant 0 : index
    %c0_123 = arith.constant 0 : index
    %250 = vector.load %arg8[%c0_122, %c0_123] : memref<32x64xbf16, #tpu.memory_space<vmem>>, vector<32x64xbf16>
    %c0_124 = arith.constant 0 : index
    %c0_125 = arith.constant 0 : index
    %251 = vector.load %arg4[%c0_124, %c0_125] : memref<64x64xbf16, #tpu.memory_space<vmem>>, vector<64x64xbf16>
    %cst_126 = arith.constant dense<0.000000e+00> : vector<32x64xf32>
    %252 = tpu.matmul %250, %251, %cst_126 {dimension_numbers = #tpu.dot_dimension_numbers<[1], [0], [0], [1], [0, 0, 1, 1], [], []>} : vector<32x64xbf16>, vector<64x64xbf16>, vector<32x64xf32> -> vector<32x64xf32>
    %253 = arith.addf %249, %252 : vector<32x64xf32>
    %254 = vector.broadcast %3 : vector<1x64xf32> to vector<32x64xf32>
    %255 = arith.addf %253, %254 : vector<32x64xf32>
    %256 = vector.extract_strided_slice %255 {offsets = [0, 0], sizes = [32, 32], strides = [1, 1]} : vector<32x64xf32> to vector<32x32xf32>
    %257 = vector.extract_strided_slice %255 {offsets = [0, 32], sizes = [32, 32], strides = [1, 1]} : vector<32x64xf32> to vector<32x32xf32>
    %cst_127 = arith.constant -1.000000e+00 : f32
    %258 = vector.broadcast %cst_127 : f32 to vector<32x32xf32>
    %259 = arith.mulf %258, %257 : vector<32x32xf32>
    %260 = math.exp %259 : vector<32x32xf32>
    %261 = arith.mulf %256, %260 : vector<32x32xf32>
    %262 = arith.truncf %261 : vector<32x32xf32> to vector<32x32xbf16>
    %c0_128 = arith.constant 0 : index
    %c0_129 = arith.constant 0 : index
    %263 = vector.load %arg8[%c0_128, %c0_129] : memref<32x64xbf16, #tpu.memory_space<vmem>>, vector<32x32xbf16>
    tpu.vector_store %arg8[%c0_128, %c0_129], %262 {strides = array<i32>} : memref<32x64xbf16, #tpu.memory_space<vmem>>, vector<32x32xbf16>,
    %264 = arith.mulf %257, %260 : vector<32x32xf32>
    %265 = arith.mulf %264, %260 : vector<32x32xf32>
    %266 = vector.broadcast %221 : vector<32x1xf32> to vector<32x32xf32>
    %267 = arith.mulf %266, %265 : vector<32x32xf32>
    %268 = arith.truncf %267 : vector<32x32xf32> to vector<32x32xbf16>
    %c0_130 = arith.constant 0 : index
    %c32_131 = arith.constant 32 : index
    %269 = vector.load %arg8[%c0_130, %c32_131] : memref<32x64xbf16, #tpu.memory_space<vmem>>, vector<32x32xbf16>
    tpu.vector_store %arg8[%c0_130, %c32_131], %268 {strides = array<i32>} : memref<32x64xbf16, #tpu.memory_space<vmem>>, vector<32x32xbf16>,
    %c0_132 = arith.constant 0 : index
    %c0_133 = arith.constant 0 : index
    %270 = vector.load %arg2[%c0_132, %c0_133] : memref<32x32xbf16, #tpu.memory_space<vmem>>, vector<32x32xbf16>
    %c0_134 = arith.constant 0 : index
    %c0_135 = arith.constant 0 : index
    %271 = vector.load %arg8[%c0_134, %c0_135] : memref<32x64xbf16, #tpu.memory_space<vmem>>, vector<32x64xbf16>
    %cst_136 = arith.constant dense<0.000000e+00> : vector<32x64xf32>
    %272 = tpu.matmul %270, %271, %cst_136 {dimension_numbers = #tpu.dot_dimension_numbers<[1], [0], [0], [1], [0, 0, 1, 1], [], []>} : vector<32x32xbf16>, vector<32x64xbf16>, vector<32x64xf32> -> vector<32x64xf32>
    %273 = vector.extract_strided_slice %272 {offsets = [0, 0], sizes = [32, 32], strides = [1, 1]} : vector<32x64xf32> to vector<32x32xf32>
    %274 = math.tanh %273 : vector<32x32xf32>
    %275 = vector.extract_strided_slice %272 {offsets = [0, 32], sizes = [32, 32], strides = [1, 1]} : vector<32x64xf32> to vector<32x32xf32>
    %276 = vector.broadcast %221 : vector<32x1xf32> to vector<32x32xf32>
    %277 = arith.mulf %276, %275 : vector<32x32xf32>
    %cst_137 = arith.constant 0.000000e+00 : f32
    %278 = vector.broadcast %cst_137 : f32 to vector<32x32xf32>
    %279 = arith.maximumf %277, %278 : vector<32x32xf32>
    %280 = arith.mulf %240, %213 : vector<32x32xf32>
    %cst_138 = arith.constant 1.000000e+00 : f32
    %281 = vector.broadcast %cst_138 : f32 to vector<32x32xf32>
    %282 = arith.subf %281, %240 : vector<32x32xf32>
    %283 = arith.mulf %282, %274 : vector<32x32xf32>
    %284 = arith.addf %280, %283 : vector<32x32xf32>
    %285 = arith.mulf %240, %218 : vector<32x32xf32>
    %cst_139 = arith.constant 1.000000e+00 : f32
    %286 = vector.broadcast %cst_139 : f32 to vector<32x32xf32>
    %287 = arith.subf %286, %240 : vector<32x32xf32>
    %288 = arith.mulf %287, %279 : vector<32x32xf32>
    %289 = arith.addf %285, %288 : vector<32x32xf32>
    %c0_140 = arith.constant 0 : index
    %c0_141 = arith.constant 0 : index
    %c4 = arith.constant 4 : index
    %290 = vector.load %arg1[%c0_140, %c0_141, %c4] : memref<1x32x8xf32, #tpu.memory_space<vmem>>, vector<1x32x1xf32>
    %291 = vector.shape_cast %290 : vector<1x32x1xf32> to vector<32x1xf32>
    %c0_142 = arith.constant 0 : index
    %c0_143 = arith.constant 0 : index
    %292 = vector.load %arg6[%c0_142, %c0_143] : memref<32x1xf32, #tpu.memory_space<vmem>>, vector<32x1xf32>
    %293 = vector.broadcast %291 : vector<32x1xf32> to vector<32x64xf32>
    %294 = vector.broadcast %0 : vector<1x64xf32> to vector<32x64xf32>
    %295 = arith.mulf %293, %294 : vector<32x64xf32>
    %296 = arith.truncf %284 : vector<32x32xf32> to vector<32x32xbf16>
    %c0_144 = arith.constant 0 : index
    %c0_145 = arith.constant 0 : index
    %297 = vector.load %arg3[%c0_144, %c0_145] : memref<32x64xbf16, #tpu.memory_space<vmem>>, vector<32x64xbf16>
    %cst_146 = arith.constant dense<0.000000e+00> : vector<32x64xf32>
    %298 = tpu.matmul %296, %297, %cst_146 {dimension_numbers = #tpu.dot_dimension_numbers<[1], [0], [0], [1], [0, 0, 1, 1], [], []>} : vector<32x32xbf16>, vector<32x64xbf16>, vector<32x64xf32> -> vector<32x64xf32>
    %299 = arith.addf %295, %298 : vector<32x64xf32>
    %c0_147 = arith.constant 0 : index
    %c0_148 = arith.constant 0 : index
    %300 = vector.load %arg2[%c0_147, %c0_148] : memref<32x32xbf16, #tpu.memory_space<vmem>>, vector<32x32xbf16>
    %301 = arith.truncf %299 : vector<32x64xf32> to vector<32x64xbf16>
    %cst_149 = arith.constant dense<0.000000e+00> : vector<32x64xf32>
    %302 = tpu.matmul %300, %301, %cst_149 {dimension_numbers = #tpu.dot_dimension_numbers<[1], [0], [0], [1], [0, 0, 1, 1], [], []>} : vector<32x32xbf16>, vector<32x64xbf16>, vector<32x64xf32> -> vector<32x64xf32>
    %303 = vector.broadcast %1 : vector<1x64xf32> to vector<32x64xf32>
    %304 = arith.addf %302, %303 : vector<32x64xf32>
    %305 = arith.negf %304 : vector<32x64xf32>
    %306 = math.exp %305 : vector<32x64xf32>
    %cst_150 = arith.constant 1.000000e+00 : f32
    %307 = vector.broadcast %cst_150 : f32 to vector<32x64xf32>
    %308 = arith.addf %307, %306 : vector<32x64xf32>
    %309 = arith.divf %307, %308 : vector<32x64xf32>
    %310 = vector.extract_strided_slice %309 {offsets = [0, 0], sizes = [32, 32], strides = [1, 1]} : vector<32x64xf32> to vector<32x32xf32>
    %311 = vector.extract_strided_slice %309 {offsets = [0, 32], sizes = [32, 32], strides = [1, 1]} : vector<32x64xf32> to vector<32x32xf32>
    %312 = arith.mulf %310, %284 : vector<32x32xf32>
    %313 = arith.truncf %312 : vector<32x32xf32> to vector<32x32xbf16>
    %c0_151 = arith.constant 0 : index
    %c0_152 = arith.constant 0 : index
    %314 = vector.load %arg8[%c0_151, %c0_152] : memref<32x64xbf16, #tpu.memory_space<vmem>>, vector<32x32xbf16>
    tpu.vector_store %arg8[%c0_151, %c0_152], %313 {strides = array<i32>} : memref<32x64xbf16, #tpu.memory_space<vmem>>, vector<32x32xbf16>,
    %315 = arith.mulf %310, %289 : vector<32x32xf32>
    %316 = arith.truncf %315 : vector<32x32xf32> to vector<32x32xbf16>
    %c0_153 = arith.constant 0 : index
    %c32_154 = arith.constant 32 : index
    %317 = vector.load %arg8[%c0_153, %c32_154] : memref<32x64xbf16, #tpu.memory_space<vmem>>, vector<32x32xbf16>
    tpu.vector_store %arg8[%c0_153, %c32_154], %316 {strides = array<i32>} : memref<32x64xbf16, #tpu.memory_space<vmem>>, vector<32x32xbf16>,
    %318 = vector.broadcast %291 : vector<32x1xf32> to vector<32x64xf32>
    %319 = vector.broadcast %2 : vector<1x64xf32> to vector<32x64xf32>
    %320 = arith.mulf %318, %319 : vector<32x64xf32>
    %c0_155 = arith.constant 0 : index
    %c0_156 = arith.constant 0 : index
    %321 = vector.load %arg8[%c0_155, %c0_156] : memref<32x64xbf16, #tpu.memory_space<vmem>>, vector<32x64xbf16>
    %c0_157 = arith.constant 0 : index
    %c0_158 = arith.constant 0 : index
    %322 = vector.load %arg4[%c0_157, %c0_158] : memref<64x64xbf16, #tpu.memory_space<vmem>>, vector<64x64xbf16>
    %cst_159 = arith.constant dense<0.000000e+00> : vector<32x64xf32>
    %323 = tpu.matmul %321, %322, %cst_159 {dimension_numbers = #tpu.dot_dimension_numbers<[1], [0], [0], [1], [0, 0, 1, 1], [], []>} : vector<32x64xbf16>, vector<64x64xbf16>, vector<32x64xf32> -> vector<32x64xf32>
    %324 = arith.addf %320, %323 : vector<32x64xf32>
    %325 = vector.broadcast %3 : vector<1x64xf32> to vector<32x64xf32>
    %326 = arith.addf %324, %325 : vector<32x64xf32>
    %327 = vector.extract_strided_slice %326 {offsets = [0, 0], sizes = [32, 32], strides = [1, 1]} : vector<32x64xf32> to vector<32x32xf32>
    %328 = vector.extract_strided_slice %326 {offsets = [0, 32], sizes = [32, 32], strides = [1, 1]} : vector<32x64xf32> to vector<32x32xf32>
    %cst_160 = arith.constant -1.000000e+00 : f32
    %329 = vector.broadcast %cst_160 : f32 to vector<32x32xf32>
    %330 = arith.mulf %329, %328 : vector<32x32xf32>
    %331 = math.exp %330 : vector<32x32xf32>
    %332 = arith.mulf %327, %331 : vector<32x32xf32>
    %333 = arith.truncf %332 : vector<32x32xf32> to vector<32x32xbf16>
    %c0_161 = arith.constant 0 : index
    %c0_162 = arith.constant 0 : index
    %334 = vector.load %arg8[%c0_161, %c0_162] : memref<32x64xbf16, #tpu.memory_space<vmem>>, vector<32x32xbf16>
    tpu.vector_store %arg8[%c0_161, %c0_162], %333 {strides = array<i32>} : memref<32x64xbf16, #tpu.memory_space<vmem>>, vector<32x32xbf16>,
    %335 = arith.mulf %328, %331 : vector<32x32xf32>
    %336 = arith.mulf %335, %331 : vector<32x32xf32>
    %337 = vector.broadcast %292 : vector<32x1xf32> to vector<32x32xf32>
    %338 = arith.mulf %337, %336 : vector<32x32xf32>
    %339 = arith.truncf %338 : vector<32x32xf32> to vector<32x32xbf16>
    %c0_163 = arith.constant 0 : index
    %c32_164 = arith.constant 32 : index
    %340 = vector.load %arg8[%c0_163, %c32_164] : memref<32x64xbf16, #tpu.memory_space<vmem>>, vector<32x32xbf16>
    tpu.vector_store %arg8[%c0_163, %c32_164], %339 {strides = array<i32>} : memref<32x64xbf16, #tpu.memory_space<vmem>>, vector<32x32xbf16>,
    %c0_165 = arith.constant 0 : index
    %c0_166 = arith.constant 0 : index
    %341 = vector.load %arg2[%c0_165, %c0_166] : memref<32x32xbf16, #tpu.memory_space<vmem>>, vector<32x32xbf16>
    %c0_167 = arith.constant 0 : index
    %c0_168 = arith.constant 0 : index
    %342 = vector.load %arg8[%c0_167, %c0_168] : memref<32x64xbf16, #tpu.memory_space<vmem>>, vector<32x64xbf16>
    %cst_169 = arith.constant dense<0.000000e+00> : vector<32x64xf32>
    %343 = tpu.matmul %341, %342, %cst_169 {dimension_numbers = #tpu.dot_dimension_numbers<[1], [0], [0], [1], [0, 0, 1, 1], [], []>} : vector<32x32xbf16>, vector<32x64xbf16>, vector<32x64xf32> -> vector<32x64xf32>
    %344 = vector.extract_strided_slice %343 {offsets = [0, 0], sizes = [32, 32], strides = [1, 1]} : vector<32x64xf32> to vector<32x32xf32>
    %345 = math.tanh %344 : vector<32x32xf32>
    %346 = vector.extract_strided_slice %343 {offsets = [0, 32], sizes = [32, 32], strides = [1, 1]} : vector<32x64xf32> to vector<32x32xf32>
    %347 = vector.broadcast %292 : vector<32x1xf32> to vector<32x32xf32>
    %348 = arith.mulf %347, %346 : vector<32x32xf32>
    %cst_170 = arith.constant 0.000000e+00 : f32
    %349 = vector.broadcast %cst_170 : f32 to vector<32x32xf32>
    %350 = arith.maximumf %348, %349 : vector<32x32xf32>
    %351 = arith.mulf %311, %284 : vector<32x32xf32>
    %cst_171 = arith.constant 1.000000e+00 : f32
    %352 = vector.broadcast %cst_171 : f32 to vector<32x32xf32>
    %353 = arith.subf %352, %311 : vector<32x32xf32>
    %354 = arith.mulf %353, %345 : vector<32x32xf32>
    %355 = arith.addf %351, %354 : vector<32x32xf32>
    %356 = arith.mulf %311, %289 : vector<32x32xf32>
    %cst_172 = arith.constant 1.000000e+00 : f32
    %357 = vector.broadcast %cst_172 : f32 to vector<32x32xf32>
    %358 = arith.subf %357, %311 : vector<32x32xf32>
    %359 = arith.mulf %358, %350 : vector<32x32xf32>
    %360 = arith.addf %356, %359 : vector<32x32xf32>
    %c0_173 = arith.constant 0 : index
    %c0_174 = arith.constant 0 : index
    %c5 = arith.constant 5 : index
    %361 = vector.load %arg1[%c0_173, %c0_174, %c5] : memref<1x32x8xf32, #tpu.memory_space<vmem>>, vector<1x32x1xf32>
    %362 = vector.shape_cast %361 : vector<1x32x1xf32> to vector<32x1xf32>
    %c0_175 = arith.constant 0 : index
    %c0_176 = arith.constant 0 : index
    %363 = vector.load %arg6[%c0_175, %c0_176] : memref<32x1xf32, #tpu.memory_space<vmem>>, vector<32x1xf32>
    %364 = vector.broadcast %362 : vector<32x1xf32> to vector<32x64xf32>
    %365 = vector.broadcast %0 : vector<1x64xf32> to vector<32x64xf32>
    %366 = arith.mulf %364, %365 : vector<32x64xf32>
    %367 = arith.truncf %355 : vector<32x32xf32> to vector<32x32xbf16>
    %c0_177 = arith.constant 0 : index
    %c0_178 = arith.constant 0 : index
    %368 = vector.load %arg3[%c0_177, %c0_178] : memref<32x64xbf16, #tpu.memory_space<vmem>>, vector<32x64xbf16>
    %cst_179 = arith.constant dense<0.000000e+00> : vector<32x64xf32>
    %369 = tpu.matmul %367, %368, %cst_179 {dimension_numbers = #tpu.dot_dimension_numbers<[1], [0], [0], [1], [0, 0, 1, 1], [], []>} : vector<32x32xbf16>, vector<32x64xbf16>, vector<32x64xf32> -> vector<32x64xf32>
    %370 = arith.addf %366, %369 : vector<32x64xf32>
    %c0_180 = arith.constant 0 : index
    %c0_181 = arith.constant 0 : index
    %371 = vector.load %arg2[%c0_180, %c0_181] : memref<32x32xbf16, #tpu.memory_space<vmem>>, vector<32x32xbf16>
    %372 = arith.truncf %370 : vector<32x64xf32> to vector<32x64xbf16>
    %cst_182 = arith.constant dense<0.000000e+00> : vector<32x64xf32>
    %373 = tpu.matmul %371, %372, %cst_182 {dimension_numbers = #tpu.dot_dimension_numbers<[1], [0], [0], [1], [0, 0, 1, 1], [], []>} : vector<32x32xbf16>, vector<32x64xbf16>, vector<32x64xf32> -> vector<32x64xf32>
    %374 = vector.broadcast %1 : vector<1x64xf32> to vector<32x64xf32>
    %375 = arith.addf %373, %374 : vector<32x64xf32>
    %376 = arith.negf %375 : vector<32x64xf32>
    %377 = math.exp %376 : vector<32x64xf32>
    %cst_183 = arith.constant 1.000000e+00 : f32
    %378 = vector.broadcast %cst_183 : f32 to vector<32x64xf32>
    %379 = arith.addf %378, %377 : vector<32x64xf32>
    %380 = arith.divf %378, %379 : vector<32x64xf32>
    %381 = vector.extract_strided_slice %380 {offsets = [0, 0], sizes = [32, 32], strides = [1, 1]} : vector<32x64xf32> to vector<32x32xf32>
    %382 = vector.extract_strided_slice %380 {offsets = [0, 32], sizes = [32, 32], strides = [1, 1]} : vector<32x64xf32> to vector<32x32xf32>
    %383 = arith.mulf %381, %355 : vector<32x32xf32>
    %384 = arith.truncf %383 : vector<32x32xf32> to vector<32x32xbf16>
    %c0_184 = arith.constant 0 : index
    %c0_185 = arith.constant 0 : index
    %385 = vector.load %arg8[%c0_184, %c0_185] : memref<32x64xbf16, #tpu.memory_space<vmem>>, vector<32x32xbf16>
    tpu.vector_store %arg8[%c0_184, %c0_185], %384 {strides = array<i32>} : memref<32x64xbf16, #tpu.memory_space<vmem>>, vector<32x32xbf16>,
    %386 = arith.mulf %381, %360 : vector<32x32xf32>
    %387 = arith.truncf %386 : vector<32x32xf32> to vector<32x32xbf16>
    %c0_186 = arith.constant 0 : index
    %c32_187 = arith.constant 32 : index
    %388 = vector.load %arg8[%c0_186, %c32_187] : memref<32x64xbf16, #tpu.memory_space<vmem>>, vector<32x32xbf16>
    tpu.vector_store %arg8[%c0_186, %c32_187], %387 {strides = array<i32>} : memref<32x64xbf16, #tpu.memory_space<vmem>>, vector<32x32xbf16>,
    %389 = vector.broadcast %362 : vector<32x1xf32> to vector<32x64xf32>
    %390 = vector.broadcast %2 : vector<1x64xf32> to vector<32x64xf32>
    %391 = arith.mulf %389, %390 : vector<32x64xf32>
    %c0_188 = arith.constant 0 : index
    %c0_189 = arith.constant 0 : index
    %392 = vector.load %arg8[%c0_188, %c0_189] : memref<32x64xbf16, #tpu.memory_space<vmem>>, vector<32x64xbf16>
    %c0_190 = arith.constant 0 : index
    %c0_191 = arith.constant 0 : index
    %393 = vector.load %arg4[%c0_190, %c0_191] : memref<64x64xbf16, #tpu.memory_space<vmem>>, vector<64x64xbf16>
    %cst_192 = arith.constant dense<0.000000e+00> : vector<32x64xf32>
    %394 = tpu.matmul %392, %393, %cst_192 {dimension_numbers = #tpu.dot_dimension_numbers<[1], [0], [0], [1], [0, 0, 1, 1], [], []>} : vector<32x64xbf16>, vector<64x64xbf16>, vector<32x64xf32> -> vector<32x64xf32>
    %395 = arith.addf %391, %394 : vector<32x64xf32>
    %396 = vector.broadcast %3 : vector<1x64xf32> to vector<32x64xf32>
    %397 = arith.addf %395, %396 : vector<32x64xf32>
    %398 = vector.extract_strided_slice %397 {offsets = [0, 0], sizes = [32, 32], strides = [1, 1]} : vector<32x64xf32> to vector<32x32xf32>
    %399 = vector.extract_strided_slice %397 {offsets = [0, 32], sizes = [32, 32], strides = [1, 1]} : vector<32x64xf32> to vector<32x32xf32>
    %cst_193 = arith.constant -1.000000e+00 : f32
    %400 = vector.broadcast %cst_193 : f32 to vector<32x32xf32>
    %401 = arith.mulf %400, %399 : vector<32x32xf32>
    %402 = math.exp %401 : vector<32x32xf32>
    %403 = arith.mulf %398, %402 : vector<32x32xf32>
    %404 = arith.truncf %403 : vector<32x32xf32> to vector<32x32xbf16>
    %c0_194 = arith.constant 0 : index
    %c0_195 = arith.constant 0 : index
    %405 = vector.load %arg8[%c0_194, %c0_195] : memref<32x64xbf16, #tpu.memory_space<vmem>>, vector<32x32xbf16>
    tpu.vector_store %arg8[%c0_194, %c0_195], %404 {strides = array<i32>} : memref<32x64xbf16, #tpu.memory_space<vmem>>, vector<32x32xbf16>,
    %406 = arith.mulf %399, %402 : vector<32x32xf32>
    %407 = arith.mulf %406, %402 : vector<32x32xf32>
    %408 = vector.broadcast %363 : vector<32x1xf32> to vector<32x32xf32>
    %409 = arith.mulf %408, %407 : vector<32x32xf32>
    %410 = arith.truncf %409 : vector<32x32xf32> to vector<32x32xbf16>
    %c0_196 = arith.constant 0 : index
    %c32_197 = arith.constant 32 : index
    %411 = vector.load %arg8[%c0_196, %c32_197] : memref<32x64xbf16, #tpu.memory_space<vmem>>, vector<32x32xbf16>
    tpu.vector_store %arg8[%c0_196, %c32_197], %410 {strides = array<i32>} : memref<32x64xbf16, #tpu.memory_space<vmem>>, vector<32x32xbf16>,
    %c0_198 = arith.constant 0 : index
    %c0_199 = arith.constant 0 : index
    %412 = vector.load %arg2[%c0_198, %c0_199] : memref<32x32xbf16, #tpu.memory_space<vmem>>, vector<32x32xbf16>
    %c0_200 = arith.constant 0 : index
    %c0_201 = arith.constant 0 : index
    %413 = vector.load %arg8[%c0_200, %c0_201] : memref<32x64xbf16, #tpu.memory_space<vmem>>, vector<32x64xbf16>
    %cst_202 = arith.constant dense<0.000000e+00> : vector<32x64xf32>
    %414 = tpu.matmul %412, %413, %cst_202 {dimension_numbers = #tpu.dot_dimension_numbers<[1], [0], [0], [1], [0, 0, 1, 1], [], []>} : vector<32x32xbf16>, vector<32x64xbf16>, vector<32x64xf32> -> vector<32x64xf32>
    %415 = vector.extract_strided_slice %414 {offsets = [0, 0], sizes = [32, 32], strides = [1, 1]} : vector<32x64xf32> to vector<32x32xf32>
    %416 = math.tanh %415 : vector<32x32xf32>
    %417 = vector.extract_strided_slice %414 {offsets = [0, 32], sizes = [32, 32], strides = [1, 1]} : vector<32x64xf32> to vector<32x32xf32>
    %418 = vector.broadcast %363 : vector<32x1xf32> to vector<32x32xf32>
    %419 = arith.mulf %418, %417 : vector<32x32xf32>
    %cst_203 = arith.constant 0.000000e+00 : f32
    %420 = vector.broadcast %cst_203 : f32 to vector<32x32xf32>
    %421 = arith.maximumf %419, %420 : vector<32x32xf32>
    %422 = arith.mulf %382, %355 : vector<32x32xf32>
    %cst_204 = arith.constant 1.000000e+00 : f32
    %423 = vector.broadcast %cst_204 : f32 to vector<32x32xf32>
    %424 = arith.subf %423, %382 : vector<32x32xf32>
    %425 = arith.mulf %424, %416 : vector<32x32xf32>
    %426 = arith.addf %422, %425 : vector<32x32xf32>
    %427 = arith.mulf %382, %360 : vector<32x32xf32>
    %cst_205 = arith.constant 1.000000e+00 : f32
    %428 = vector.broadcast %cst_205 : f32 to vector<32x32xf32>
    %429 = arith.subf %428, %382 : vector<32x32xf32>
    %430 = arith.mulf %429, %421 : vector<32x32xf32>
    %431 = arith.addf %427, %430 : vector<32x32xf32>
    %c0_206 = arith.constant 0 : index
    %c0_207 = arith.constant 0 : index
    %c6 = arith.constant 6 : index
    %432 = vector.load %arg1[%c0_206, %c0_207, %c6] : memref<1x32x8xf32, #tpu.memory_space<vmem>>, vector<1x32x1xf32>
    %433 = vector.shape_cast %432 : vector<1x32x1xf32> to vector<32x1xf32>
    %c0_208 = arith.constant 0 : index
    %c0_209 = arith.constant 0 : index
    %434 = vector.load %arg6[%c0_208, %c0_209] : memref<32x1xf32, #tpu.memory_space<vmem>>, vector<32x1xf32>
    %435 = vector.broadcast %433 : vector<32x1xf32> to vector<32x64xf32>
    %436 = vector.broadcast %0 : vector<1x64xf32> to vector<32x64xf32>
    %437 = arith.mulf %435, %436 : vector<32x64xf32>
    %438 = arith.truncf %426 : vector<32x32xf32> to vector<32x32xbf16>
    %c0_210 = arith.constant 0 : index
    %c0_211 = arith.constant 0 : index
    %439 = vector.load %arg3[%c0_210, %c0_211] : memref<32x64xbf16, #tpu.memory_space<vmem>>, vector<32x64xbf16>
    %cst_212 = arith.constant dense<0.000000e+00> : vector<32x64xf32>
    %440 = tpu.matmul %438, %439, %cst_212 {dimension_numbers = #tpu.dot_dimension_numbers<[1], [0], [0], [1], [0, 0, 1, 1], [], []>} : vector<32x32xbf16>, vector<32x64xbf16>, vector<32x64xf32> -> vector<32x64xf32>
    %441 = arith.addf %437, %440 : vector<32x64xf32>
    %c0_213 = arith.constant 0 : index
    %c0_214 = arith.constant 0 : index
    %442 = vector.load %arg2[%c0_213, %c0_214] : memref<32x32xbf16, #tpu.memory_space<vmem>>, vector<32x32xbf16>
    %443 = arith.truncf %441 : vector<32x64xf32> to vector<32x64xbf16>
    %cst_215 = arith.constant dense<0.000000e+00> : vector<32x64xf32>
    %444 = tpu.matmul %442, %443, %cst_215 {dimension_numbers = #tpu.dot_dimension_numbers<[1], [0], [0], [1], [0, 0, 1, 1], [], []>} : vector<32x32xbf16>, vector<32x64xbf16>, vector<32x64xf32> -> vector<32x64xf32>
    %445 = vector.broadcast %1 : vector<1x64xf32> to vector<32x64xf32>
    %446 = arith.addf %444, %445 : vector<32x64xf32>
    %447 = arith.negf %446 : vector<32x64xf32>
    %448 = math.exp %447 : vector<32x64xf32>
    %cst_216 = arith.constant 1.000000e+00 : f32
    %449 = vector.broadcast %cst_216 : f32 to vector<32x64xf32>
    %450 = arith.addf %449, %448 : vector<32x64xf32>
    %451 = arith.divf %449, %450 : vector<32x64xf32>
    %452 = vector.extract_strided_slice %451 {offsets = [0, 0], sizes = [32, 32], strides = [1, 1]} : vector<32x64xf32> to vector<32x32xf32>
    %453 = vector.extract_strided_slice %451 {offsets = [0, 32], sizes = [32, 32], strides = [1, 1]} : vector<32x64xf32> to vector<32x32xf32>
    %454 = arith.mulf %452, %426 : vector<32x32xf32>
    %455 = arith.truncf %454 : vector<32x32xf32> to vector<32x32xbf16>
    %c0_217 = arith.constant 0 : index
    %c0_218 = arith.constant 0 : index
    %456 = vector.load %arg8[%c0_217, %c0_218] : memref<32x64xbf16, #tpu.memory_space<vmem>>, vector<32x32xbf16>
    tpu.vector_store %arg8[%c0_217, %c0_218], %455 {strides = array<i32>} : memref<32x64xbf16, #tpu.memory_space<vmem>>, vector<32x32xbf16>,
    %457 = arith.mulf %452, %431 : vector<32x32xf32>
    %458 = arith.truncf %457 : vector<32x32xf32> to vector<32x32xbf16>
    %c0_219 = arith.constant 0 : index
    %c32_220 = arith.constant 32 : index
    %459 = vector.load %arg8[%c0_219, %c32_220] : memref<32x64xbf16, #tpu.memory_space<vmem>>, vector<32x32xbf16>
    tpu.vector_store %arg8[%c0_219, %c32_220], %458 {strides = array<i32>} : memref<32x64xbf16, #tpu.memory_space<vmem>>, vector<32x32xbf16>,
    %460 = vector.broadcast %433 : vector<32x1xf32> to vector<32x64xf32>
    %461 = vector.broadcast %2 : vector<1x64xf32> to vector<32x64xf32>
    %462 = arith.mulf %460, %461 : vector<32x64xf32>
    %c0_221 = arith.constant 0 : index
    %c0_222 = arith.constant 0 : index
    %463 = vector.load %arg8[%c0_221, %c0_222] : memref<32x64xbf16, #tpu.memory_space<vmem>>, vector<32x64xbf16>
    %c0_223 = arith.constant 0 : index
    %c0_224 = arith.constant 0 : index
    %464 = vector.load %arg4[%c0_223, %c0_224] : memref<64x64xbf16, #tpu.memory_space<vmem>>, vector<64x64xbf16>
    %cst_225 = arith.constant dense<0.000000e+00> : vector<32x64xf32>
    %465 = tpu.matmul %463, %464, %cst_225 {dimension_numbers = #tpu.dot_dimension_numbers<[1], [0], [0], [1], [0, 0, 1, 1], [], []>} : vector<32x64xbf16>, vector<64x64xbf16>, vector<32x64xf32> -> vector<32x64xf32>
    %466 = arith.addf %462, %465 : vector<32x64xf32>
    %467 = vector.broadcast %3 : vector<1x64xf32> to vector<32x64xf32>
    %468 = arith.addf %466, %467 : vector<32x64xf32>
    %469 = vector.extract_strided_slice %468 {offsets = [0, 0], sizes = [32, 32], strides = [1, 1]} : vector<32x64xf32> to vector<32x32xf32>
    %470 = vector.extract_strided_slice %468 {offsets = [0, 32], sizes = [32, 32], strides = [1, 1]} : vector<32x64xf32> to vector<32x32xf32>
    %cst_226 = arith.constant -1.000000e+00 : f32
    %471 = vector.broadcast %cst_226 : f32 to vector<32x32xf32>
    %472 = arith.mulf %471, %470 : vector<32x32xf32>
    %473 = math.exp %472 : vector<32x32xf32>
    %474 = arith.mulf %469, %473 : vector<32x32xf32>
    %475 = arith.truncf %474 : vector<32x32xf32> to vector<32x32xbf16>
    %c0_227 = arith.constant 0 : index
    %c0_228 = arith.constant 0 : index
    %476 = vector.load %arg8[%c0_227, %c0_228] : memref<32x64xbf16, #tpu.memory_space<vmem>>, vector<32x32xbf16>
    tpu.vector_store %arg8[%c0_227, %c0_228], %475 {strides = array<i32>} : memref<32x64xbf16, #tpu.memory_space<vmem>>, vector<32x32xbf16>,
    %477 = arith.mulf %470, %473 : vector<32x32xf32>
    %478 = arith.mulf %477, %473 : vector<32x32xf32>
    %479 = vector.broadcast %434 : vector<32x1xf32> to vector<32x32xf32>
    %480 = arith.mulf %479, %478 : vector<32x32xf32>
    %481 = arith.truncf %480 : vector<32x32xf32> to vector<32x32xbf16>
    %c0_229 = arith.constant 0 : index
    %c32_230 = arith.constant 32 : index
    %482 = vector.load %arg8[%c0_229, %c32_230] : memref<32x64xbf16, #tpu.memory_space<vmem>>, vector<32x32xbf16>
    tpu.vector_store %arg8[%c0_229, %c32_230], %481 {strides = array<i32>} : memref<32x64xbf16, #tpu.memory_space<vmem>>, vector<32x32xbf16>,
    %c0_231 = arith.constant 0 : index
    %c0_232 = arith.constant 0 : index
    %483 = vector.load %arg2[%c0_231, %c0_232] : memref<32x32xbf16, #tpu.memory_space<vmem>>, vector<32x32xbf16>
    %c0_233 = arith.constant 0 : index
    %c0_234 = arith.constant 0 : index
    %484 = vector.load %arg8[%c0_233, %c0_234] : memref<32x64xbf16, #tpu.memory_space<vmem>>, vector<32x64xbf16>
    %cst_235 = arith.constant dense<0.000000e+00> : vector<32x64xf32>
    %485 = tpu.matmul %483, %484, %cst_235 {dimension_numbers = #tpu.dot_dimension_numbers<[1], [0], [0], [1], [0, 0, 1, 1], [], []>} : vector<32x32xbf16>, vector<32x64xbf16>, vector<32x64xf32> -> vector<32x64xf32>
    %486 = vector.extract_strided_slice %485 {offsets = [0, 0], sizes = [32, 32], strides = [1, 1]} : vector<32x64xf32> to vector<32x32xf32>
    %487 = math.tanh %486 : vector<32x32xf32>
    %488 = vector.extract_strided_slice %485 {offsets = [0, 32], sizes = [32, 32], strides = [1, 1]} : vector<32x64xf32> to vector<32x32xf32>
    %489 = vector.broadcast %434 : vector<32x1xf32> to vector<32x32xf32>
    %490 = arith.mulf %489, %488 : vector<32x32xf32>
    %cst_236 = arith.constant 0.000000e+00 : f32
    %491 = vector.broadcast %cst_236 : f32 to vector<32x32xf32>
    %492 = arith.maximumf %490, %491 : vector<32x32xf32>
    %493 = arith.mulf %453, %426 : vector<32x32xf32>
    %cst_237 = arith.constant 1.000000e+00 : f32
    %494 = vector.broadcast %cst_237 : f32 to vector<32x32xf32>
    %495 = arith.subf %494, %453 : vector<32x32xf32>
    %496 = arith.mulf %495, %487 : vector<32x32xf32>
    %497 = arith.addf %493, %496 : vector<32x32xf32>
    %498 = arith.mulf %453, %431 : vector<32x32xf32>
    %cst_238 = arith.constant 1.000000e+00 : f32
    %499 = vector.broadcast %cst_238 : f32 to vector<32x32xf32>
    %500 = arith.subf %499, %453 : vector<32x32xf32>
    %501 = arith.mulf %500, %492 : vector<32x32xf32>
    %502 = arith.addf %498, %501 : vector<32x32xf32>
    %c0_239 = arith.constant 0 : index
    %c0_240 = arith.constant 0 : index
    %c7 = arith.constant 7 : index
    %503 = vector.load %arg1[%c0_239, %c0_240, %c7] : memref<1x32x8xf32, #tpu.memory_space<vmem>>, vector<1x32x1xf32>
    %504 = vector.shape_cast %503 : vector<1x32x1xf32> to vector<32x1xf32>
    %c0_241 = arith.constant 0 : index
    %c0_242 = arith.constant 0 : index
    %505 = vector.load %arg6[%c0_241, %c0_242] : memref<32x1xf32, #tpu.memory_space<vmem>>, vector<32x1xf32>
    %506 = vector.broadcast %504 : vector<32x1xf32> to vector<32x64xf32>
    %507 = vector.broadcast %0 : vector<1x64xf32> to vector<32x64xf32>
    %508 = arith.mulf %506, %507 : vector<32x64xf32>
    %509 = arith.truncf %497 : vector<32x32xf32> to vector<32x32xbf16>
    %c0_243 = arith.constant 0 : index
    %c0_244 = arith.constant 0 : index
    %510 = vector.load %arg3[%c0_243, %c0_244] : memref<32x64xbf16, #tpu.memory_space<vmem>>, vector<32x64xbf16>
    %cst_245 = arith.constant dense<0.000000e+00> : vector<32x64xf32>
    %511 = tpu.matmul %509, %510, %cst_245 {dimension_numbers = #tpu.dot_dimension_numbers<[1], [0], [0], [1], [0, 0, 1, 1], [], []>} : vector<32x32xbf16>, vector<32x64xbf16>, vector<32x64xf32> -> vector<32x64xf32>
    %512 = arith.addf %508, %511 : vector<32x64xf32>
    %c0_246 = arith.constant 0 : index
    %c0_247 = arith.constant 0 : index
    %513 = vector.load %arg2[%c0_246, %c0_247] : memref<32x32xbf16, #tpu.memory_space<vmem>>, vector<32x32xbf16>
    %514 = arith.truncf %512 : vector<32x64xf32> to vector<32x64xbf16>
    %cst_248 = arith.constant dense<0.000000e+00> : vector<32x64xf32>
    %515 = tpu.matmul %513, %514, %cst_248 {dimension_numbers = #tpu.dot_dimension_numbers<[1], [0], [0], [1], [0, 0, 1, 1], [], []>} : vector<32x32xbf16>, vector<32x64xbf16>, vector<32x64xf32> -> vector<32x64xf32>
    %516 = vector.broadcast %1 : vector<1x64xf32> to vector<32x64xf32>
    %517 = arith.addf %515, %516 : vector<32x64xf32>
    %518 = arith.negf %517 : vector<32x64xf32>
    %519 = math.exp %518 : vector<32x64xf32>
    %cst_249 = arith.constant 1.000000e+00 : f32
    %520 = vector.broadcast %cst_249 : f32 to vector<32x64xf32>
    %521 = arith.addf %520, %519 : vector<32x64xf32>
    %522 = arith.divf %520, %521 : vector<32x64xf32>
    %523 = vector.extract_strided_slice %522 {offsets = [0, 0], sizes = [32, 32], strides = [1, 1]} : vector<32x64xf32> to vector<32x32xf32>
    %524 = vector.extract_strided_slice %522 {offsets = [0, 32], sizes = [32, 32], strides = [1, 1]} : vector<32x64xf32> to vector<32x32xf32>
    %525 = arith.mulf %523, %497 : vector<32x32xf32>
    %526 = arith.truncf %525 : vector<32x32xf32> to vector<32x32xbf16>
    %c0_250 = arith.constant 0 : index
    %c0_251 = arith.constant 0 : index
    %527 = vector.load %arg8[%c0_250, %c0_251] : memref<32x64xbf16, #tpu.memory_space<vmem>>, vector<32x32xbf16>
    tpu.vector_store %arg8[%c0_250, %c0_251], %526 {strides = array<i32>} : memref<32x64xbf16, #tpu.memory_space<vmem>>, vector<32x32xbf16>,
    %528 = arith.mulf %523, %502 : vector<32x32xf32>
    %529 = arith.truncf %528 : vector<32x32xf32> to vector<32x32xbf16>
    %c0_252 = arith.constant 0 : index
    %c32_253 = arith.constant 32 : index
    %530 = vector.load %arg8[%c0_252, %c32_253] : memref<32x64xbf16, #tpu.memory_space<vmem>>, vector<32x32xbf16>
    tpu.vector_store %arg8[%c0_252, %c32_253], %529 {strides = array<i32>} : memref<32x64xbf16, #tpu.memory_space<vmem>>, vector<32x32xbf16>,
    %531 = vector.broadcast %504 : vector<32x1xf32> to vector<32x64xf32>
    %532 = vector.broadcast %2 : vector<1x64xf32> to vector<32x64xf32>
    %533 = arith.mulf %531, %532 : vector<32x64xf32>
    %c0_254 = arith.constant 0 : index
    %c0_255 = arith.constant 0 : index
    %534 = vector.load %arg8[%c0_254, %c0_255] : memref<32x64xbf16, #tpu.memory_space<vmem>>, vector<32x64xbf16>
    %c0_256 = arith.constant 0 : index
    %c0_257 = arith.constant 0 : index
    %535 = vector.load %arg4[%c0_256, %c0_257] : memref<64x64xbf16, #tpu.memory_space<vmem>>, vector<64x64xbf16>
    %cst_258 = arith.constant dense<0.000000e+00> : vector<32x64xf32>
    %536 = tpu.matmul %534, %535, %cst_258 {dimension_numbers = #tpu.dot_dimension_numbers<[1], [0], [0], [1], [0, 0, 1, 1], [], []>} : vector<32x64xbf16>, vector<64x64xbf16>, vector<32x64xf32> -> vector<32x64xf32>
    %537 = arith.addf %533, %536 : vector<32x64xf32>
    %538 = vector.broadcast %3 : vector<1x64xf32> to vector<32x64xf32>
    %539 = arith.addf %537, %538 : vector<32x64xf32>
    %540 = vector.extract_strided_slice %539 {offsets = [0, 0], sizes = [32, 32], strides = [1, 1]} : vector<32x64xf32> to vector<32x32xf32>
    %541 = vector.extract_strided_slice %539 {offsets = [0, 32], sizes = [32, 32], strides = [1, 1]} : vector<32x64xf32> to vector<32x32xf32>
    %cst_259 = arith.constant -1.000000e+00 : f32
    %542 = vector.broadcast %cst_259 : f32 to vector<32x32xf32>
    %543 = arith.mulf %542, %541 : vector<32x32xf32>
    %544 = math.exp %543 : vector<32x32xf32>
    %545 = arith.mulf %540, %544 : vector<32x32xf32>
    %546 = arith.truncf %545 : vector<32x32xf32> to vector<32x32xbf16>
    %c0_260 = arith.constant 0 : index
    %c0_261 = arith.constant 0 : index
    %547 = vector.load %arg8[%c0_260, %c0_261] : memref<32x64xbf16, #tpu.memory_space<vmem>>, vector<32x32xbf16>
    tpu.vector_store %arg8[%c0_260, %c0_261], %546 {strides = array<i32>} : memref<32x64xbf16, #tpu.memory_space<vmem>>, vector<32x32xbf16>,
    %548 = arith.mulf %541, %544 : vector<32x32xf32>
    %549 = arith.mulf %548, %544 : vector<32x32xf32>
    %550 = vector.broadcast %505 : vector<32x1xf32> to vector<32x32xf32>
    %551 = arith.mulf %550, %549 : vector<32x32xf32>
    %552 = arith.truncf %551 : vector<32x32xf32> to vector<32x32xbf16>
    %c0_262 = arith.constant 0 : index
    %c32_263 = arith.constant 32 : index
    %553 = vector.load %arg8[%c0_262, %c32_263] : memref<32x64xbf16, #tpu.memory_space<vmem>>, vector<32x32xbf16>
    tpu.vector_store %arg8[%c0_262, %c32_263], %552 {strides = array<i32>} : memref<32x64xbf16, #tpu.memory_space<vmem>>, vector<32x32xbf16>,
    %c0_264 = arith.constant 0 : index
    %c0_265 = arith.constant 0 : index
    %554 = vector.load %arg2[%c0_264, %c0_265] : memref<32x32xbf16, #tpu.memory_space<vmem>>, vector<32x32xbf16>
    %c0_266 = arith.constant 0 : index
    %c0_267 = arith.constant 0 : index
    %555 = vector.load %arg8[%c0_266, %c0_267] : memref<32x64xbf16, #tpu.memory_space<vmem>>, vector<32x64xbf16>
    %cst_268 = arith.constant dense<0.000000e+00> : vector<32x64xf32>
    %556 = tpu.matmul %554, %555, %cst_268 {dimension_numbers = #tpu.dot_dimension_numbers<[1], [0], [0], [1], [0, 0, 1, 1], [], []>} : vector<32x32xbf16>, vector<32x64xbf16>, vector<32x64xf32> -> vector<32x64xf32>
    %557 = vector.extract_strided_slice %556 {offsets = [0, 0], sizes = [32, 32], strides = [1, 1]} : vector<32x64xf32> to vector<32x32xf32>
    %558 = math.tanh %557 : vector<32x32xf32>
    %559 = vector.extract_strided_slice %556 {offsets = [0, 32], sizes = [32, 32], strides = [1, 1]} : vector<32x64xf32> to vector<32x32xf32>
    %560 = vector.broadcast %505 : vector<32x1xf32> to vector<32x32xf32>
    %561 = arith.mulf %560, %559 : vector<32x32xf32>
    %cst_269 = arith.constant 0.000000e+00 : f32
    %562 = vector.broadcast %cst_269 : f32 to vector<32x32xf32>
    %563 = arith.maximumf %561, %562 : vector<32x32xf32>
    %564 = arith.mulf %524, %497 : vector<32x32xf32>
    %cst_270 = arith.constant 1.000000e+00 : f32
    %565 = vector.broadcast %cst_270 : f32 to vector<32x32xf32>
    %566 = arith.subf %565, %524 : vector<32x32xf32>
    %567 = arith.mulf %566, %558 : vector<32x32xf32>
    %568 = arith.addf %564, %567 : vector<32x32xf32>
    %569 = arith.mulf %524, %502 : vector<32x32xf32>
    %cst_271 = arith.constant 1.000000e+00 : f32
    %570 = vector.broadcast %cst_271 : f32 to vector<32x32xf32>
    %571 = arith.subf %570, %524 : vector<32x32xf32>
    %572 = arith.mulf %571, %563 : vector<32x32xf32>
    %573 = arith.addf %569, %572 : vector<32x32xf32>
    %c0_272 = arith.constant 0 : index
    %c0_273 = arith.constant 0 : index
    %c0_274 = arith.constant 0 : index
    %574 = vector.load %arg7[%c0_272, %c0_273, %c0_274] : memref<1x32x64xf32, #tpu.memory_space<vmem>>, vector<1x32x32xf32>
    %575 = vector.shape_cast %574 : vector<1x32x32xf32> to vector<32x32xf32>
    %576 = vector.shape_cast %568 : vector<32x32xf32> to vector<1x32x32xf32>
    tpu.vector_store %arg7[%c0_272, %c0_273, %c0_274], %576 {strides = array<i32>} : memref<1x32x64xf32, #tpu.memory_space<vmem>>, vector<1x32x32xf32>,
    %c0_275 = arith.constant 0 : index
    %c0_276 = arith.constant 0 : index
    %c32_277 = arith.constant 32 : index
    %577 = vector.load %arg7[%c0_275, %c0_276, %c32_277] : memref<1x32x64xf32, #tpu.memory_space<vmem>>, vector<1x32x32xf32>
    %578 = vector.shape_cast %577 : vector<1x32x32xf32> to vector<32x32xf32>
    %579 = vector.shape_cast %573 : vector<32x32xf32> to vector<1x32x32xf32>
    tpu.vector_store %arg7[%c0_275, %c0_276, %c32_277], %579 {strides = array<i32>} : memref<1x32x64xf32, #tpu.memory_space<vmem>>, vector<1x32x32xf32>,
    return
  }
  func.func @transform_0(%arg0: i32) -> (i32, i32, i32) {
    %c0_i32 = arith.constant 0 : i32
    %c0_i32_0 = arith.constant 0 : i32
    %c0_i32_1 = arith.constant 0 : i32
    return %arg0, %c0_i32, %c0_i32_0 : i32, i32, i32
  }
  func.func @transform_1(%arg0: i32) -> (i32, i32) {
    %c0_i32 = arith.constant 0 : i32
    %c0_i32_0 = arith.constant 0 : i32
    %c0_i32_1 = arith.constant 0 : i32
    return %c0_i32, %c0_i32_0 : i32, i32
  }
  func.func @transform_2(%arg0: i32) -> (i32, i32) {
    %c0_i32 = arith.constant 0 : i32
    %c0_i32_0 = arith.constant 0 : i32
    %c0_i32_1 = arith.constant 0 : i32
    return %c0_i32, %c0_i32_0 : i32, i32
  }
  func.func @transform_3(%arg0: i32) -> (i32, i32) {
    %c0_i32 = arith.constant 0 : i32
    %c0_i32_0 = arith.constant 0 : i32
    %c0_i32_1 = arith.constant 0 : i32
    return %c0_i32, %c0_i32_0 : i32, i32
  }
  func.func @transform_4(%arg0: i32) -> (i32, i32) {
    %c0_i32 = arith.constant 0 : i32
    %c0_i32_0 = arith.constant 0 : i32
    %c0_i32_1 = arith.constant 0 : i32
    return %c0_i32, %c0_i32_0 : i32, i32
  }
  func.func @transform_5(%arg0: i32) -> (i32, i32) {
    %c0_i32 = arith.constant 0 : i32
    %c0_i32_0 = arith.constant 0 : i32
    %c0_i32_1 = arith.constant 0 : i32
    return %c0_i32, %c0_i32_0 : i32, i32
  }
  func.func @transform_6(%arg0: i32) -> (i32, i32, i32) {
    %c0_i32 = arith.constant 0 : i32
    %c0_i32_0 = arith.constant 0 : i32
    %c0_i32_1 = arith.constant 0 : i32
    return %arg0, %c0_i32, %c0_i32_0 : i32, i32, i32
  }
}

</mosaic_0001>

<bundles_post_ra>
// kernel: tgcn_forward.1
= control target key start
LH: loop header
LB: loop body
LE: loop exit
PB: predicated region body
PF: predicated region fallthrough
CT: control target
= control target key end

     0   :  { %v6422_v2 = vmov 0   ;;  %s8157_s0 = inlined_call_operand.vmem [shape: f32[1,32,8], index: 0, kind: input, shape index: {}]   ;;  %s8158_s1 = inlined_call_operand.vmem [shape: bf16[32,32], index: 1, kind: input, shape index: {}]   ;;  %s8159_s2 = inlined_call_operand.vmem [shape: bf16[32,64], index: 2, kind: input, shape index: {}]   ;;  %s8160_s3 = inlined_call_operand.vmem [shape: bf16[64,64], index: 3, kind: input, shape index: {}]   ;;  %s8161_s4 = inlined_call_operand.vmem [shape: f32[4,64], index: 4, kind: input, shape index: {}]   ;;  %s8162_s5 = inlined_call_operand.vmem [shape: f32[32,1], index: 5, kind: input, shape index: {}]   ;;  %s8163_s6 = inlined_call_operand.hbm [shape: f32[1,32,64], index: 6, kind: output, shape index: {}]  }
   0x1   :  { %v6050_v0 = vld [vmem:[%s8159_s2 + $0x8] sm:$0xff]   ;;  %v6051_v1 = vld [vmem:[%s8159_s2] sm:$0xff]   ;;  %5723 = vmatprep.mubr.bf16.mxu0 %v6422_v2  ;;  %6020 = vset.pattern.permute.xlu0 %v6422_v2  ;;  %v6481_v3 = vld [vmem:[%s8157_s0 + $0x10] sm:$0xff] }
   0x2   :  { %5719 = vmatprep.subr.bf16.mxu0 %v6050_v0  ;;  %6021 = vset.pattern.permute.xlu1 %v6422_v2  ;;  %v6487_v4 = vld [vmem:[%s8157_s0] sm:$0xff]  ;;  %v6493_v5 = vld [vmem:[%s8157_s0 + $0x18] sm:$0xff]  ;;  %v6498_v6 = vld [vmem:[%s8157_s0 + $0x8] sm:$0xff] }
   0x3   :  { %5720 = vmatpush3.bf16.msra.mxu0 %v6050_v0  ;;  %49 = vperm.xlu0 %6020, %v6481_v3  }
   0x4   :  { %5721 = vmatprep.subr.bf16.mxu0 %v6051_v1  ;;  %39 = vperm.xlu1 %6021, %v6487_v4  }
   0x7   :  { %5722 = vmatpush3.bf16.msra.mxu0 %v6051_v1  ;;  %54 = vperm.xlu0 %6020, %v6493_v5  }
   0x8   :  { %44 = vperm.xlu1 %6021, %v6498_v6  }
   0xa   :  { %5724 = vmatmul.mubr.bf16.vlgmr.msra.gmra.mxu0 %v6422_v2 }
   0xb   :  { %11 = vsyncpa [#allocation4], 0  ;;  %vm81_vm0 = vcmask 261120   ;;  %v6052_v7 = vld [vmem:[%s8158_s1] sm:$0xff]   ;;  %v6053_v27 = vld [vmem:[%s8158_s1 + $0x8] sm:$0xff]   ;;  %vm257_vm1 = vcmask 257024  }
   0xc   :  { %5731 = vmatprep.mubr.msk.bf16.mxu1 %vm81_vm0, %v6052_v7  ;;  %v6515_v10 = vld [vmem:[%s8161_s4] ss:$0 sm:$0xff]  ;;  %v6536_v28 = vld [vmem:[%s8161_s4 + $0x1] ss:$0 sm:$0xff]  ;;  %v6054_v49 = vld [vmem:[%s8160_s3 + $0x18] sm:$0xff]   ;;  %s6423_s25 = smov 32  }
   0xd   :  { %5735 = vmatprep.subr.bf16.mxu0 %v6054_v49  ;;  %v6055_v50 = vld [vmem:[%s8160_s3 + $0x10] sm:$0xff]   ;;  %v6056_v54 = vld [vmem:[%s8160_s3 + $0x8] sm:$0xff]   ;;  %v6057_v61 = vld [vmem:[%s8160_s3] sm:$0xff]   ;;  %vm274_vm2 = vcmask 519424   ;;  %vm333_vm3 = vcmask 523264   ;;  %s6424_s14 = smov 96  }
   0xe   :  { %5736 = vmatpush3.bf16.msra.mxu0 %v6054_v49  ;;  %v6592_v1 = vld [vmem:[%s8162_s5 + $0x10] sm:$0xff]  ;;  %v6599_v7 = vld [vmem:[%s8162_s5 + $0x18] sm:$0xff]  ;;  %vm5110_vm4 = vcmask 523520  }
   0xf   :  { %5737 = vmatprep.subr.bf16.mxu0 %v6055_v50 }
  0x12   :  { %5738 = vmatpush3.bf16.msra.mxu0 %v6055_v50 }
  0x13   :  { %5739 = vmatprep.subr.bf16.mxu0 %v6056_v54 }
  0x16   :  { %5740 = vmatpush3.bf16.msra.mxu0 %v6056_v54 }
  0x17   :  { %5741 = vmatprep.subr.bf16.mxu0 %v6057_v61 }
  0x1a   :  { %5742 = vmatpush3.bf16.msra.mxu0 %v6057_v61 }
  0x7e   :  { %v6508_v8 = vpop.permute.xlu0 %49 }
  0x7f   :  { %v6510_v9 = vpop.permute.xlu1 %39  ;;  %v63_v13 = vmul.f32 %v6515_v10, %v6508_v8 }
  0x80   :  { %v61_v16 = vmul.f32 %v6515_v10, %v6510_v9 }
  0x82   :  { %v6517_v11 = vpop.permute.xlu0 %54 }
  0x83   :  { %v6521_v15 = vpop.permute.xlu1 %44  ;;  %v64_v17 = vmul.f32 %v6515_v10, %v6517_v11 }
  0x84   :  { %v62_v21 = vmul.f32 %v6515_v10, %v6521_v15 }
  0xca   :  { %v5725_v12 = vpop.f32.mrf.mxu0 }
  0xcb   :  { %v136_v19 = vadd.f32 %v5725_v12, %v63_v13  ;;  %v6604_v12 = vld [vmem:[%s8162_s5] sm:$0xff]  ;;  %v6611_v13 = vld [vmem:[%s8162_s5 + $0x8] sm:$0xff] }
  0xcc   :  { %v119_v14 = vpop.f32.mrf.mxu0 }
  0xcd   :  { %v134_v23 = vadd.f32 %v119_v14, %v61_v16 }
  0xce   :  { %v5726_v18 = vpop.f32.mrf.mxu0 }
  0xcf   :  { %v137_v20 = vadd.f32 %v5726_v18, %v64_v17 }
  0xd0   :  { %v122_v22 = vpop.f32.mrf.mxu0 }
  0xd1   :  { %v135_v24 = vadd.f32 %v122_v22, %v62_v21  ;;  %v143_v25 = vpack.c.bf16 %v137_v20, %v136_v19 }
  0xd3   :  { %v142_v26 = vpack.c.bf16 %v135_v24, %v134_v23  ;;  %5727 = vmatprep.subr.bf16.mxu1 %v143_v25 }
  0xd4   :  { %5728 = vmatpush3.bf16.msra.mxu1 %v143_v25  ;;  %v6623_v25 = vld [vmem:[%s8161_s4 + $0x2] ss:$0 sm:$0xff] }
  0xd5   :  { %5729 = vmatprep.subr.bf16.mxu1 %v142_v26 }
  0xd8   :  { %5730 = vmatpush3.bf16.msra.mxu1 %v142_v26  ;;  %v285_v26 = vmul.f32 %v6623_v25, %v6508_v8 }
  0xdb   :  { %5732 = vmatmul.mubr.msk.bf16.vlgmr.msra.gmra.mxu1 %vm81_vm0, %v6053_v27  ;;  %v6630_v27 = vld [vmem:[%s8161_s4 + $0x3] ss:$0 sm:$0xff] }
 0x19b   :  { %v5733_v29 = vpop.f32.mrf.mxu1 }
 0x19c   :  { %v207_v30 = vadd.f32 %v5733_v29, %v6536_v28 }
 0x19d   :  { %v198_v31 = vpop.f32.mrf.mxu1 }
 0x19e   :  { %v5141_v32 = vmul.f32 -1.442695, %v207_v30  ;;  %v199_v33 = vadd.f32 %v6536_v28, %v198_v31  ;;  %v283_v31 = vmul.f32 %v6623_v25, %v6510_v9 }
 0x19f   :  { %v5734_v34 = vpop.f32.mrf.mxu1 }
 0x1a0   :  { %6132 = vpow2.f32 %v5141_v32  ;;  %v5139_v35 = vmul.f32 -1.442695, %v199_v33  ;;  %v210_v36 = vadd.f32 %v5734_v34, %v6536_v28 }
 0x1a1   :  { %v201_v37 = vpop.f32.mrf.mxu1 }
 0x1a2   :  { %6134 = vpow2.f32 %v5139_v35  ;;  %v5142_v38 = vmul.f32 -1.442695, %v210_v36  ;;  %v202_v39 = vadd.f32 %v6536_v28, %v201_v37  ;;  %v286_v35 = vmul.f32 %v6623_v25, %v6517_v11 }
 0x1a4   :  { %6136 = vpow2.f32 %v5142_v38  ;;  %v5140_v40 = vmul.f32 -1.442695, %v202_v39  ;;  %v284_v39 = vmul.f32 %v6623_v25, %v6521_v15 }
 0x1a6   :  { %6138 = vpow2.f32 %v5140_v40 }
 0x1ad   :  { %v6133_v41 = vpop.eup %6132 }
 0x1ae   :  { %v227_v42 = vadd.f32 1.0, %v6133_v41 }
 0x1af   :  { %v6135_v43 = vpop.eup %6134 }
 0x1b0   :  { %6140 = vrcp.f32 %v227_v42  ;;  %v225_v44 = vadd.f32 1.0, %v6135_v43 }
 0x1b1   :  { %v6137_v45 = vpop.eup %6136 }
 0x1b2   :  { %6142 = vrcp.f32 %v225_v44  ;;  %v228_v46 = vadd.f32 1.0, %v6137_v45 }
 0x1b3   :  { %v6139_v47 = vpop.eup %6138 }
 0x1b4   :  { %6144 = vrcp.f32 %v228_v46  ;;  %v226_v48 = vadd.f32 1.0, %v6139_v47 }
 0x1b6   :  { %6146 = vrcp.f32 %v226_v48 }
 0x1bd   :  { %v6548_v51 = vpop.eup %6140 }
 0x1be   :  { %v6551_v52 = vmul.f32 0.0, %v6548_v51 }
 0x1bf   :  { %v6553_v53 = vpop.eup %6142 }
 0x1c0   :  { %v6559_v55 = vmul.f32 0.0, %v6553_v53  ;;  %v5453_v56 = vpack.c.bf16 %v6551_v52, %v6551_v52 }
 0x1c1   :  { %v6563_v57 = vpop.eup %6144 }
 0x1c2   :  { %v5451_v58 = vpack.c.bf16 %v6559_v55, %v6559_v55  ;;  %v6568_v59 = vmul.f32 0.0, %v6563_v57  ;;  %260 = vst.msk [vmem:[#allocation2 + $0x8] sm:$0xf] %vm257_vm1, %v5453_v56 }
 0x1c3   :  { %v6571_v60 = vpop.eup %6146 }
 0x1c4   :  { %262 = vrot.lane.b32.xlu0 %v5451_v58, %s6423_s25  ;;  %v6578_v62 = vmul.f32 0.0, %v6571_v60  ;;  %v5454_v63 = vpack.c.bf16 %v6568_v59, %v6568_v59  ;;  %258 = vst.msk [vmem:[#allocation2] sm:$0xf] %vm257_vm1, %v5451_v58 }
 0x1c6   :  { %v5452_v0 = vpack.c.bf16 %v6578_v62, %v6578_v62  ;;  %261 = vst.msk [vmem:[#allocation2 + $0xc] sm:$0xf] %vm257_vm1, %v5454_v63 }
 0x1c8   :  { %264 = vrot.lane.b32.xlu1 %v5452_v0, %s6423_s25  ;;  %266 = vrot.lane.b32.xlu0 %v5453_v56, %s6423_s25  ;;  %259 = vst.msk [vmem:[#allocation2 + $0x4] sm:$0xf] %vm257_vm1, %v5452_v0  ;;  %v6058_v56 = vld [vmem:[%s8158_s1] sm:$0xff]  }
 0x1c9   :  { %5751 = vmatprep.mubr.msk.bf16.mxu1 %vm81_vm0, %v6058_v56 }
 0x1cc   :  { %268 = vrot.lane.b32.xlu1 %v5454_v63, %s6423_s25  ;;  %473 = vperm.xlu0 %6020, %v6592_v1  }
 0x1d0   :  { %478 = vperm.xlu1 %6021, %v6599_v7   ;;  %463 = vperm.xlu0 %6020, %v6604_v12  }
 0x1d4   :  { %468 = vperm.xlu1 %6021, %v6611_v13  }
 0x236   :  { %v263_v14 = vpop.permute.xlu0 %262 }
 0x237   :  { %275 = vst.msk [vmem:[#allocation2] sm:$0xf] %vm274_vm2, %v263_v14 }
 0x23a   :  { %v265_v16 = vpop.permute.xlu1 %264  ;;  %v267_v17 = vpop.permute.xlu0 %266 }
 0x23b   :  { %276 = vst.msk [vmem:[#allocation2 + $0x4] sm:$0xf] %vm274_vm2, %v265_v16  ;;  %277 = vst.msk [vmem:[#allocation2 + $0x8] sm:$0xf] %vm274_vm2, %v267_v17 }
 0x23e   :  { %v269_v18 = vpop.permute.xlu1 %268  ;;  %v287_v19 = vld [vmem:[#allocation2] sm:$0xf] }
 0x23f   :  { %278 = vst.msk [vmem:[#allocation2 + $0xc] sm:$0xf] %vm274_vm2, %v269_v18 }
 0x242   :  { %v288_v20 = vld [vmem:[#allocation2 + $0x4] sm:$0xf]  ;;  %v289_v22 = vld [vmem:[#allocation2 + $0x8] sm:$0xf] }
 0x243   :  { %v5148_v21 = vcombine.low %v287_v19, %v288_v20 }
 0x245   :  { %5743 = vmatprep.mubr.msk.bf16.mxu0 %vm333_vm3, %v5148_v21 }
 0x246   :  { %v290_v23 = vld [vmem:[#allocation2 + $0xc] sm:$0xf] }
 0x247   :  { %v5149_v24 = vcombine.low %v289_v22, %v290_v23  ;;  %v474_v58 = vpop.permute.xlu0 %473 }
 0x249   :  { %5744 = vmatmul.mubr.msk.bf16.vlgmr.msra.gmra.mxu0 %vm333_vm3, %v5149_v24 }
 0x24a   :  { %5767 = vmatprep.mubr.msk.bf16.mxu0 %vm81_vm0, %v6058_v56 }
 0x24b   :  { %v479_v63 = vpop.permute.xlu1 %478  ;;  %v464_v0 = vpop.permute.xlu0 %463 }
 0x24f   :  { %v6651_v18 = vpop.permute.xlu1 %468 }
 0x309   :  { %v5745_v29 = vpop.f32.mrf.mxu0 }
 0x30a   :  { %v391_v30 = vadd.f32 %v5745_v29, %v285_v26 }
 0x30b   :  { %v374_v32 = vpop.f32.mrf.mxu0 }
 0x30c   :  { %v399_v33 = vadd.f32 %v6630_v27, %v391_v30  ;;  %v389_v34 = vadd.f32 %v374_v32, %v283_v31 }
 0x30d   :  { %v5746_v36 = vpop.f32.mrf.mxu0 }
 0x30e   :  { %v403_v37 = vmul.f32 -1.0, %v399_v33  ;;  %v397_v8 = vadd.f32 %v6630_v27, %v389_v34  ;;  %v392_v38 = vadd.f32 %v5746_v36, %v286_v35 }
 0x30f   :  { %v377_v40 = vpop.f32.mrf.mxu0 }
 0x310   :  { %v409_v41 = vmul.f32 1.442695, %v403_v37  ;;  %v401_v42 = vmul.f32 -1.0, %v397_v8  ;;  %v400_v9 = vadd.f32 %v6630_v27, %v392_v38  ;;  %v390_v43 = vadd.f32 %v377_v40, %v284_v39 }
 0x312   :  { %6148 = vpow2.f32 %v409_v41  ;;  %v405_v44 = vmul.f32 1.442695, %v401_v42  ;;  %v404_v45 = vmul.f32 -1.0, %v400_v9  ;;  %v398_v46 = vadd.f32 %v6630_v27, %v390_v43 }
 0x314   :  { %v411_v11 = vmul.f32 1.442695, %v404_v45  ;;  %v402_v47 = vmul.f32 -1.0, %v398_v46  ;;  %6150 = vpow2.f32 %v405_v44 }
 0x316   :  { %6152 = vpow2.f32 %v411_v11  ;;  %v407_v48 = vmul.f32 1.442695, %v402_v47 }
 0x318   :  { %6154 = vpow2.f32 %v407_v48 }
 0x31f   :  { %v6149_v49 = vpop.eup %6148 }
 0x320   :  { %421 = vrot.lane.b32.xlu0 %v6149_v49, %s6424_s14  ;;  %v455_v61 = vmul.f32 %v6149_v49, %v399_v33 }
 0x321   :  { %v6151_v15 = vpop.eup %6150 }
 0x322   :  { %v459_v14 = vmul.f32 %v6149_v49, %v455_v61  ;;  %v453_v16 = vmul.f32 %v6151_v15, %v397_v8 }
 0x323   :  { %v6153_v50 = vpop.eup %6152 }
 0x324   :  { %417 = vrot.lane.b32.xlu0 %v6151_v15, %s6424_s14  ;;  %423 = vrot.lane.b32.xlu1 %v6153_v50, %s6424_s14  ;;  %v456_v17 = vmul.f32 %v6153_v50, %v400_v9  ;;  %v483_v19 = vmul.f32 %v474_v58, %v459_v14  ;;  %v457_v20 = vmul.f32 %v6151_v15, %v453_v16  ;;  %v604_v14 = vsub.f32 1.0, %v6548_v51 }
 0x325   :  { %v6155_v54 = vpop.eup %6154 }
 0x326   :  { %v460_v21 = vmul.f32 %v6153_v50, %v456_v17  ;;  %v454_v22 = vmul.f32 %v6155_v54, %v398_v46  ;;  %v5461_v29 = vpack.c.bf16 %v483_v19, %v483_v19  ;;  %v481_v30 = vmul.f32 %v464_v0, %v457_v20 }
 0x327   :  { %v602_v20 = vsub.f32 1.0, %v6553_v53 }
 0x328   :  { %419 = vrot.lane.b32.xlu1 %v6155_v54, %s6424_s14  ;;  %v484_v31 = vmul.f32 %v479_v63, %v460_v21  ;;  %v458_v32 = vmul.f32 %v6155_v54, %v454_v22  ;;  %v5459_v40 = vpack.c.bf16 %v481_v30, %v481_v30  ;;  %v6061_v30 = vld [vmem:[%s8159_s2] sm:$0xff]  }
 0x32a   :  { %v5462_v41 = vpack.c.bf16 %v484_v31, %v484_v31  ;;  %v482_v42 = vmul.f32 %v6651_v18, %v458_v32 }
 0x392   :  { %v422_v23 = vpop.permute.xlu0 %421 }
 0x393   :  { %v431_v24 = vmul.f32 %v422_v23, %v399_v33 }
 0x395   :  { %v5457_v26 = vpack.c.bf16 %v431_v24, %v431_v24 }
 0x396   :  { %v418_v34 = vpop.permute.xlu0 %417  ;;  %v424_v35 = vpop.permute.xlu1 %423 }
 0x397   :  { %451 = vst.msk [vmem:[#allocation2 + $0x8] sm:$0xf] %vm257_vm1, %v5457_v26  ;;  %v429_v36 = vmul.f32 %v418_v34, %v397_v8  ;;  %v432_v37 = vmul.f32 %v424_v35, %v400_v9  ;;  %v5460_v9 = vpack.c.bf16 %v482_v42, %v482_v42  ;;  %v605_v26 = vsub.f32 1.0, %v6563_v57  ;;  %v6060_v57 = vld [vmem:[%s8159_s2 + $0x8] sm:$0xff]  }
 0x398   :  { %503 = vst.msk [vmem:[#allocation2 + $0x8] sm:$0xf] %vm274_vm2, %v5461_v29  ;;  %v6425_v29 = vmov 1   ;;  %v603_v34 = vsub.f32 1.0, %v6571_v60 }
 0x399   :  { %v5455_v38 = vpack.c.bf16 %v429_v36, %v429_v36  ;;  %v5458_v39 = vpack.c.bf16 %v432_v37, %v432_v37  ;;  %6022 = vset.pattern.permute.xlu0 %v6425_v29  ;;  %6023 = vset.pattern.permute.xlu1 %v6425_v29 }
 0x39a   :  { %v420_v33 = vpop.permute.xlu1 %419 }
 0x39b   :  { %449 = vst.msk [vmem:[#allocation2] sm:$0xf] %vm257_vm1, %v5455_v38  ;;  %452 = vst.msk [vmem:[#allocation2 + $0xc] sm:$0xf] %vm257_vm1, %v5458_v39  ;;  %v430_v43 = vmul.f32 %v420_v33, %v398_v46  ;;  %v6665_v46 = vld [vmem:[%s8158_s1 + $0x8] sm:$0xff]  }
 0x39c   :  { %501 = vst.msk [vmem:[#allocation2] sm:$0xf] %vm274_vm2, %v5459_v40  ;;  %504 = vst.msk [vmem:[#allocation2 + $0xc] sm:$0xf] %vm274_vm2, %v5462_v41 }
 0x39d   :  { %v5456_v8 = vpack.c.bf16 %v430_v43, %v430_v43 }
 0x39f   :  { %450 = vst.msk [vmem:[#allocation2 + $0x4] sm:$0xf] %vm257_vm1, %v5456_v8  ;;  %v511_v44 = vld [vmem:[#allocation2 + $0x8] sm:$0xf] }
 0x3a0   :  { %502 = vst.msk [vmem:[#allocation2 + $0x4] sm:$0xf] %vm274_vm2, %v5460_v9 }
 0x3a3   :  { %v512_v45 = vld [vmem:[#allocation2 + $0xc] sm:$0xf]  ;;  %v509_v47 = vld [vmem:[#allocation2] sm:$0xf] }
 0x3a4   :  { %v5168_v11 = vcombine.low %v511_v44, %v512_v45 }
 0x3a6   :  { %5747 = vmatprep.subr.bf16.mxu1 %v5168_v11 }
 0x3a7   :  { %v510_v48 = vld [vmem:[#allocation2 + $0x4] sm:$0xf]  ;;  %5748 = vmatpush3.bf16.msra.mxu1 %v5168_v11 }
 0x3a8   :  { %v5167_v49 = vcombine.low %v509_v47, %v510_v48 }
 0x3aa   :  { %5749 = vmatprep.subr.bf16.mxu1 %v5167_v49 }
 0x3ab   :  { %5750 = vmatpush3.bf16.msra.mxu1 %v5167_v49 }
 0x3ac   :  { %5755 = vmatprep.subr.bf16.mxu1 %v6060_v57 }
 0x3ae   :  { %5752 = vmatmul.mubr.msk.bf16.vlgmr.msra.gmra.mxu1 %vm81_vm0, %v6665_v46 }
 0x3af   :  { %5756 = vmatpush3.bf16.msra.mxu1 %v6060_v57 }
 0x3b0   :  { %5757 = vmatprep.subr.bf16.mxu1 %v6061_v30 }
 0x3b3   :  { %5758 = vmatpush3.bf16.msra.mxu1 %v6061_v30 }
 0x46e   :  { %v5753_v15 = vpop.f32.mrf.mxu1 }
 0x46f   :  { %v596_v50 = vmul.f32 %v5753_v15, %v474_v58 }
 0x470   :  { %v575_v54 = vpop.f32.mrf.mxu1 }
 0x471   :  { %v600_v56 = vmax.f32 %v596_v50, 0.0  ;;  %6156 = vtanh.f32 %v575_v54  ;;  %v594_v61 = vmul.f32 %v575_v54, %v464_v0 }
 0x472   :  { %v5754_v16 = vpop.f32.mrf.mxu1  ;;  %6158 = vtanh.f32 %v5753_v15 }
 0x473   :  { %v598_v17 = vmax.f32 %v594_v61, 0.0  ;;  %v597_v19 = vmul.f32 %v5754_v16, %v479_v63  ;;  %v632_v21 = vmul.f32 %v604_v14, %v600_v56 }
 0x474   :  { %v578_v22 = vpop.f32.mrf.mxu1 }
 0x475   :  { %v601_v23 = vmax.f32 %v597_v19, 0.0  ;;  %6160 = vtanh.f32 %v578_v22  ;;  %v630_v24 = vmul.f32 %v602_v20, %v598_v17  ;;  %v595_v42 = vmul.f32 %v578_v22, %v6651_v18 }
 0x476   :  { %6162 = vtanh.f32 %v5754_v16 }
 0x477   :  { %v633_v58 = vmul.f32 %v605_v26, %v601_v23  ;;  %v599_v9 = vmax.f32 %v595_v42, 0.0 }
 0x479   :  { %v631_v18 = vmul.f32 %v603_v34, %v599_v9  ;;  %v6713_v11 = vadd.f32 %v633_v58, %v6568_v59 }
 0x47b   :  { %v6706_v45 = vadd.f32 %v631_v18, %v6578_v62 }
 0x47e   :  { %v6157_v0 = vpop.eup %6156 }
 0x47f   :  { %610 = vrot.lane.b32.xlu0 %v6157_v0, %s6423_s25  ;;  %v6159_v51 = vpop.eup %6158 }
 0x482   :  { %v6161_v63 = vpop.eup %6160 }
 0x483   :  { %614 = vrot.lane.b32.xlu0 %v6159_v51, %s6423_s25  ;;  %612 = vrot.lane.b32.xlu1 %v6161_v63, %s6423_s25  ;;  %v6163_v53 = vpop.eup %6162 }
 0x487   :  { %616 = vrot.lane.b32.xlu1 %v6163_v53, %s6423_s25 }
 0x4f1   :  { %v611_v31 = vpop.permute.xlu0 %610 }
 0x4f2   :  { %v622_v32 = vmul.f32 %v611_v31, %v602_v20 }
 0x4f4   :  { %v6684_v38 = vadd.f32 %v622_v32, %v6559_v55 }
 0x4f5   :  { %v615_v35 = vpop.permute.xlu0 %614  ;;  %v613_v36 = vpop.permute.xlu1 %612 }
 0x4f6   :  { %v623_v37 = vmul.f32 %v613_v36, %v603_v34  ;;  %v624_v39 = vmul.f32 %v615_v35, %v604_v14 }
 0x4f8   :  { %v6687_v40 = vadd.f32 %v623_v37, %v6578_v62  ;;  %v6693_v8 = vadd.f32 %v624_v39, %v6551_v52 }
 0x4f9   :  { %v617_v41 = vpop.permute.xlu1 %616 }
 0x4fa   :  { %v625_v33 = vmul.f32 %v617_v41, %v605_v26  ;;  %v670_v43 = vpack.c.bf16 %v6687_v40, %v6684_v38 }
 0x4fc   :  { %v6696_v60 = vadd.f32 %v625_v33, %v6568_v59  ;;  %678 = vrot.lane.b32.xlu0 %v670_v43, %s6424_s14  ;;  %v6062_v43 = vld [vmem:[%s8160_s3 + $0x18] sm:$0xff]  }
 0x4fd   :  { %5771 = vmatprep.subr.bf16.mxu1 %v6062_v43 }
 0x4fe   :  { %v671_v44 = vpack.c.bf16 %v6696_v60, %v6693_v8 }
 0x500   :  { %658 = vperm.xlu0 %6022, %v6481_v3   ;;  %680 = vrot.lane.b32.xlu1 %v671_v44, %s6424_s14  ;;  %v6716_v3 = vadd.f32 %v630_v24, %v6559_v55  ;;  %v6063_v44 = vld [vmem:[%s8160_s3 + $0x10] sm:$0xff]  }
 0x504   :  { %653 = vperm.xlu0 %6022, %v6498_v6   ;;  %663 = vperm.xlu1 %6023, %v6493_v5   ;;  %v6724_v5 = vadd.f32 %v632_v21, %v6551_v52 }
 0x508   :  { %874 = vrot.lane.b32.xlu0 %v6706_v45, %s6424_s14  ;;  %648 = vperm.xlu1 %6023, %v6487_v4  }
 0x509   :  { %6025 = vset.pattern.permute.xlu0 %v6422_v2 }
 0x50c   :  { %878 = vrot.lane.b32.xlu0 %v6713_v11, %s6424_s14  ;;  %872 = vrot.lane.b32.xlu1 %v6716_v3, %s6424_s14 }
 0x50d   :  { %6024 = vset.pattern.permute.xlu1 %v6422_v2 }
 0x510   :  { %834 = vrot.lane.b32.xlu0 %v6687_v40, %s6424_s14  ;;  %876 = vrot.lane.b32.xlu1 %v6724_v5, %s6424_s14 }
 0x514   :  { %838 = vrot.lane.b32.xlu0 %v6696_v60, %s6424_s14  ;;  %832 = vrot.lane.b32.xlu1 %v6684_v38, %s6424_s14 }
 0x518   :  { %836 = vrot.lane.b32.xlu1 %v6693_v8, %s6424_s14 }
 0x56e   :  { %v679_v4 = vpop.permute.xlu0 %678 }
 0x56f   :  { %5759 = vmatprep.mubr.msk.bf16.mxu1 %vm81_vm0, %v679_v4 }
 0x572   :  { %v681_v6 = vpop.permute.xlu1 %680 }
 0x573   :  { %5760 = vmatmul.mubr.msk.bf16.vlgmr.msra.gmra.mxu1 %vm81_vm0, %v681_v6 }
 0x574   :  { %5772 = vmatpush3.bf16.msra.mxu1 %v6062_v43 }
 0x575   :  { %5773 = vmatprep.subr.bf16.mxu1 %v6063_v44 }
 0x578   :  { %5774 = vmatpush3.bf16.msra.mxu1 %v6063_v44 }
 0x57b   :  { %v6740_v55 = vpop.permute.xlu0 %658 }
 0x57c   :  { %v668_v62 = vmul.f32 %v6515_v10, %v6740_v55 }
 0x57f   :  { %v6738_v52 = vpop.permute.xlu1 %663  ;;  %v6750_v50 = vpop.permute.xlu0 %653 }
 0x580   :  { %v669_v47 = vmul.f32 %v6515_v10, %v6738_v52  ;;  %v667_v14 = vmul.f32 %v6515_v10, %v6750_v50 }
 0x583   :  { %v6746_v48 = vpop.permute.xlu1 %648  ;;  %v875_v34 = vpop.permute.xlu0 %874 }
 0x584   :  { %v666_v15 = vmul.f32 %v6515_v10, %v6746_v48 }
 0x587   :  { %v879_v33 = vpop.permute.xlu0 %878 }
 0x58b   :  { %v835_v9 = vpop.permute.xlu0 %834 }
 0x633   :  { %v5761_v59 = vpop.f32.mrf.mxu1 }
 0x634   :  { %v751_v56 = vadd.f32 %v5761_v59, %v668_v62 }
 0x635   :  { %v734_v49 = vpop.f32.mrf.mxu1 }
 0x636   :  { %v749_v17 = vadd.f32 %v734_v49, %v666_v15  ;;  %v6064_v15 = vld [vmem:[%s8160_s3 + $0x8] sm:$0xff]  }
 0x637   :  { %v5762_v54 = vpop.f32.mrf.mxu1  ;;  %5775 = vmatprep.subr.bf16.mxu1 %v6064_v15 }
 0x638   :  { %v752_v61 = vadd.f32 %v5762_v54, %v669_v47  ;;  %5776 = vmatpush3.bf16.msra.mxu1 %v6064_v15 }
 0x639   :  { %v737_v16 = vpop.f32.mrf.mxu1 }
 0x63a   :  { %v754_v19 = vpack.c.bf16 %v752_v61, %v751_v56  ;;  %v750_v20 = vadd.f32 %v737_v16, %v667_v14  ;;  %v839_v56 = vpop.permute.xlu0 %838 }
 0x63c   :  { %v753_v21 = vpack.c.bf16 %v750_v20, %v749_v17  ;;  %5763 = vmatprep.subr.bf16.mxu0 %v754_v19 }
 0x63d   :  { %5764 = vmatpush3.bf16.msra.mxu0 %v754_v19 }
 0x63e   :  { %5765 = vmatprep.subr.bf16.mxu0 %v753_v21 }
 0x641   :  { %5766 = vmatpush3.bf16.msra.mxu0 %v753_v21 }
 0x644   :  { %5768 = vmatmul.mubr.msk.bf16.vlgmr.msra.gmra.mxu0 %vm81_vm0, %v6665_v46  ;;  %v873_v46 = vpop.permute.xlu1 %872 }
 0x648   :  { %v877_v37 = vpop.permute.xlu1 %876 }
 0x704   :  { %v5769_v22 = vpop.f32.mrf.mxu0 }
 0x705   :  { %v798_v23 = vadd.f32 %v5769_v22, %v6536_v28 }
 0x706   :  { %v789_v24 = vpop.f32.mrf.mxu0 }
 0x707   :  { %v5179_v26 = vmul.f32 -1.442695, %v798_v23  ;;  %v790_v58 = vadd.f32 %v6536_v28, %v789_v24  ;;  %v6065_v23 = vld [vmem:[%s8160_s3] sm:$0xff]  }
 0x708   :  { %v5770_v10 = vpop.f32.mrf.mxu0  ;;  %5777 = vmatprep.subr.bf16.mxu1 %v6065_v23 }
 0x709   :  { %6164 = vpow2.f32 %v5179_v26  ;;  %v5177_v29 = vmul.f32 -1.442695, %v790_v58  ;;  %v801_v0 = vadd.f32 %v5770_v10, %v6536_v28  ;;  %5778 = vmatpush3.bf16.msra.mxu1 %v6065_v23 }
 0x70a   :  { %v792_v51 = vpop.f32.mrf.mxu0 }
 0x70b   :  { %6166 = vpow2.f32 %v5177_v29  ;;  %v5180_v63 = vmul.f32 -1.442695, %v801_v0  ;;  %v793_v53 = vadd.f32 %v6536_v28, %v792_v51  ;;  %v833_v28 = vpop.permute.xlu1 %832 }
 0x70d   :  { %6168 = vpow2.f32 %v5180_v63  ;;  %v5178_v57 = vmul.f32 -1.442695, %v793_v53 }
 0x70f   :  { %6170 = vpow2.f32 %v5178_v57  ;;  %v837_v4 = vpop.permute.xlu1 %836 }
 0x716   :  { %v6165_v30 = vpop.eup %6164 }
 0x717   :  { %v818_v31 = vadd.f32 1.0, %v6165_v30  ;;  %v918_v30 = vmul.f32 %v6623_v25, %v6740_v55  ;;  %v917_v55 = vmul.f32 %v6623_v25, %v6750_v50 }
 0x718   :  { %v6167_v32 = vpop.eup %6166 }
 0x719   :  { %6172 = vrcp.f32 %v818_v31  ;;  %v816_v35 = vadd.f32 1.0, %v6167_v32 }
 0x71a   :  { %v6169_v36 = vpop.eup %6168 }
 0x71b   :  { %6174 = vrcp.f32 %v816_v35  ;;  %v819_v39 = vadd.f32 1.0, %v6169_v36 }
 0x71c   :  { %v6171_v41 = vpop.eup %6170 }
 0x71d   :  { %6176 = vrcp.f32 %v819_v39  ;;  %v817_v42 = vadd.f32 1.0, %v6171_v41  ;;  %v919_v39 = vmul.f32 %v6623_v25, %v6738_v52 }
 0x71f   :  { %6178 = vrcp.f32 %v817_v42 }
 0x726   :  { %v6766_v18 = vpop.eup %6172 }
 0x727   :  { %v846_v6 = vmul.f32 %v6766_v18, %v837_v4  ;;  %v886_v14 = vmul.f32 %v6766_v18, %v877_v37 }
 0x728   :  { %v6769_v59 = vpop.eup %6174 }
 0x729   :  { %v884_v62 = vmul.f32 %v6769_v59, %v873_v46  ;;  %v844_v47 = vmul.f32 %v6769_v59, %v833_v28  ;;  %v5465_v49 = vpack.c.bf16 %v846_v6, %v846_v6  ;;  %v5469_v26 = vpack.c.bf16 %v886_v14, %v886_v14 }
 0x72a   :  { %v6776_v54 = vpop.eup %6176 }
 0x72b   :  { %v5467_v61 = vpack.c.bf16 %v884_v62, %v884_v62  ;;  %v5463_v16 = vpack.c.bf16 %v844_v47, %v844_v47  ;;  %866 = vst.msk [vmem:[#allocation2 + $0x8] sm:$0xf] %vm257_vm1, %v5465_v49  ;;  %v847_v17 = vmul.f32 %v6776_v54, %v839_v56  ;;  %v887_v58 = vmul.f32 %v6776_v54, %v879_v33 }
 0x72c   :  { %v6781_v19 = vpop.eup %6178 }
 0x72d   :  { %900 = vrot.lane.b32.xlu1 %v5467_v61, %s6423_s25  ;;  %v885_v20 = vmul.f32 %v6781_v19, %v875_v34  ;;  %864 = vst.msk [vmem:[#allocation2] sm:$0xf] %vm257_vm1, %v5463_v16  ;;  %v845_v21 = vmul.f32 %v6781_v19, %v835_v9  ;;  %v5466_v22 = vpack.c.bf16 %v847_v17, %v847_v17 }
 0x72e   :  { %v5470_v29 = vpack.c.bf16 %v887_v58, %v887_v58  ;;  %v916_v34 = vmul.f32 %v6623_v25, %v6746_v48 }
 0x72f   :  { %v5468_v24 = vpack.c.bf16 %v885_v20, %v885_v20  ;;  %v5464_v10 = vpack.c.bf16 %v845_v21, %v845_v21  ;;  %867 = vst.msk [vmem:[#allocation2 + $0xc] sm:$0xf] %vm257_vm1, %v5466_v22 }
 0x731   :  { %902 = vrot.lane.b32.xlu0 %v5468_v24, %s6423_s25  ;;  %904 = vrot.lane.b32.xlu1 %v5469_v26, %s6423_s25  ;;  %865 = vst.msk [vmem:[#allocation2 + $0x4] sm:$0xf] %vm257_vm1, %v5464_v10 }
 0x735   :  { %906 = vrot.lane.b32.xlu0 %v5470_v29, %s6423_s25  ;;  %1101 = vperm.xlu1 %6024, %v6592_v1  }
 0x739   :  { %1106 = vperm.xlu0 %6025, %v6599_v7   ;;  %1096 = vperm.xlu1 %6024, %v6611_v13  }
 0x73d   :  { %1091 = vperm.xlu0 %6025, %v6604_v12  }
 0x79f   :  { %v901_v0 = vpop.permute.xlu1 %900 }
 0x7a0   :  { %912 = vst.msk [vmem:[#allocation2] sm:$0xf] %vm274_vm2, %v901_v0 }
 0x7a3   :  { %v903_v51 = vpop.permute.xlu0 %902  ;;  %v905_v63 = vpop.permute.xlu1 %904 }
 0x7a4   :  { %913 = vst.msk [vmem:[#allocation2 + $0x4] sm:$0xf] %vm274_vm2, %v903_v51  ;;  %914 = vst.msk [vmem:[#allocation2 + $0x8] sm:$0xf] %vm274_vm2, %v905_v63 }
 0x7a7   :  { %v907_v53 = vpop.permute.xlu0 %906  ;;  %v920_v57 = vld [vmem:[#allocation2] sm:$0xf] }
 0x7a8   :  { %915 = vst.msk [vmem:[#allocation2 + $0xc] sm:$0xf] %vm274_vm2, %v907_v53 }
 0x7ab   :  { %v921_v1 = vld [vmem:[#allocation2 + $0x4] sm:$0xf]  ;;  %v922_v7 = vld [vmem:[#allocation2 + $0x8] sm:$0xf] }
 0x7ac   :  { %v5189_v46 = vcombine.low %v920_v57, %v921_v1 }
 0x7ae   :  { %5779 = vmatprep.mubr.msk.bf16.mxu1 %vm333_vm3, %v5189_v46 }
 0x7af   :  { %v923_v13 = vld [vmem:[#allocation2 + $0xc] sm:$0xf] }
 0x7b0   :  { %v5190_v12 = vcombine.low %v922_v7, %v923_v13  ;;  %v1102_v17 = vpop.permute.xlu1 %1101 }
 0x7b2   :  { %5780 = vmatmul.mubr.msk.bf16.vlgmr.msra.gmra.mxu1 %vm333_vm3, %v5190_v12 }
 0x7b4   :  { %v1107_v16 = vpop.permute.xlu0 %1106  ;;  %v6827_v23 = vpop.permute.xlu1 %1096 }
 0x7b8   :  { %v1092_v24 = vpop.permute.xlu0 %1091 }
 0x872   :  { %v5781_v31 = vpop.f32.mrf.mxu1 }
 0x873   :  { %v1023_v32 = vadd.f32 %v5781_v31, %v918_v30 }
 0x874   :  { %v1006_v35 = vpop.f32.mrf.mxu1 }
 0x875   :  { %v1027_v36 = vadd.f32 %v6630_v27, %v1023_v32  ;;  %v1021_v37 = vadd.f32 %v1006_v35, %v916_v34 }
 0x876   :  { %v5782_v41 = vpop.f32.mrf.mxu1 }
 0x877   :  { %v1031_v42 = vmul.f32 -1.0, %v1027_v36  ;;  %v1025_v33 = vadd.f32 %v6630_v27, %v1021_v37  ;;  %v1024_v28 = vadd.f32 %v5782_v41, %v919_v39 }
 0x878   :  { %v1009_v43 = vpop.f32.mrf.mxu1 }
 0x879   :  { %v1037_v9 = vmul.f32 1.442695, %v1031_v42  ;;  %v1029_v44 = vmul.f32 -1.0, %v1025_v33  ;;  %v1028_v48 = vadd.f32 %v6630_v27, %v1024_v28  ;;  %v1022_v4 = vadd.f32 %v1009_v43, %v917_v55 }
 0x87b   :  { %6180 = vpow2.f32 %v1037_v9  ;;  %v1033_v6 = vmul.f32 1.442695, %v1029_v44  ;;  %v1032_v62 = vmul.f32 -1.0, %v1028_v48  ;;  %v1026_v47 = vadd.f32 %v6630_v27, %v1022_v4  ;;  %v6066_v27 = vld [vmem:[%s8158_s1] sm:$0xff]  }
 0x87c   :  { %5787 = vmatprep.mubr.msk.bf16.mxu0 %vm81_vm0, %v6066_v27  ;;  %5803 = vmatprep.mubr.msk.bf16.mxu1 %vm81_vm0, %v6066_v27 }
 0x87d   :  { %6182 = vpow2.f32 %v1033_v6  ;;  %v1039_v52 = vmul.f32 1.442695, %v1032_v62  ;;  %v1030_v49 = vmul.f32 -1.0, %v1026_v47 }
 0x87f   :  { %6184 = vpow2.f32 %v1039_v52  ;;  %v1035_v15 = vmul.f32 1.442695, %v1030_v49  ;;  %v1236_v49 = vsub.f32 1.0, %v6766_v18 }
 0x881   :  { %6186 = vpow2.f32 %v1035_v15 }
 0x888   :  { %v6181_v56 = vpop.eup %6180 }
 0x889   :  { %1049 = vrot.lane.b32.xlu1 %v6181_v56, %s6424_s14  ;;  %v1083_v14 = vmul.f32 %v6181_v56, %v1027_v36 }
 0x88a   :  { %v6183_v25 = vpop.eup %6182 }
 0x88b   :  { %1045 = vrot.lane.b32.xlu0 %v6183_v25, %s6424_s14  ;;  %v1081_v20 = vmul.f32 %v6183_v25, %v1025_v33  ;;  %v1087_v22 = vmul.f32 %v6181_v56, %v1083_v14  ;;  %v1262_v14 = vmul.f32 %v6769_v59, %v6716_v3  ;;  %v6426_v3 = vmov 2  }
 0x88c   :  { %v6185_v50 = vpop.eup %6184  ;;  %6026 = vset.pattern.permute.xlu0 %v6426_v3  ;;  %6027 = vset.pattern.permute.xlu1 %v6426_v3 }
 0x88d   :  { %1051 = vrot.lane.b32.xlu1 %v6185_v50, %s6424_s14  ;;  %v1084_v21 = vmul.f32 %v6185_v50, %v1028_v48  ;;  %v1085_v26 = vmul.f32 %v6183_v25, %v1081_v20  ;;  %v1111_v29 = vmul.f32 %v1102_v17, %v1087_v22  ;;  %v1237_v22 = vsub.f32 1.0, %v6776_v54 }
 0x88e   :  { %v6187_v61 = vpop.eup %6186 }
 0x88f   :  { %v1082_v58 = vmul.f32 %v6187_v61, %v1026_v47  ;;  %v1088_v10 = vmul.f32 %v6185_v50, %v1084_v21  ;;  %v1109_v63 = vmul.f32 %v1092_v24, %v1085_v26  ;;  %v5477_v7 = vpack.c.bf16 %v1111_v29, %v1111_v29 }
 0x890   :  { %v1234_v50 = vsub.f32 1.0, %v6769_v59 }
 0x891   :  { %1047 = vrot.lane.b32.xlu1 %v6187_v61, %s6424_s14  ;;  %v1112_v46 = vmul.f32 %v1107_v16, %v1088_v10  ;;  %v1086_v13 = vmul.f32 %v6187_v61, %v1082_v58  ;;  %v5475_v32 = vpack.c.bf16 %v1109_v63, %v1109_v63  ;;  %v6069_v63 = vld [vmem:[%s8159_s2] sm:$0xff]  }
 0x893   :  { %v5478_v35 = vpack.c.bf16 %v1112_v46, %v1112_v46 }
 0x8fb   :  { %v1050_v0 = vpop.permute.xlu1 %1049 }
 0x8fc   :  { %v1059_v51 = vmul.f32 %v1050_v0, %v1027_v36  ;;  %v1110_v36 = vmul.f32 %v6827_v23, %v1086_v13  ;;  %v1230_v13 = vmul.f32 %v6769_v59, %v6684_v38 }
 0x8fd   :  { %v1046_v53 = vpop.permute.xlu0 %1045 }
 0x8fe   :  { %v5473_v57 = vpack.c.bf16 %v1059_v51, %v1059_v51  ;;  %v1057_v1 = vmul.f32 %v1046_v53, %v1025_v33  ;;  %v5476_v42 = vpack.c.bf16 %v1110_v36, %v1110_v36 }
 0x8ff   :  { %v1052_v12 = vpop.permute.xlu1 %1051 }
 0x900   :  { %1079 = vst.msk [vmem:[#allocation2 + $0x8] sm:$0xf] %vm257_vm1, %v5473_v57  ;;  %v5471_v30 = vpack.c.bf16 %v1057_v1, %v1057_v1  ;;  %v1060_v31 = vmul.f32 %v1052_v12, %v1028_v48  ;;  %v6841_v48 = vld [vmem:[%s8158_s1 + $0x8] sm:$0xff]   ;;  %v1235_v1 = vsub.f32 1.0, %v6781_v19  ;;  %v1231_v12 = vmul.f32 %v6781_v19, %v6687_v40 }
 0x901   :  { %1131 = vst.msk [vmem:[#allocation2 + $0x8] sm:$0xf] %vm274_vm2, %v5477_v7 }
 0x902   :  { %1077 = vst.msk [vmem:[#allocation2] sm:$0xf] %vm257_vm1, %v5471_v30  ;;  %v5474_v34 = vpack.c.bf16 %v1060_v31, %v1060_v31 }
 0x903   :  { %1129 = vst.msk [vmem:[#allocation2] sm:$0xf] %vm274_vm2, %v5475_v32  ;;  %v1048_v37 = vpop.permute.xlu1 %1047 }
 0x904   :  { %1080 = vst.msk [vmem:[#allocation2 + $0xc] sm:$0xf] %vm257_vm1, %v5474_v34  ;;  %v1058_v39 = vmul.f32 %v1048_v37, %v1026_v47 }
 0x905   :  { %1132 = vst.msk [vmem:[#allocation2 + $0xc] sm:$0xf] %vm274_vm2, %v5478_v35  ;;  %v1232_v35 = vmul.f32 %v6766_v18, %v6693_v8  ;;  %v6894_v8 = vld [vmem:[%s8157_s0 + $0x10] sm:$0xff] }
 0x906   :  { %v5472_v41 = vpack.c.bf16 %v1058_v39, %v1058_v39  ;;  %v1233_v39 = vmul.f32 %v6776_v54, %v6696_v60  ;;  %v6903_v60 = vld [vmem:[%s8157_s0 + $0x8] sm:$0xff] }
 0x908   :  { %1078 = vst.msk [vmem:[#allocation2 + $0x4] sm:$0xf] %vm257_vm1, %v5472_v41  ;;  %v1139_v33 = vld [vmem:[#allocation2 + $0x8] sm:$0xf] }
 0x909   :  { %1130 = vst.msk [vmem:[#allocation2 + $0x4] sm:$0xf] %vm274_vm2, %v5476_v42 }
 0x90a   :  { %v1137_v43 = vld [vmem:[#allocation2] sm:$0xf] }
 0x90c   :  { %v1140_v28 = vld [vmem:[#allocation2 + $0xc] sm:$0xf] }
 0x90d   :  { %v5208_v55 = vcombine.low %v1139_v33, %v1140_v28  ;;  %v1263_v33 = vmul.f32 %v6781_v19, %v6706_v45  ;;  %v6917_v28 = vld [vmem:[%s8157_s0] sm:$0xff] }
 0x90f   :  { %5783 = vmatprep.subr.bf16.mxu0 %v5208_v55 }
 0x910   :  { %v1138_v9 = vld [vmem:[#allocation2 + $0x4] sm:$0xf]  ;;  %5784 = vmatpush3.bf16.msra.mxu0 %v5208_v55 }
 0x911   :  { %v5207_v44 = vcombine.low %v1137_v43, %v1138_v9 }
 0x913   :  { %5785 = vmatprep.subr.bf16.mxu0 %v5207_v44 }
 0x914   :  { %5786 = vmatpush3.bf16.msra.mxu0 %v5207_v44 }
 0x917   :  { %5788 = vmatmul.mubr.msk.bf16.vlgmr.msra.gmra.mxu0 %vm81_vm0, %v6841_v48 }
 0x9d7   :  { %v5789_v4 = vpop.f32.mrf.mxu0 }
 0x9d8   :  { %v1224_v6 = vmul.f32 %v5789_v4, %v1102_v17  ;;  %v1264_v17 = vmul.f32 %v6766_v18, %v6724_v5 }
 0x9d9   :  { %v1203_v62 = vpop.f32.mrf.mxu0 }
 0x9da   :  { %v1228_v47 = vmax.f32 %v1224_v6, 0.0  ;;  %6188 = vtanh.f32 %v1203_v62  ;;  %v1222_v52 = vmul.f32 %v1203_v62, %v1092_v24 }
 0x9db   :  { %v5790_v15 = vpop.f32.mrf.mxu0  ;;  %6190 = vtanh.f32 %v5789_v4  ;;  %v6949_v4 = vld [vmem:[%s8161_s4] ss:$0 sm:$0xff] }
 0x9dc   :  { %v1226_v56 = vmax.f32 %v1222_v52, 0.0  ;;  %v1225_v25 = vmul.f32 %v5790_v15, %v1107_v16  ;;  %v1268_v61 = vmul.f32 %v1236_v49, %v1228_v47  ;;  %v1265_v16 = vmul.f32 %v6776_v54, %v6713_v11  ;;  %v6068_v11 = vld [vmem:[%s8159_s2 + $0x8] sm:$0xff]   ;;  %v6908_v54 = vld [vmem:[%s8157_s0 + $0x18] sm:$0xff] }
 0x9dd   :  { %v1206_v27 = vpop.f32.mrf.mxu0  ;;  %5791 = vmatprep.subr.bf16.mxu0 %v6068_v11 }
 0x9de   :  { %v1229_v20 = vmax.f32 %v1225_v25, 0.0  ;;  %6192 = vtanh.f32 %v1206_v27  ;;  %v1266_v21 = vmul.f32 %v1234_v50, %v1226_v56  ;;  %v6852_v24 = vadd.f32 %v1268_v61, %v1264_v17  ;;  %5792 = vmatpush3.bf16.msra.mxu0 %v6068_v11 }
 0x9df   :  { %6194 = vtanh.f32 %v5790_v15  ;;  %5793 = vmatprep.subr.bf16.mxu0 %v6069_v63  ;;  %v1223_v37 = vmul.f32 %v1206_v27, %v6827_v23 }
 0x9e0   :  { %v1269_v26 = vmul.f32 %v1237_v22, %v1229_v20  ;;  %v6856_v58 = vadd.f32 %v1266_v21, %v1262_v14 }
 0x9e1   :  { %v1227_v18 = vmax.f32 %v1223_v37, 0.0 }
 0x9e2   :  { %v6858_v10 = vadd.f32 %v1269_v26, %v1265_v16  ;;  %5794 = vmatpush3.bf16.msra.mxu0 %v6069_v63  ;;  %v6968_v26 = vld [vmem:[%s8161_s4 + $0x1] ss:$0 sm:$0xff] }
 0x9e3   :  { %v1267_v42 = vmul.f32 %v1235_v1, %v1227_v18  ;;  %v6070_v18 = vld [vmem:[%s8160_s3 + $0x18] sm:$0xff]  }
 0x9e4   :  { %5807 = vmatprep.subr.bf16.mxu0 %v6070_v18 }
 0x9e5   :  { %v6919_v55 = vadd.f32 %v1267_v42, %v1263_v33  ;;  %v6071_v42 = vld [vmem:[%s8160_s3 + $0x10] sm:$0xff]  }
 0x9e7   :  { %v6189_v5 = vpop.eup %6188 }
 0x9e8   :  { %1242 = vrot.lane.b32.xlu0 %v6189_v5, %s6423_s25  ;;  %v6191_v29 = vpop.eup %6190 }
 0x9eb   :  { %v6193_v0 = vpop.eup %6192 }
 0x9ec   :  { %1246 = vrot.lane.b32.xlu0 %v6191_v29, %s6423_s25  ;;  %1244 = vrot.lane.b32.xlu1 %v6193_v0, %s6423_s25  ;;  %v6195_v51 = vpop.eup %6194 }
 0x9f0   :  { %1248 = vrot.lane.b32.xlu1 %v6195_v51, %s6423_s25 }
 0xa5a   :  { %v1243_v53 = vpop.permute.xlu0 %1242 }
 0xa5b   :  { %v1254_v57 = vmul.f32 %v1243_v53, %v1234_v50 }
 0xa5d   :  { %v6875_v31 = vadd.f32 %v1254_v57, %v1230_v13 }
 0xa5e   :  { %v1247_v46 = vpop.permute.xlu0 %1246  ;;  %v1245_v7 = vpop.permute.xlu1 %1244 }
 0xa5f   :  { %v1255_v30 = vmul.f32 %v1245_v7, %v1235_v1  ;;  %v1256_v32 = vmul.f32 %v1247_v46, %v1236_v49 }
 0xa61   :  { %v6877_v34 = vadd.f32 %v1255_v30, %v1231_v12  ;;  %v6886_v40 = vadd.f32 %v1256_v32, %v1232_v35 }
 0xa62   :  { %v1249_v36 = vpop.permute.xlu1 %1248 }
 0xa63   :  { %v1257_v41 = vmul.f32 %v1249_v36, %v1237_v22  ;;  %v1306_v38 = vpack.c.bf16 %v6877_v34, %v6875_v31 }
 0xa65   :  { %v6888_v59 = vadd.f32 %v1257_v41, %v1233_v39  ;;  %1314 = vrot.lane.b32.xlu0 %v1306_v38, %s6424_s14 }
 0xa67   :  { %v1307_v23 = vpack.c.bf16 %v6888_v59, %v6886_v40 }
 0xa69   :  { %1294 = vperm.xlu0 %6026, %v6894_v8   ;;  %1316 = vrot.lane.b32.xlu1 %v1307_v23, %s6424_s14 }
 0xa6d   :  { %1289 = vperm.xlu0 %6026, %v6903_v60   ;;  %1299 = vperm.xlu1 %6027, %v6908_v54  }
 0xa71   :  { %1510 = vrot.lane.b32.xlu0 %v6919_v55, %s6424_s14  ;;  %1284 = vperm.xlu1 %6027, %v6917_v28  }
 0xa72   :  { %6029 = vset.pattern.permute.xlu0 %v6422_v2 }
 0xa75   :  { %1514 = vrot.lane.b32.xlu0 %v6858_v10, %s6424_s14  ;;  %1508 = vrot.lane.b32.xlu1 %v6856_v58, %s6424_s14 }
 0xa76   :  { %6028 = vset.pattern.permute.xlu1 %v6422_v2 }
 0xa79   :  { %1470 = vrot.lane.b32.xlu0 %v6877_v34, %s6424_s14  ;;  %1512 = vrot.lane.b32.xlu1 %v6852_v24, %s6424_s14 }
 0xa7d   :  { %1474 = vrot.lane.b32.xlu0 %v6888_v59, %s6424_s14  ;;  %1468 = vrot.lane.b32.xlu1 %v6875_v31, %s6424_s14 }
 0xa81   :  { %1472 = vrot.lane.b32.xlu1 %v6886_v40, %s6424_s14 }
 0xad7   :  { %v1315_v45 = vpop.permute.xlu0 %1314 }
 0xad8   :  { %5795 = vmatprep.mubr.msk.bf16.mxu0 %vm81_vm0, %v1315_v45 }
 0xadb   :  { %v1317_v19 = vpop.permute.xlu1 %1316 }
 0xadc   :  { %5796 = vmatmul.mubr.msk.bf16.vlgmr.msra.gmra.mxu0 %vm81_vm0, %v1317_v19 }
 0xadd   :  { %5808 = vmatpush3.bf16.msra.mxu0 %v6070_v18 }
 0xade   :  { %5809 = vmatprep.subr.bf16.mxu0 %v6071_v42 }
 0xae1   :  { %5810 = vmatpush3.bf16.msra.mxu0 %v6071_v42  ;;  %v7052_v42 = vld [vmem:[%s8161_s4 + $0x3] ss:$0 sm:$0xff] }
 0xae4   :  { %v6944_v9 = vpop.permute.xlu0 %1294 }
 0xae5   :  { %v1304_v6 = vmul.f32 %v6949_v4, %v6944_v9 }
 0xae8   :  { %v6942_v43 = vpop.permute.xlu1 %1299  ;;  %v6959_v15 = vpop.permute.xlu0 %1289 }
 0xae9   :  { %v1305_v62 = vmul.f32 %v6949_v4, %v6942_v43  ;;  %v1303_v61 = vmul.f32 %v6949_v4, %v6959_v15 }
 0xaec   :  { %v6955_v47 = vpop.permute.xlu1 %1284  ;;  %v1511_v12 = vpop.permute.xlu0 %1510 }
 0xaed   :  { %v1302_v49 = vmul.f32 %v6949_v4, %v6955_v47 }
 0xaf0   :  { %v1509_v1 = vpop.permute.xlu1 %1508  ;;  %v1515_v41 = vpop.permute.xlu0 %1514 }
 0xaf4   :  { %v1513_v35 = vpop.permute.xlu1 %1512  ;;  %v1471_v23 = vpop.permute.xlu0 %1470 }
 0xaf8   :  { %v1469_v38 = vpop.permute.xlu1 %1468 }
 0xafc   :  { %v1473_v45 = vpop.permute.xlu1 %1472 }
 0xb9c   :  { %v5797_v44 = vpop.f32.mrf.mxu0 }
 0xb9d   :  { %v1387_v25 = vadd.f32 %v5797_v44, %v1304_v6 }
 0xb9e   :  { %v1370_v52 = vpop.f32.mrf.mxu0 }
 0xb9f   :  { %v1385_v14 = vadd.f32 %v1370_v52, %v1302_v49  ;;  %v6072_v49 = vld [vmem:[%s8160_s3 + $0x8] sm:$0xff]  }
 0xba0   :  { %v5798_v56 = vpop.f32.mrf.mxu0  ;;  %5811 = vmatprep.subr.bf16.mxu0 %v6072_v49 }
 0xba1   :  { %v1388_v50 = vadd.f32 %v5798_v56, %v1305_v62  ;;  %5812 = vmatpush3.bf16.msra.mxu0 %v6072_v49 }
 0xba2   :  { %v1373_v27 = vpop.f32.mrf.mxu0 }
 0xba3   :  { %v1390_v17 = vpack.c.bf16 %v1388_v50, %v1387_v25  ;;  %v1386_v20 = vadd.f32 %v1373_v27, %v1303_v61  ;;  %v1475_v25 = vpop.permute.xlu0 %1474 }
 0xba5   :  { %v1389_v21 = vpack.c.bf16 %v1386_v20, %v1385_v14  ;;  %5799 = vmatprep.subr.bf16.mxu1 %v1390_v17 }
 0xba6   :  { %5800 = vmatpush3.bf16.msra.mxu1 %v1390_v17 }
 0xba7   :  { %5801 = vmatprep.subr.bf16.mxu1 %v1389_v21 }
 0xbaa   :  { %5802 = vmatpush3.bf16.msra.mxu1 %v1389_v21 }
 0xbad   :  { %5804 = vmatmul.mubr.msk.bf16.vlgmr.msra.gmra.mxu1 %vm81_vm0, %v6841_v48 }
 0xc6d   :  { %v5805_v22 = vpop.f32.mrf.mxu1 }
 0xc6e   :  { %v1434_v16 = vadd.f32 %v6968_v26, %v5805_v22 }
 0xc6f   :  { %v1425_v3 = vpop.f32.mrf.mxu1 }
 0xc70   :  { %v5219_v5 = vmul.f32 -1.442695, %v1434_v16  ;;  %v1426_v29 = vadd.f32 %v6968_v26, %v1425_v3  ;;  %v6073_v16 = vld [vmem:[%s8160_s3] sm:$0xff]  }
 0xc71   :  { %v5806_v0 = vpop.f32.mrf.mxu1  ;;  %5813 = vmatprep.subr.bf16.mxu0 %v6073_v16 }
 0xc72   :  { %6196 = vpow2.f32 %v5219_v5  ;;  %v5217_v51 = vmul.f32 -1.442695, %v1426_v29  ;;  %v1437_v11 = vadd.f32 %v6968_v26, %v5806_v0  ;;  %5814 = vmatpush3.bf16.msra.mxu0 %v6073_v16 }
 0xc73   :  { %v1428_v63 = vpop.f32.mrf.mxu1 }
 0xc74   :  { %6198 = vpow2.f32 %v5217_v51  ;;  %v5220_v48 = vmul.f32 -1.442695, %v1437_v11  ;;  %v1429_v53 = vadd.f32 %v6968_v26, %v1428_v63  ;;  %v7012_v51 = vld [vmem:[%s8162_s5 + $0x10] sm:$0xff]  ;;  %v7019_v63 = vld [vmem:[%s8162_s5 + $0x18] sm:$0xff] }
 0xc76   :  { %6200 = vpow2.f32 %v5220_v48  ;;  %v5218_v57 = vmul.f32 -1.442695, %v1429_v53  ;;  %v7024_v48 = vld [vmem:[%s8162_s5 + $0x8] sm:$0xff]  ;;  %v7031_v53 = vld [vmem:[%s8162_s5] sm:$0xff] }
 0xc78   :  { %6202 = vpow2.f32 %v5218_v57 }
 0xc7f   :  { %v6197_v46 = vpop.eup %6196 }
 0xc80   :  { %v1454_v7 = vadd.f32 1.0, %v6197_v46 }
 0xc81   :  { %v6199_v13 = vpop.eup %6198 }
 0xc82   :  { %6204 = vrcp.f32 %v1454_v7  ;;  %v1452_v30 = vadd.f32 1.0, %v6199_v13 }
 0xc83   :  { %v6201_v32 = vpop.eup %6200 }
 0xc84   :  { %6206 = vrcp.f32 %v1452_v30  ;;  %v1455_v36 = vadd.f32 1.0, %v6201_v32 }
 0xc85   :  { %v6203_v37 = vpop.eup %6202 }
 0xc86   :  { %6208 = vrcp.f32 %v1455_v36  ;;  %v1453_v39 = vadd.f32 1.0, %v6203_v37  ;;  %v7043_v37 = vld [vmem:[%s8161_s4 + $0x2] ss:$0 sm:$0xff] }
 0xc87   :  { %v1552_v18 = vmul.f32 %v7043_v37, %v6955_v47  ;;  %v1553_v47 = vmul.f32 %v7043_v37, %v6959_v15 }
 0xc88   :  { %6210 = vrcp.f32 %v1453_v39  ;;  %v1554_v39 = vmul.f32 %v7043_v37, %v6944_v9 }
 0xc8f   :  { %v6980_v33 = vpop.eup %6204 }
 0xc90   :  { %v1482_v19 = vmul.f32 %v6980_v33, %v1473_v45  ;;  %v1522_v61 = vmul.f32 %v6980_v33, %v1513_v35 }
 0xc91   :  { %v6983_v44 = vpop.eup %6206 }
 0xc92   :  { %v1520_v6 = vmul.f32 %v6983_v44, %v1509_v1  ;;  %v1480_v62 = vmul.f32 %v6983_v44, %v1469_v38  ;;  %v5481_v52 = vpack.c.bf16 %v1482_v19, %v1482_v19  ;;  %v5485_v5 = vpack.c.bf16 %v1522_v61, %v1522_v61 }
 0xc93   :  { %v6990_v56 = vpop.eup %6208 }
 0xc94   :  { %v5483_v50 = vpack.c.bf16 %v1520_v6, %v1520_v6  ;;  %v5479_v27 = vpack.c.bf16 %v1480_v62, %v1480_v62  ;;  %1502 = vst.msk [vmem:[#allocation2 + $0x8] sm:$0xf] %vm257_vm1, %v5481_v52  ;;  %v1483_v14 = vmul.f32 %v6990_v56, %v1475_v25  ;;  %v1523_v29 = vmul.f32 %v6990_v56, %v1515_v41 }
 0xc95   :  { %v6995_v17 = vpop.eup %6210  ;;  %v1555_v6 = vmul.f32 %v7043_v37, %v6942_v43 }
 0xc96   :  { %1536 = vrot.lane.b32.xlu1 %v5483_v50, %s6423_s25  ;;  %v1521_v20 = vmul.f32 %v6995_v17, %v1511_v12  ;;  %1500 = vst.msk [vmem:[#allocation2] sm:$0xf] %vm257_vm1, %v5479_v27  ;;  %v1481_v21 = vmul.f32 %v6995_v17, %v1471_v23  ;;  %v5482_v22 = vpack.c.bf16 %v1483_v14, %v1483_v14 }
 0xc97   :  { %v5486_v11 = vpack.c.bf16 %v1523_v29, %v1523_v29 }
 0xc98   :  { %v5484_v3 = vpack.c.bf16 %v1521_v20, %v1521_v20  ;;  %v5480_v0 = vpack.c.bf16 %v1481_v21, %v1481_v21  ;;  %1503 = vst.msk [vmem:[#allocation2 + $0xc] sm:$0xf] %vm257_vm1, %v5482_v22 }
 0xc9a   :  { %1538 = vrot.lane.b32.xlu0 %v5484_v3, %s6423_s25  ;;  %1540 = vrot.lane.b32.xlu1 %v5485_v5, %s6423_s25  ;;  %1501 = vst.msk [vmem:[#allocation2 + $0x4] sm:$0xf] %vm257_vm1, %v5480_v0 }
 0xc9e   :  { %1542 = vrot.lane.b32.xlu0 %v5486_v11, %s6423_s25  ;;  %1737 = vperm.xlu1 %6028, %v7012_v51   ;;  %v6074_v11 = vld [vmem:[%s8158_s1] sm:$0xff]  }
 0xc9f   :  { %5823 = vmatprep.mubr.msk.bf16.mxu1 %vm81_vm0, %v6074_v11 }
 0xca2   :  { %1742 = vperm.xlu0 %6029, %v7019_v63   ;;  %1732 = vperm.xlu1 %6028, %v7024_v48  }
 0xca6   :  { %1727 = vperm.xlu0 %6029, %v7031_v53  }
 0xd08   :  { %v1537_v57 = vpop.permute.xlu1 %1536 }
 0xd09   :  { %1548 = vst.msk [vmem:[#allocation2] sm:$0xf] %vm274_vm2, %v1537_v57 }
 0xd0c   :  { %v1539_v1 = vpop.permute.xlu0 %1538  ;;  %v1541_v46 = vpop.permute.xlu1 %1540 }
 0xd0d   :  { %1549 = vst.msk [vmem:[#allocation2 + $0x4] sm:$0xf] %vm274_vm2, %v1539_v1  ;;  %1550 = vst.msk [vmem:[#allocation2 + $0x8] sm:$0xf] %vm274_vm2, %v1541_v46 }
 0xd10   :  { %v1543_v7 = vpop.permute.xlu0 %1542  ;;  %v1556_v13 = vld [vmem:[#allocation2] sm:$0xf] }
 0xd11   :  { %1551 = vst.msk [vmem:[#allocation2 + $0xc] sm:$0xf] %vm274_vm2, %v1543_v7 }
 0xd14   :  { %v1557_v12 = vld [vmem:[#allocation2 + $0x4] sm:$0xf]  ;;  %v1558_v32 = vld [vmem:[#allocation2 + $0x8] sm:$0xf] }
 0xd15   :  { %v5229_v30 = vcombine.low %v1556_v13, %v1557_v12 }
 0xd17   :  { %5815 = vmatprep.mubr.msk.bf16.mxu0 %vm333_vm3, %v5229_v30 }
 0xd18   :  { %v1559_v35 = vld [vmem:[#allocation2 + $0xc] sm:$0xf] }
 0xd19   :  { %v5230_v36 = vcombine.low %v1558_v32, %v1559_v35  ;;  %v1738_v46 = vpop.permute.xlu1 %1737 }
 0xd1b   :  { %5816 = vmatmul.mubr.msk.bf16.vlgmr.msra.gmra.mxu0 %vm333_vm3, %v5230_v36 }
 0xd1c   :  { %5839 = vmatprep.mubr.msk.bf16.mxu0 %vm81_vm0, %v6074_v11 }
 0xd1d   :  { %v1743_v1 = vpop.permute.xlu0 %1742  ;;  %v7071_v30 = vpop.permute.xlu1 %1732 }
 0xd21   :  { %v1728_v32 = vpop.permute.xlu0 %1727 }
 0xddb   :  { %v5817_v41 = vpop.f32.mrf.mxu0 }
 0xddc   :  { %v1659_v38 = vadd.f32 %v5817_v41, %v1554_v39 }
 0xddd   :  { %v1642_v23 = vpop.f32.mrf.mxu0 }
 0xdde   :  { %v1663_v45 = vadd.f32 %v7052_v42, %v1659_v38  ;;  %v1657_v19 = vadd.f32 %v1642_v23, %v1552_v18 }
 0xddf   :  { %v5818_v62 = vpop.f32.mrf.mxu0 }
 0xde0   :  { %v1667_v52 = vmul.f32 -1.0, %v1663_v45  ;;  %v1661_v9 = vadd.f32 %v7052_v42, %v1657_v19  ;;  %v1660_v49 = vadd.f32 %v5818_v62, %v1555_v6 }
 0xde1   :  { %v1645_v25 = vpop.f32.mrf.mxu0 }
 0xde2   :  { %v1673_v50 = vmul.f32 1.442695, %v1667_v52  ;;  %v1665_v61 = vmul.f32 -1.0, %v1661_v9  ;;  %v1664_v27 = vadd.f32 %v7052_v42, %v1660_v49  ;;  %v1658_v14 = vadd.f32 %v1645_v25, %v1553_v47 }
 0xde4   :  { %6212 = vpow2.f32 %v1673_v50  ;;  %v1669_v20 = vmul.f32 1.442695, %v1665_v61  ;;  %v1668_v21 = vmul.f32 -1.0, %v1664_v27  ;;  %v1662_v22 = vadd.f32 %v7052_v42, %v1658_v14 }
 0xde6   :  { %6214 = vpow2.f32 %v1669_v20  ;;  %v1675_v43 = vmul.f32 1.442695, %v1668_v21  ;;  %v1666_v16 = vmul.f32 -1.0, %v1662_v22 }
 0xde8   :  { %6216 = vpow2.f32 %v1675_v43  ;;  %v1671_v3 = vmul.f32 1.442695, %v1666_v16 }
 0xdea   :  { %6218 = vpow2.f32 %v1671_v3 }
 0xdf1   :  { %v6213_v5 = vpop.eup %6212 }
 0xdf2   :  { %1685 = vrot.lane.b32.xlu1 %v6213_v5, %s6424_s14  ;;  %v1719_v57 = vmul.f32 %v6213_v5, %v1663_v45 }
 0xdf3   :  { %v6215_v15 = vpop.eup %6214 }
 0xdf4   :  { %1681 = vrot.lane.b32.xlu0 %v6215_v15, %s6424_s14  ;;  %v1717_v7 = vmul.f32 %v6215_v15, %v1661_v9  ;;  %v1723_v12 = vmul.f32 %v6213_v5, %v1719_v57 }
 0xdf5   :  { %v6217_v29 = vpop.eup %6216 }
 0xdf6   :  { %1687 = vrot.lane.b32.xlu1 %v6217_v29, %s6424_s14  ;;  %v1720_v13 = vmul.f32 %v6217_v29, %v1664_v27  ;;  %v1721_v35 = vmul.f32 %v6215_v15, %v1717_v7  ;;  %v1747_v41 = vmul.f32 %v1738_v46, %v1723_v12 }
 0xdf7   :  { %v6219_v0 = vpop.eup %6218 }
 0xdf8   :  { %v1718_v36 = vmul.f32 %v6219_v0, %v1662_v22  ;;  %v1724_v39 = vmul.f32 %v6217_v29, %v1720_v13  ;;  %v1745_v23 = vmul.f32 %v1728_v32, %v1721_v35  ;;  %v5493_v49 = vpack.c.bf16 %v1747_v41, %v1747_v41 }
 0xdfa   :  { %1683 = vrot.lane.b32.xlu1 %v6219_v0, %s6424_s14  ;;  %v1748_v52 = vmul.f32 %v1743_v1, %v1724_v39  ;;  %v1722_v47 = vmul.f32 %v6219_v0, %v1718_v36  ;;  %v5491_v14 = vpack.c.bf16 %v1745_v23, %v1745_v23  ;;  %v1872_v36 = vsub.f32 1.0, %v6980_v33 }
 0xdfc   :  { %v5494_v21 = vpack.c.bf16 %v1748_v52, %v1748_v52 }
 0xe64   :  { %v1686_v38 = vpop.permute.xlu1 %1685 }
 0xe65   :  { %v1695_v18 = vmul.f32 %v1686_v38, %v1663_v45  ;;  %v1746_v45 = vmul.f32 %v7071_v30, %v1722_v47 }
 0xe66   :  { %v1682_v19 = vpop.permute.xlu0 %1681 }
 0xe67   :  { %v5489_v6 = vpack.c.bf16 %v1695_v18, %v1695_v18  ;;  %v1693_v62 = vmul.f32 %v1682_v19, %v1661_v9  ;;  %v5492_v3 = vpack.c.bf16 %v1746_v45, %v1746_v45  ;;  %v1870_v18 = vsub.f32 1.0, %v6983_v44 }
 0xe68   :  { %v1688_v25 = vpop.permute.xlu1 %1687 }
 0xe69   :  { %1715 = vst.msk [vmem:[#allocation2 + $0x8] sm:$0xf] %vm257_vm1, %v5489_v6  ;;  %v5487_v50 = vpack.c.bf16 %v1693_v62, %v1693_v62  ;;  %v1696_v61 = vmul.f32 %v1688_v25, %v1664_v27  ;;  %v1898_v6 = vmul.f32 %v6983_v44, %v6856_v58  ;;  %v6427_v58 = vmov 3  }
 0xe6a   :  { %1767 = vst.msk [vmem:[#allocation2 + $0x8] sm:$0xf] %vm274_vm2, %v5493_v49  ;;  %6030 = vset.pattern.permute.xlu0 %v6427_v58  ;;  %6031 = vset.pattern.permute.xlu1 %v6427_v58 }
 0xe6b   :  { %1713 = vst.msk [vmem:[#allocation2] sm:$0xf] %vm257_vm1, %v5487_v50  ;;  %v5490_v20 = vpack.c.bf16 %v1696_v61, %v1696_v61 }
 0xe6c   :  { %1765 = vst.msk [vmem:[#allocation2] sm:$0xf] %vm274_vm2, %v5491_v14  ;;  %v1684_v9 = vpop.permute.xlu1 %1683 }
 0xe6d   :  { %1716 = vst.msk [vmem:[#allocation2 + $0xc] sm:$0xf] %vm257_vm1, %v5490_v20  ;;  %v1694_v43 = vmul.f32 %v1684_v9, %v1662_v22  ;;  %v7085_v22 = vld [vmem:[%s8158_s1 + $0x8] sm:$0xff]  }
 0xe6e   :  { %1768 = vst.msk [vmem:[#allocation2 + $0xc] sm:$0xf] %vm274_vm2, %v5494_v21  ;;  %v6077_v21 = vld [vmem:[%s8159_s2] sm:$0xff]  }
 0xe6f   :  { %v5488_v16 = vpack.c.bf16 %v1694_v43, %v1694_v43  ;;  %v1871_v43 = vsub.f32 1.0, %v6995_v17 }
 0xe71   :  { %1714 = vst.msk [vmem:[#allocation2 + $0x4] sm:$0xf] %vm257_vm1, %v5488_v16  ;;  %v1775_v27 = vld [vmem:[#allocation2 + $0x8] sm:$0xf] }
 0xe72   :  { %1766 = vst.msk [vmem:[#allocation2 + $0x4] sm:$0xf] %vm274_vm2, %v5492_v3 }
 0xe73   :  { %v1773_v29 = vld [vmem:[#allocation2] sm:$0xf] }
 0xe75   :  { %v1776_v5 = vld [vmem:[#allocation2 + $0xc] sm:$0xf] }
 0xe76   :  { %v5248_v15 = vcombine.low %v1775_v27, %v1776_v5  ;;  %v1866_v27 = vmul.f32 %v6983_v44, %v6875_v31  ;;  %v1867_v5 = vmul.f32 %v6995_v17, %v6877_v34 }
 0xe78   :  { %5819 = vmatprep.subr.bf16.mxu1 %v5248_v15 }
 0xe79   :  { %v1774_v0 = vld [vmem:[#allocation2 + $0x4] sm:$0xf]  ;;  %5820 = vmatpush3.bf16.msra.mxu1 %v5248_v15 }
 0xe7a   :  { %v5247_v11 = vcombine.low %v1773_v29, %v1774_v0 }
 0xe7c   :  { %5821 = vmatprep.subr.bf16.mxu1 %v5247_v11 }
 0xe7d   :  { %5822 = vmatpush3.bf16.msra.mxu1 %v5247_v11 }
 0xe80   :  { %5824 = vmatmul.mubr.msk.bf16.vlgmr.msra.gmra.mxu1 %vm81_vm0, %v7085_v22 }
 0xf40   :  { %v5825_v57 = vpop.f32.mrf.mxu1 }
 0xf41   :  { %v1860_v7 = vmul.f32 %v5825_v57, %v1738_v46  ;;  %v1900_v46 = vmul.f32 %v6980_v33, %v6852_v24 }
 0xf42   :  { %v1839_v13 = vpop.f32.mrf.mxu1 }
 0xf43   :  { %v1864_v12 = vmax.f32 %v1860_v7, 0.0  ;;  %6220 = vtanh.f32 %v1839_v13  ;;  %v1858_v35 = vmul.f32 %v1839_v13, %v1728_v32  ;;  %v1873_v32 = vsub.f32 1.0, %v6990_v56 }
 0xf44   :  { %v5826_v39 = vpop.f32.mrf.mxu1  ;;  %6222 = vtanh.f32 %v5825_v57  ;;  %v1868_v57 = vmul.f32 %v6980_v33, %v6886_v40 }
 0xf45   :  { %v1862_v41 = vmax.f32 %v1858_v35, 0.0  ;;  %v1861_v38 = vmul.f32 %v5826_v39, %v1743_v1  ;;  %v1904_v23 = vmul.f32 %v1872_v36, %v1864_v12  ;;  %v1901_v1 = vmul.f32 %v6990_v56, %v6858_v10  ;;  %v6076_v10 = vld [vmem:[%s8159_s2 + $0x8] sm:$0xff]  }
 0xf46   :  { %v1842_v19 = vpop.f32.mrf.mxu1  ;;  %5827 = vmatprep.subr.bf16.mxu1 %v6076_v10  ;;  %v1869_v12 = vmul.f32 %v6990_v56, %v6888_v59  ;;  %v1899_v59 = vmul.f32 %v6995_v17, %v6919_v55 }
 0xf47   :  { %v1865_v62 = vmax.f32 %v1861_v38, 0.0  ;;  %6224 = vtanh.f32 %v1842_v19  ;;  %v1902_v52 = vmul.f32 %v1870_v18, %v1862_v41  ;;  %v7096_v49 = vadd.f32 %v1904_v23, %v1900_v46  ;;  %5828 = vmatpush3.bf16.msra.mxu1 %v6076_v10 }
 0xf48   :  { %6226 = vtanh.f32 %v5826_v39  ;;  %5829 = vmatprep.subr.bf16.mxu1 %v6077_v21  ;;  %v1859_v13 = vmul.f32 %v1842_v19, %v7071_v30 }
 0xf49   :  { %v1905_v47 = vmul.f32 %v1873_v32, %v1865_v62  ;;  %v7100_v25 = vadd.f32 %v1902_v52, %v1898_v6 }
 0xf4b   :  { %v7102_v50 = vadd.f32 %v1905_v47, %v1901_v1  ;;  %5830 = vmatpush3.bf16.msra.mxu1 %v6077_v21 }
 0xf50   :  { %v6221_v24 = vpop.eup %6220 }
 0xf51   :  { %1878 = vrot.lane.b32.xlu0 %v6221_v24, %s6423_s25  ;;  %v6223_v61 = vpop.eup %6222 }
 0xf54   :  { %v6225_v14 = vpop.eup %6224 }
 0xf55   :  { %1882 = vrot.lane.b32.xlu0 %v6223_v61, %s6423_s25  ;;  %1880 = vrot.lane.b32.xlu1 %v6225_v14, %s6423_s25  ;;  %v6227_v20 = vpop.eup %6226 }
 0xf59   :  { %1884 = vrot.lane.b32.xlu1 %v6227_v20, %s6423_s25 }
 0xfc3   :  { %v1879_v45 = vpop.permute.xlu0 %1878 }
 0xfc4   :  { %v1890_v9 = vmul.f32 %v1879_v45, %v1870_v18 }
 0xfc6   :  { %v7119_v29 = vadd.f32 %v1890_v9, %v1866_v27 }
 0xfc7   :  { %v1883_v16 = vpop.permute.xlu0 %1882  ;;  %v1881_v3 = vpop.permute.xlu1 %1880 }
 0xfc8   :  { %v1891_v15 = vmul.f32 %v1881_v3, %v1871_v43  ;;  %v1892_v0 = vmul.f32 %v1883_v16, %v1872_v36  ;;  %v1863_v36 = vmax.f32 %v1859_v13, 0.0 }
 0xfca   :  { %v7121_v11 = vadd.f32 %v1891_v15, %v1867_v5  ;;  %v7130_v34 = vadd.f32 %v1892_v0, %v1868_v57  ;;  %v1903_v33 = vmul.f32 %v1871_v43, %v1863_v36  ;;  %v6078_v36 = vld [vmem:[%s8160_s3 + $0x18] sm:$0xff]  }
 0xfcb   :  { %v1885_v7 = vpop.permute.xlu1 %1884  ;;  %5843 = vmatprep.subr.bf16.mxu1 %v6078_v36 }
 0xfcc   :  { %v1893_v35 = vmul.f32 %v1885_v7, %v1873_v32  ;;  %v1942_v31 = vpack.c.bf16 %v7121_v11, %v7119_v29  ;;  %v7143_v56 = vadd.f32 %v1903_v33, %v1899_v59  ;;  %v6079_v33 = vld [vmem:[%s8160_s3 + $0x10] sm:$0xff]  }
 0xfce   :  { %v7132_v44 = vadd.f32 %v1893_v35, %v1869_v12  ;;  %1950 = vrot.lane.b32.xlu0 %v1942_v31, %s6424_s14 }
 0xfd0   :  { %v1943_v40 = vpack.c.bf16 %v7132_v44, %v7130_v34 }
 0xfd2   :  { %1930 = vperm.xlu0 %6030, %v6894_v8   ;;  %1952 = vrot.lane.b32.xlu1 %v1943_v40, %s6424_s14 }
 0xfd6   :  { %1925 = vperm.xlu0 %6030, %v6903_v60   ;;  %1935 = vperm.xlu1 %6031, %v6908_v54  }
 0xfda   :  { %2146 = vrot.lane.b32.xlu0 %v7143_v56, %s6424_s14  ;;  %1920 = vperm.xlu1 %6031, %v6917_v28  }
 0xfdb   :  { %6033 = vset.pattern.permute.xlu0 %v6422_v2 }
 0xfde   :  { %2150 = vrot.lane.b32.xlu0 %v7102_v50, %s6424_s14  ;;  %2144 = vrot.lane.b32.xlu1 %v7100_v25, %s6424_s14 }
 0xfdf   :  { %6032 = vset.pattern.permute.xlu1 %v6422_v2 }
 0xfe2   :  { %2106 = vrot.lane.b32.xlu0 %v7121_v11, %s6424_s14  ;;  %2148 = vrot.lane.b32.xlu1 %v7096_v49, %s6424_s14 }
 0xfe6   :  { %2110 = vrot.lane.b32.xlu0 %v7132_v44, %s6424_s14  ;;  %2104 = vrot.lane.b32.xlu1 %v7119_v29, %s6424_s14 }
 0xfea   :  { %2108 = vrot.lane.b32.xlu1 %v7130_v34, %s6424_s14 }
0x1040   :  { %v1951_v8 = vpop.permute.xlu0 %1950 }
0x1041   :  { %5831 = vmatprep.mubr.msk.bf16.mxu1 %vm81_vm0, %v1951_v8 }
0x1044   :  { %v1953_v60 = vpop.permute.xlu1 %1952 }
0x1045   :  { %5832 = vmatmul.mubr.msk.bf16.vlgmr.msra.gmra.mxu1 %vm81_vm0, %v1953_v60 }
0x1046   :  { %5844 = vmatpush3.bf16.msra.mxu1 %v6078_v36 }
0x1047   :  { %5845 = vmatprep.subr.bf16.mxu1 %v6079_v33 }
0x104a   :  { %5846 = vmatpush3.bf16.msra.mxu1 %v6079_v33 }
0x104d   :  { %v7168_v28 = vpop.permute.xlu0 %1930 }
0x104e   :  { %v1940_v17 = vmul.f32 %v6949_v4, %v7168_v28 }
0x1051   :  { %v7166_v54 = vpop.permute.xlu1 %1935  ;;  %v7178_v18 = vpop.permute.xlu0 %1925 }
0x1052   :  { %v1941_v30 = vmul.f32 %v6949_v4, %v7166_v54  ;;  %v1939_v46 = vmul.f32 %v6949_v4, %v7178_v18 }
0x1055   :  { %v7174_v39 = vpop.permute.xlu1 %1920  ;;  %v2147_v15 = vpop.permute.xlu0 %2146 }
0x1056   :  { %v1938_v38 = vmul.f32 %v6949_v4, %v7174_v39 }
0x1059   :  { %v2151_v31 = vpop.permute.xlu0 %2150 }
0x105d   :  { %v2107_v40 = vpop.permute.xlu0 %2106 }
0x1105   :  { %v5833_v55 = vpop.f32.mrf.mxu1 }
0x1106   :  { %v2023_v19 = vadd.f32 %v5833_v55, %v1940_v17 }
0x1107   :  { %v2006_v41 = vpop.f32.mrf.mxu1 }
0x1108   :  { %v2021_v52 = vadd.f32 %v2006_v41, %v1938_v38  ;;  %v6080_v38 = vld [vmem:[%s8160_s3 + $0x8] sm:$0xff]  }
0x1109   :  { %v5834_v23 = vpop.f32.mrf.mxu1  ;;  %5847 = vmatprep.subr.bf16.mxu1 %v6080_v38 }
0x110a   :  { %v2024_v6 = vadd.f32 %v5834_v23, %v1941_v30  ;;  %5848 = vmatpush3.bf16.msra.mxu1 %v6080_v38 }
0x110b   :  { %v2009_v62 = vpop.f32.mrf.mxu1 }
0x110c   :  { %v2026_v32 = vpack.c.bf16 %v2024_v6, %v2023_v19  ;;  %v2022_v47 = vadd.f32 %v2009_v62, %v1939_v46  ;;  %v2111_v19 = vpop.permute.xlu0 %2110 }
0x110e   :  { %v2025_v1 = vpack.c.bf16 %v2022_v47, %v2021_v52  ;;  %5835 = vmatprep.subr.bf16.mxu0 %v2026_v32 }
0x110f   :  { %5836 = vmatpush3.bf16.msra.mxu0 %v2026_v32 }
0x1110   :  { %5837 = vmatprep.subr.bf16.mxu0 %v2025_v1 }
0x1113   :  { %5838 = vmatpush3.bf16.msra.mxu0 %v2025_v1 }
0x1116   :  { %5840 = vmatmul.mubr.msk.bf16.vlgmr.msra.gmra.mxu0 %vm81_vm0, %v7085_v22  ;;  %v2145_v22 = vpop.permute.xlu1 %2144 }
0x111a   :  { %v2149_v7 = vpop.permute.xlu1 %2148 }
0x11d6   :  { %v5841_v58 = vpop.f32.mrf.mxu0 }
0x11d7   :  { %v2070_v24 = vadd.f32 %v6968_v26, %v5841_v58 }
0x11d8   :  { %v2061_v61 = vpop.f32.mrf.mxu0 }
0x11d9   :  { %v5259_v14 = vmul.f32 -1.442695, %v2070_v24  ;;  %v2062_v20 = vadd.f32 %v6968_v26, %v2061_v61  ;;  %v6081_v24 = vld [vmem:[%s8160_s3] sm:$0xff]  }
0x11da   :  { %v5842_v4 = vpop.f32.mrf.mxu0  ;;  %5849 = vmatprep.subr.bf16.mxu1 %v6081_v24 }
0x11db   :  { %6228 = vpow2.f32 %v5259_v14  ;;  %v5257_v10 = vmul.f32 -1.442695, %v2062_v20  ;;  %v2073_v21 = vadd.f32 %v6968_v26, %v5842_v4  ;;  %5850 = vmatpush3.bf16.msra.mxu1 %v6081_v24 }
0x11dc   :  { %v2064_v45 = vpop.f32.mrf.mxu0 }
0x11dd   :  { %6230 = vpow2.f32 %v5257_v10  ;;  %v5260_v9 = vmul.f32 -1.442695, %v2073_v21  ;;  %v2065_v43 = vadd.f32 %v6968_v26, %v2064_v45  ;;  %v2105_v26 = vpop.permute.xlu1 %2104 }
0x11df   :  { %6232 = vpow2.f32 %v5260_v9  ;;  %v5258_v16 = vmul.f32 -1.442695, %v2065_v43 }
0x11e1   :  { %6234 = vpow2.f32 %v5258_v16  ;;  %v2109_v8 = vpop.permute.xlu1 %2108 }
0x11e8   :  { %v6229_v3 = vpop.eup %6228 }
0x11e9   :  { %v2090_v27 = vadd.f32 1.0, %v6229_v3  ;;  %v2190_v3 = vmul.f32 %v7043_v37, %v7168_v28  ;;  %v2189_v28 = vmul.f32 %v7043_v37, %v7178_v18 }
0x11ea   :  { %v6231_v5 = vpop.eup %6230 }
0x11eb   :  { %6236 = vrcp.f32 %v2090_v27  ;;  %v2088_v0 = vadd.f32 1.0, %v6231_v5 }
0x11ec   :  { %v6233_v57 = vpop.eup %6232 }
0x11ed   :  { %6238 = vrcp.f32 %v2088_v0  ;;  %v2091_v13 = vadd.f32 1.0, %v6233_v57 }
0x11ee   :  { %v6235_v12 = vpop.eup %6234 }
0x11ef   :  { %6240 = vrcp.f32 %v2091_v13  ;;  %v2089_v35 = vadd.f32 1.0, %v6235_v12  ;;  %v2191_v13 = vmul.f32 %v7043_v37, %v7166_v54 }
0x11f1   :  { %6242 = vrcp.f32 %v2089_v35 }
0x11f8   :  { %v7194_v59 = vpop.eup %6236 }
0x11f9   :  { %v2118_v60 = vmul.f32 %v7194_v59, %v2109_v8  ;;  %v2158_v46 = vmul.f32 %v7194_v59, %v2149_v7 }
0x11fa   :  { %v7197_v55 = vpop.eup %6238 }
0x11fb   :  { %v2156_v17 = vmul.f32 %v7197_v55, %v2145_v22  ;;  %v2116_v30 = vmul.f32 %v7197_v55, %v2105_v26  ;;  %v5497_v41 = vpack.c.bf16 %v2118_v60, %v2118_v60  ;;  %v5501_v14 = vpack.c.bf16 %v2158_v46, %v2158_v46 }
0x11fc   :  { %v7204_v23 = vpop.eup %6240 }
0x11fd   :  { %v5499_v6 = vpack.c.bf16 %v2156_v17, %v2156_v17  ;;  %v5495_v62 = vpack.c.bf16 %v2116_v30, %v2116_v30  ;;  %2138 = vst.msk [vmem:[#allocation2 + $0x8] sm:$0xf] %vm257_vm1, %v5497_v41  ;;  %v2119_v52 = vmul.f32 %v7204_v23, %v2111_v19  ;;  %v2159_v20 = vmul.f32 %v7204_v23, %v2151_v31 }
0x11fe   :  { %v7209_v32 = vpop.eup %6242 }
0x11ff   :  { %2172 = vrot.lane.b32.xlu1 %v5499_v6, %s6423_s25  ;;  %v2157_v47 = vmul.f32 %v7209_v32, %v2147_v15  ;;  %2136 = vst.msk [vmem:[#allocation2] sm:$0xf] %vm257_vm1, %v5495_v62  ;;  %v2117_v1 = vmul.f32 %v7209_v32, %v2107_v40  ;;  %v5498_v58 = vpack.c.bf16 %v2119_v52, %v2119_v52 }
0x1200   :  { %v5502_v10 = vpack.c.bf16 %v2159_v20, %v2159_v20  ;;  %v2188_v15 = vmul.f32 %v7043_v37, %v7174_v39 }
0x1201   :  { %v5500_v61 = vpack.c.bf16 %v2157_v47, %v2157_v47  ;;  %v5496_v4 = vpack.c.bf16 %v2117_v1, %v2117_v1  ;;  %2139 = vst.msk [vmem:[#allocation2 + $0xc] sm:$0xf] %vm257_vm1, %v5498_v58 }
0x1203   :  { %2174 = vrot.lane.b32.xlu0 %v5500_v61, %s6423_s25  ;;  %2176 = vrot.lane.b32.xlu1 %v5501_v14, %s6423_s25  ;;  %2137 = vst.msk [vmem:[#allocation2 + $0x4] sm:$0xf] %vm257_vm1, %v5496_v4 }
0x1207   :  { %2178 = vrot.lane.b32.xlu0 %v5502_v10, %s6423_s25  ;;  %2373 = vperm.xlu1 %6032, %v7012_v51  }
0x120b   :  { %2378 = vperm.xlu0 %6033, %v7019_v63   ;;  %2368 = vperm.xlu1 %6032, %v7024_v48  }
0x120f   :  { %2363 = vperm.xlu0 %6033, %v7031_v53  }
0x1271   :  { %v2173_v21 = vpop.permute.xlu1 %2172 }
0x1272   :  { %2184 = vst.msk [vmem:[#allocation2] sm:$0xf] %vm274_vm2, %v2173_v21 }
0x1275   :  { %v2175_v45 = vpop.permute.xlu0 %2174  ;;  %v2177_v9 = vpop.permute.xlu1 %2176 }
0x1276   :  { %2185 = vst.msk [vmem:[#allocation2 + $0x4] sm:$0xf] %vm274_vm2, %v2175_v45  ;;  %2186 = vst.msk [vmem:[#allocation2 + $0x8] sm:$0xf] %vm274_vm2, %v2177_v9 }
0x1279   :  { %v2179_v43 = vpop.permute.xlu0 %2178  ;;  %v2192_v16 = vld [vmem:[#allocation2] sm:$0xf] }
0x127a   :  { %2187 = vst.msk [vmem:[#allocation2 + $0xc] sm:$0xf] %vm274_vm2, %v2179_v43 }
0x127d   :  { %v2193_v51 = vld [vmem:[#allocation2 + $0x4] sm:$0xf]  ;;  %v2194_v63 = vld [vmem:[#allocation2 + $0x8] sm:$0xf] }
0x127e   :  { %v5269_v22 = vcombine.low %v2192_v16, %v2193_v51 }
0x1280   :  { %5851 = vmatprep.mubr.msk.bf16.mxu1 %vm333_vm3, %v5269_v22 }
0x1281   :  { %v2195_v48 = vld [vmem:[#allocation2 + $0xc] sm:$0xf] }
0x1282   :  { %v5270_v53 = vcombine.low %v2194_v63, %v2195_v48  ;;  %v2374_v52 = vpop.permute.xlu1 %2373 }
0x1284   :  { %5852 = vmatmul.mubr.msk.bf16.vlgmr.msra.gmra.mxu1 %vm333_vm3, %v5270_v53 }
0x1286   :  { %v2379_v62 = vpop.permute.xlu0 %2378  ;;  %v7255_v24 = vpop.permute.xlu1 %2368 }
0x128a   :  { %v2364_v61 = vpop.permute.xlu0 %2363 }
0x1344   :  { %v5853_v27 = vpop.f32.mrf.mxu1 }
0x1345   :  { %v2295_v5 = vadd.f32 %v5853_v27, %v2190_v3 }
0x1346   :  { %v2278_v0 = vpop.f32.mrf.mxu1 }
0x1347   :  { %v2299_v57 = vadd.f32 %v7052_v42, %v2295_v5  ;;  %v2293_v7 = vadd.f32 %v2278_v0, %v2188_v15 }
0x1348   :  { %v5854_v12 = vpop.f32.mrf.mxu1 }
0x1349   :  { %v2303_v35 = vmul.f32 -1.0, %v2299_v57  ;;  %v2297_v31 = vadd.f32 %v7052_v42, %v2293_v7  ;;  %v2296_v26 = vadd.f32 %v5854_v12, %v2191_v13 }
0x134a   :  { %v2281_v36 = vpop.f32.mrf.mxu1 }
0x134b   :  { %v2309_v40 = vmul.f32 1.442695, %v2303_v35  ;;  %v2301_v33 = vmul.f32 -1.0, %v2297_v31  ;;  %v2300_v39 = vadd.f32 %v7052_v42, %v2296_v26  ;;  %v2294_v8 = vadd.f32 %v2281_v36, %v2189_v28  ;;  %v7269_v28 = vld [vmem:[%s8158_s1 + $0x8] sm:$0xff]  }
0x134d   :  { %6244 = vpow2.f32 %v2309_v40  ;;  %v2305_v60 = vmul.f32 1.442695, %v2301_v33  ;;  %v2304_v17 = vmul.f32 -1.0, %v2300_v39  ;;  %v2298_v30 = vadd.f32 %v7052_v42, %v2294_v8  ;;  %v6084_v42 = vld [vmem:[%s8158_s1] sm:$0xff]  }
0x134e   :  { %5859 = vmatprep.mubr.msk.bf16.mxu0 %vm81_vm0, %v6084_v42  ;;  %5875 = vmatprep.mubr.msk.bf16.mxu1 %vm81_vm0, %v6084_v42 }
0x134f   :  { %6246 = vpow2.f32 %v2305_v60  ;;  %v2311_v54 = vmul.f32 1.442695, %v2304_v17  ;;  %v2302_v41 = vmul.f32 -1.0, %v2298_v30  ;;  %v2508_v60 = vsub.f32 1.0, %v7194_v59 }
0x1351   :  { %6248 = vpow2.f32 %v2311_v54  ;;  %v2307_v38 = vmul.f32 1.442695, %v2302_v41  ;;  %v2506_v41 = vsub.f32 1.0, %v7197_v55 }
0x1353   :  { %6250 = vpow2.f32 %v2307_v38 }
0x135a   :  { %v6245_v19 = vpop.eup %6244 }
0x135b   :  { %2321 = vrot.lane.b32.xlu1 %v6245_v19, %s6424_s14  ;;  %v2355_v46 = vmul.f32 %v6245_v19, %v2299_v57 }
0x135c   :  { %v6247_v37 = vpop.eup %6246 }
0x135d   :  { %2317 = vrot.lane.b32.xlu0 %v6247_v37, %s6424_s14  ;;  %v2353_v47 = vmul.f32 %v6247_v37, %v2297_v31  ;;  %v2359_v58 = vmul.f32 %v6245_v19, %v2355_v46  ;;  %v2509_v46 = vsub.f32 1.0, %v7204_v23 }
0x135e   :  { %v6249_v18 = vpop.eup %6248 }
0x135f   :  { %2323 = vrot.lane.b32.xlu1 %v6249_v18, %s6424_s14  ;;  %v2356_v1 = vmul.f32 %v6249_v18, %v2300_v39  ;;  %v2357_v14 = vmul.f32 %v6247_v37, %v2353_v47  ;;  %v2383_v10 = vmul.f32 %v2374_v52, %v2359_v58  ;;  %v2534_v37 = vmul.f32 %v7197_v55, %v7100_v25 }
0x1360   :  { %v6251_v6 = vpop.eup %6250  ;;  %v6428_v25 = vmov 4  }
0x1361   :  { %v2354_v20 = vmul.f32 %v6251_v6, %v2298_v30  ;;  %v2360_v4 = vmul.f32 %v6249_v18, %v2356_v1  ;;  %v2381_v9 = vmul.f32 %v2364_v61, %v2357_v14  ;;  %v5509_v63 = vpack.c.bf16 %v2383_v10, %v2383_v10  ;;  %6034 = vset.pattern.permute.xlu0 %v6428_v25 }
0x1362   :  { %v2536_v18 = vmul.f32 %v7194_v59, %v7096_v49  ;;  %6035 = vset.pattern.permute.xlu1 %v6428_v25 }
0x1363   :  { %2319 = vrot.lane.b32.xlu1 %v6251_v6, %s6424_s14  ;;  %v2384_v22 = vmul.f32 %v2379_v62, %v2360_v4  ;;  %v2358_v48 = vmul.f32 %v6251_v6, %v2354_v20  ;;  %v5507_v5 = vpack.c.bf16 %v2381_v9, %v2381_v9  ;;  %v6087_v4 = vld [vmem:[%s8159_s2] sm:$0xff]  }
0x1365   :  { %v5510_v0 = vpack.c.bf16 %v2384_v22, %v2384_v22 }
0x13cd   :  { %v2322_v21 = vpop.permute.xlu1 %2321 }
0x13ce   :  { %v2331_v45 = vmul.f32 %v2322_v21, %v2299_v57  ;;  %v2382_v57 = vmul.f32 %v7255_v24, %v2358_v48 }
0x13cf   :  { %v2318_v43 = vpop.permute.xlu0 %2317 }
0x13d0   :  { %v5505_v16 = vpack.c.bf16 %v2331_v45, %v2331_v45  ;;  %v2329_v51 = vmul.f32 %v2318_v43, %v2297_v31  ;;  %v5508_v35 = vpack.c.bf16 %v2382_v57, %v2382_v57  ;;  %v2507_v45 = vsub.f32 1.0, %v7209_v32 }
0x13d1   :  { %v2324_v53 = vpop.permute.xlu1 %2323 }
0x13d2   :  { %2351 = vst.msk [vmem:[#allocation2 + $0x8] sm:$0xf] %vm257_vm1, %v5505_v16  ;;  %v5503_v3 = vpack.c.bf16 %v2329_v51, %v2329_v51  ;;  %v2332_v27 = vmul.f32 %v2324_v53, %v2300_v39  ;;  %v2502_v16 = vmul.f32 %v7197_v55, %v7119_v29  ;;  %v2503_v51 = vmul.f32 %v7209_v32, %v7121_v11 }
0x13d3   :  { %2403 = vst.msk [vmem:[#allocation2 + $0x8] sm:$0xf] %vm274_vm2, %v5509_v63 }
0x13d4   :  { %2349 = vst.msk [vmem:[#allocation2] sm:$0xf] %vm257_vm1, %v5503_v3  ;;  %v5506_v15 = vpack.c.bf16 %v2332_v27, %v2332_v27  ;;  %v2504_v3 = vmul.f32 %v7194_v59, %v7130_v34  ;;  %v7322_v34 = vld [vmem:[%s8157_s0 + $0x10] sm:$0xff] }
0x13d5   :  { %2401 = vst.msk [vmem:[#allocation2] sm:$0xf] %vm274_vm2, %v5507_v5  ;;  %v2320_v7 = vpop.permute.xlu1 %2319 }
0x13d6   :  { %2352 = vst.msk [vmem:[#allocation2 + $0xc] sm:$0xf] %vm257_vm1, %v5506_v15  ;;  %v2330_v13 = vmul.f32 %v2320_v7, %v2298_v30  ;;  %v2505_v15 = vmul.f32 %v7204_v23, %v7132_v44  ;;  %v7331_v44 = vld [vmem:[%s8157_s0 + $0x8] sm:$0xff]  ;;  %v2535_v7 = vmul.f32 %v7209_v32, %v7143_v56 }
0x13d7   :  { %2404 = vst.msk [vmem:[#allocation2 + $0xc] sm:$0xf] %vm274_vm2, %v5510_v0 }
0x13d8   :  { %v5504_v12 = vpack.c.bf16 %v2330_v13, %v2330_v13  ;;  %v7345_v13 = vld [vmem:[%s8157_s0] sm:$0xff] }
0x13da   :  { %2350 = vst.msk [vmem:[#allocation2 + $0x4] sm:$0xf] %vm257_vm1, %v5504_v12 }
0x13db   :  { %2402 = vst.msk [vmem:[#allocation2 + $0x4] sm:$0xf] %vm274_vm2, %v5508_v35 }
0x13de   :  { %v6082_v31 = vld [vmem:[#allocation2 + $0x8] sm:$0xff]  }
0x13df   :  { %5855 = vmatprep.subr.bf16.mxu0 %v6082_v31 }
0x13e0   :  { %5856 = vmatpush3.bf16.msra.mxu0 %v6082_v31 }
0x13e2   :  { %v6083_v26 = vld [vmem:[#allocation2] sm:$0xff]  }
0x13e3   :  { %5857 = vmatprep.subr.bf16.mxu0 %v6083_v26 }
0x13e4   :  { %5858 = vmatpush3.bf16.msra.mxu0 %v6083_v26 }
0x13e7   :  { %5860 = vmatmul.mubr.msk.bf16.vlgmr.msra.gmra.mxu0 %vm81_vm0, %v7269_v28 }
0x14a7   :  { %v5861_v36 = vpop.f32.mrf.mxu0 }
0x14a8   :  { %v2496_v40 = vmul.f32 %v5861_v36, %v2374_v52 }
0x14a9   :  { %v2475_v33 = vpop.f32.mrf.mxu0 }
0x14aa   :  { %v2500_v39 = vmax.f32 %v2496_v40, 0.0  ;;  %6252 = vtanh.f32 %v2475_v33  ;;  %v2494_v8 = vmul.f32 %v2475_v33, %v2364_v61 }
0x14ab   :  { %v5862_v17 = vpop.f32.mrf.mxu0  ;;  %6254 = vtanh.f32 %v5861_v36  ;;  %v7377_v36 = vld [vmem:[%s8161_s4] ss:$0 sm:$0xff] }
0x14ac   :  { %v2498_v30 = vmax.f32 %v2494_v8, 0.0  ;;  %v2497_v54 = vmul.f32 %v5862_v17, %v2379_v62  ;;  %v2540_v38 = vmul.f32 %v2508_v60, %v2500_v39  ;;  %v2537_v62 = vmul.f32 %v7204_v23, %v7102_v50  ;;  %v6086_v50 = vld [vmem:[%s8159_s2 + $0x8] sm:$0xff]   ;;  %v7336_v23 = vld [vmem:[%s8157_s0 + $0x18] sm:$0xff] }
0x14ad   :  { %v2478_v19 = vpop.f32.mrf.mxu0  ;;  %5863 = vmatprep.subr.bf16.mxu0 %v6086_v50 }
0x14ae   :  { %v2501_v6 = vmax.f32 %v2497_v54, 0.0  ;;  %6256 = vtanh.f32 %v2478_v19  ;;  %v2538_v42 = vmul.f32 %v2506_v41, %v2498_v30  ;;  %v7280_v52 = vadd.f32 %v2540_v38, %v2536_v18  ;;  %5864 = vmatpush3.bf16.msra.mxu0 %v6086_v50 }
0x14af   :  { %6258 = vtanh.f32 %v5862_v17  ;;  %5865 = vmatprep.subr.bf16.mxu0 %v6087_v4  ;;  %v2495_v5 = vmul.f32 %v2478_v19, %v7255_v24 }
0x14b0   :  { %v2541_v47 = vmul.f32 %v2509_v46, %v2501_v6  ;;  %v7284_v1 = vadd.f32 %v2538_v42, %v2534_v37 }
0x14b1   :  { %v2499_v59 = vmax.f32 %v2495_v5, 0.0 }
0x14b2   :  { %v7286_v58 = vadd.f32 %v2541_v47, %v2537_v62  ;;  %5866 = vmatpush3.bf16.msra.mxu0 %v6087_v4  ;;  %v7396_v47 = vld [vmem:[%s8161_s4 + $0x1] ss:$0 sm:$0xff] }
0x14b3   :  { %v2539_v57 = vmul.f32 %v2507_v45, %v2499_v59  ;;  %v6088_v59 = vld [vmem:[%s8160_s3 + $0x18] sm:$0xff]  }
0x14b4   :  { %5879 = vmatprep.subr.bf16.mxu0 %v6088_v59 }
0x14b5   :  { %v7347_v12 = vadd.f32 %v2539_v57, %v2535_v7  ;;  %v6089_v57 = vld [vmem:[%s8160_s3 + $0x10] sm:$0xff]  }
0x14b7   :  { %v6253_v49 = vpop.eup %6252 }
0x14b8   :  { %2514 = vrot.lane.b32.xlu0 %v6253_v49, %s6423_s25  ;;  %v6255_v61 = vpop.eup %6254 }
0x14bb   :  { %v6257_v14 = vpop.eup %6256 }
0x14bc   :  { %2518 = vrot.lane.b32.xlu0 %v6255_v61, %s6423_s25  ;;  %2516 = vrot.lane.b32.xlu1 %v6257_v14, %s6423_s25  ;;  %v6259_v20 = vpop.eup %6258 }
0x14c0   :  { %2520 = vrot.lane.b32.xlu1 %v6259_v20, %s6423_s25 }
0x152a   :  { %v2515_v10 = vpop.permute.xlu0 %2514 }
0x152b   :  { %v2526_v21 = vmul.f32 %v2515_v10, %v2506_v41 }
0x152d   :  { %v7303_v63 = vadd.f32 %v2526_v21, %v2502_v16 }
0x152e   :  { %v2519_v9 = vpop.permute.xlu0 %2518  ;;  %v2517_v43 = vpop.permute.xlu1 %2516 }
0x152f   :  { %v2527_v22 = vmul.f32 %v2517_v43, %v2507_v45  ;;  %v2528_v48 = vmul.f32 %v2519_v9, %v2508_v60 }
0x1531   :  { %v7305_v53 = vadd.f32 %v2527_v22, %v2503_v51  ;;  %v7314_v11 = vadd.f32 %v2528_v48, %v2504_v3 }
0x1532   :  { %v2521_v27 = vpop.permute.xlu1 %2520 }
0x1533   :  { %v2529_v0 = vmul.f32 %v2521_v27, %v2509_v46  ;;  %v2578_v29 = vpack.c.bf16 %v7305_v53, %v7303_v63 }
0x1535   :  { %v7316_v55 = vadd.f32 %v2529_v0, %v2505_v15  ;;  %2586 = vrot.lane.b32.xlu0 %v2578_v29, %s6424_s14 }
0x1537   :  { %v2579_v24 = vpack.c.bf16 %v7316_v55, %v7314_v11 }
0x1539   :  { %2566 = vperm.xlu0 %6034, %v7322_v34   ;;  %2588 = vrot.lane.b32.xlu1 %v2579_v24, %s6424_s14 }
0x153d   :  { %2561 = vperm.xlu0 %6034, %v7331_v44   ;;  %2571 = vperm.xlu1 %6035, %v7336_v23  }
0x1541   :  { %2782 = vrot.lane.b32.xlu0 %v7347_v12, %s6424_s14  ;;  %2556 = vperm.xlu1 %6035, %v7345_v13  }
0x1542   :  { %6037 = vset.pattern.permute.xlu0 %v6422_v2 }
0x1545   :  { %2786 = vrot.lane.b32.xlu0 %v7286_v58, %s6424_s14  ;;  %2780 = vrot.lane.b32.xlu1 %v7284_v1, %s6424_s14 }
0x1546   :  { %6036 = vset.pattern.permute.xlu1 %v6422_v2 }
0x1549   :  { %2742 = vrot.lane.b32.xlu0 %v7305_v53, %s6424_s14  ;;  %2784 = vrot.lane.b32.xlu1 %v7280_v52, %s6424_s14 }
0x154d   :  { %2746 = vrot.lane.b32.xlu0 %v7316_v55, %s6424_s14  ;;  %2740 = vrot.lane.b32.xlu1 %v7303_v63, %s6424_s14 }
0x1551   :  { %2744 = vrot.lane.b32.xlu1 %v7314_v11, %s6424_s14 }
0x15a7   :  { %v2587_v56 = vpop.permute.xlu0 %2586 }
0x15a8   :  { %5867 = vmatprep.mubr.msk.bf16.mxu0 %vm81_vm0, %v2587_v56 }
0x15ab   :  { %v2589_v32 = vpop.permute.xlu1 %2588 }
0x15ac   :  { %5868 = vmatmul.mubr.msk.bf16.vlgmr.msra.gmra.mxu0 %vm81_vm0, %v2589_v32 }
0x15ad   :  { %5880 = vmatpush3.bf16.msra.mxu0 %v6088_v59 }
0x15ae   :  { %5881 = vmatprep.subr.bf16.mxu0 %v6089_v57 }
0x15b1   :  { %5882 = vmatpush3.bf16.msra.mxu0 %v6089_v57  ;;  %v7480_v57 = vld [vmem:[%s8161_s4 + $0x3] ss:$0 sm:$0xff] }
0x15b4   :  { %v7372_v31 = vpop.permute.xlu0 %2566 }
0x15b5   :  { %v2576_v40 = vmul.f32 %v7377_v36, %v7372_v31 }
0x15b8   :  { %v7370_v35 = vpop.permute.xlu1 %2571  ;;  %v7387_v17 = vpop.permute.xlu0 %2561 }
0x15b9   :  { %v2577_v33 = vmul.f32 %v7377_v36, %v7370_v35  ;;  %v2575_v38 = vmul.f32 %v7377_v36, %v7387_v17 }
0x15bc   :  { %v7383_v39 = vpop.permute.xlu1 %2556  ;;  %v2783_v51 = vpop.permute.xlu0 %2782 }
0x15bd   :  { %v2574_v60 = vmul.f32 %v7377_v36, %v7383_v39 }
0x15c0   :  { %v2781_v45 = vpop.permute.xlu1 %2780  ;;  %v2787_v0 = vpop.permute.xlu0 %2786 }
0x15c4   :  { %v2785_v3 = vpop.permute.xlu1 %2784  ;;  %v2743_v24 = vpop.permute.xlu0 %2742 }
0x15c8   :  { %v2741_v29 = vpop.permute.xlu1 %2740 }
0x15cc   :  { %v2745_v56 = vpop.permute.xlu1 %2744 }
0x166c   :  { %v5869_v26 = vpop.f32.mrf.mxu0 }
0x166d   :  { %v2659_v54 = vadd.f32 %v5869_v26, %v2576_v40 }
0x166e   :  { %v2642_v8 = vpop.f32.mrf.mxu0 }
0x166f   :  { %v2657_v37 = vadd.f32 %v2642_v8, %v2574_v60  ;;  %v6090_v60 = vld [vmem:[%s8160_s3 + $0x8] sm:$0xff]  }
0x1670   :  { %v5870_v30 = vpop.f32.mrf.mxu0  ;;  %5883 = vmatprep.subr.bf16.mxu0 %v6090_v60 }
0x1671   :  { %v2660_v41 = vadd.f32 %v5870_v30, %v2577_v33  ;;  %5884 = vmatpush3.bf16.msra.mxu0 %v6090_v60 }
0x1672   :  { %v2645_v19 = vpop.f32.mrf.mxu0 }
0x1673   :  { %v2662_v18 = vpack.c.bf16 %v2660_v41, %v2659_v54  ;;  %v2658_v6 = vadd.f32 %v2645_v19, %v2575_v38  ;;  %v2747_v54 = vpop.permute.xlu0 %2746 }
0x1675   :  { %v2661_v42 = vpack.c.bf16 %v2658_v6, %v2657_v37  ;;  %5871 = vmatprep.subr.bf16.mxu1 %v2662_v18 }
0x1676   :  { %5872 = vmatpush3.bf16.msra.mxu1 %v2662_v18 }
0x1677   :  { %5873 = vmatprep.subr.bf16.mxu1 %v2661_v42 }
0x167a   :  { %5874 = vmatpush3.bf16.msra.mxu1 %v2661_v42 }
0x167d   :  { %5876 = vmatmul.mubr.msk.bf16.vlgmr.msra.gmra.mxu1 %vm81_vm0, %v7269_v28 }
0x173d   :  { %v5877_v46 = vpop.f32.mrf.mxu1 }
0x173e   :  { %v2706_v62 = vadd.f32 %v7396_v47, %v5877_v46 }
0x173f   :  { %v2697_v25 = vpop.f32.mrf.mxu1 }
0x1740   :  { %v5299_v49 = vmul.f32 -1.442695, %v2706_v62  ;;  %v2698_v61 = vadd.f32 %v7396_v47, %v2697_v25  ;;  %v6091_v62 = vld [vmem:[%s8160_s3] sm:$0xff]  }
0x1741   :  { %v5878_v14 = vpop.f32.mrf.mxu1  ;;  %5885 = vmatprep.subr.bf16.mxu0 %v6091_v62 }
0x1742   :  { %6260 = vpow2.f32 %v5299_v49  ;;  %v5297_v20 = vmul.f32 -1.442695, %v2698_v61  ;;  %v2709_v50 = vadd.f32 %v7396_v47, %v5878_v14  ;;  %5886 = vmatpush3.bf16.msra.mxu0 %v6091_v62 }
0x1743   :  { %v2700_v4 = vpop.f32.mrf.mxu1 }
0x1744   :  { %6262 = vpow2.f32 %v5297_v20  ;;  %v5300_v28 = vmul.f32 -1.442695, %v2709_v50  ;;  %v2701_v10 = vadd.f32 %v7396_v47, %v2700_v4  ;;  %v7440_v20 = vld [vmem:[%s8162_s5 + $0x10] sm:$0xff]  ;;  %v7447_v4 = vld [vmem:[%s8162_s5 + $0x18] sm:$0xff] }
0x1746   :  { %6264 = vpow2.f32 %v5300_v28  ;;  %v5298_v21 = vmul.f32 -1.442695, %v2701_v10  ;;  %v7452_v28 = vld [vmem:[%s8162_s5 + $0x8] sm:$0xff]  ;;  %v7459_v10 = vld [vmem:[%s8162_s5] sm:$0xff] }
0x1748   :  { %6266 = vpow2.f32 %v5298_v21 }
0x174f   :  { %v6261_v9 = vpop.eup %6260 }
0x1750   :  { %v2726_v43 = vadd.f32 1.0, %v6261_v9 }
0x1751   :  { %v6263_v16 = vpop.eup %6262 }
0x1752   :  { %6268 = vrcp.f32 %v2726_v43  ;;  %v2724_v22 = vadd.f32 1.0, %v6263_v16 }
0x1753   :  { %v6265_v48 = vpop.eup %6264 }
0x1754   :  { %6270 = vrcp.f32 %v2724_v22  ;;  %v2727_v27 = vadd.f32 1.0, %v6265_v48 }
0x1755   :  { %v6267_v5 = vpop.eup %6266 }
0x1756   :  { %6272 = vrcp.f32 %v2727_v27  ;;  %v2725_v15 = vadd.f32 1.0, %v6267_v5  ;;  %v7471_v5 = vld [vmem:[%s8161_s4 + $0x2] ss:$0 sm:$0xff] }
0x1757   :  { %v2824_v59 = vmul.f32 %v7471_v5, %v7383_v39  ;;  %v2825_v39 = vmul.f32 %v7471_v5, %v7387_v17 }
0x1758   :  { %6274 = vrcp.f32 %v2725_v15  ;;  %v2826_v15 = vmul.f32 %v7471_v5, %v7372_v31 }
0x175f   :  { %v7408_v7 = vpop.eup %6268 }
0x1760   :  { %v2754_v32 = vmul.f32 %v7408_v7, %v2745_v56  ;;  %v2794_v37 = vmul.f32 %v7408_v7, %v2785_v3 }
0x1761   :  { %v7411_v26 = vpop.eup %6270 }
0x1762   :  { %v5513_v40 = vpack.c.bf16 %v2754_v32, %v2754_v32  ;;  %v2752_v33 = vmul.f32 %v7411_v26, %v2741_v29  ;;  %v2792_v8 = vmul.f32 %v7411_v26, %v2781_v45  ;;  %v5517_v61 = vpack.c.bf16 %v2794_v37, %v2794_v37 }
0x1763   :  { %v7418_v30 = vpop.eup %6272 }
0x1764   :  { %2774 = vst.msk [vmem:[#allocation2 + $0x8] sm:$0xf] %vm257_vm1, %v5513_v40  ;;  %v5511_v41 = vpack.c.bf16 %v2752_v33, %v2752_v33  ;;  %v2755_v38 = vmul.f32 %v7418_v30, %v2747_v54  ;;  %v5515_v19 = vpack.c.bf16 %v2792_v8, %v2792_v8  ;;  %v2795_v14 = vmul.f32 %v7418_v30, %v2787_v0 }
0x1765   :  { %v7423_v18 = vpop.eup %6274  ;;  %v2827_v40 = vmul.f32 %v7471_v5, %v7370_v35 }
0x1766   :  { %2772 = vst.msk [vmem:[#allocation2] sm:$0xf] %vm257_vm1, %v5511_v41  ;;  %v5514_v6 = vpack.c.bf16 %v2755_v38, %v2755_v38  ;;  %v2753_v42 = vmul.f32 %v7423_v18, %v2743_v24  ;;  %2808 = vrot.lane.b32.xlu1 %v5515_v19, %s6423_s25  ;;  %v2793_v46 = vmul.f32 %v7423_v18, %v2783_v51 }
0x1767   :  { %v5518_v50 = vpack.c.bf16 %v2795_v14, %v2795_v14 }
0x1768   :  { %2775 = vst.msk [vmem:[#allocation2 + $0xc] sm:$0xf] %vm257_vm1, %v5514_v6  ;;  %v5512_v25 = vpack.c.bf16 %v2753_v42, %v2753_v42  ;;  %v5516_v49 = vpack.c.bf16 %v2793_v46, %v2793_v46 }
0x176a   :  { %2773 = vst.msk [vmem:[#allocation2 + $0x4] sm:$0xf] %vm257_vm1, %v5512_v25  ;;  %2810 = vrot.lane.b32.xlu0 %v5516_v49, %s6423_s25  ;;  %2812 = vrot.lane.b32.xlu1 %v5517_v61, %s6423_s25 }
0x176e   :  { %2814 = vrot.lane.b32.xlu0 %v5518_v50, %s6423_s25  ;;  %3009 = vperm.xlu1 %6036, %v7440_v20   ;;  %v6094_v50 = vld [vmem:[%s8158_s1] sm:$0xff]  }
0x176f   :  { %5895 = vmatprep.mubr.msk.bf16.mxu1 %vm81_vm0, %v6094_v50 }
0x1772   :  { %3014 = vperm.xlu0 %6037, %v7447_v4   ;;  %3004 = vperm.xlu1 %6036, %v7452_v28  }
0x1776   :  { %2999 = vperm.xlu0 %6037, %v7459_v10  }
0x17d8   :  { %v2809_v21 = vpop.permute.xlu1 %2808 }
0x17d9   :  { %2820 = vst.msk [vmem:[#allocation2] sm:$0xf] %vm274_vm2, %v2809_v21 }
0x17dc   :  { %v2811_v45 = vpop.permute.xlu0 %2810  ;;  %v2813_v9 = vpop.permute.xlu1 %2812 }
0x17dd   :  { %2821 = vst.msk [vmem:[#allocation2 + $0x4] sm:$0xf] %vm274_vm2, %v2811_v45  ;;  %2822 = vst.msk [vmem:[#allocation2 + $0x8] sm:$0xf] %vm274_vm2, %v2813_v9 }
0x17e0   :  { %v2815_v43 = vpop.permute.xlu0 %2814  ;;  %v2828_v16 = vld [vmem:[#allocation2] sm:$0xf] }
0x17e1   :  { %2823 = vst.msk [vmem:[#allocation2 + $0xc] sm:$0xf] %vm274_vm2, %v2815_v43 }
0x17e4   :  { %v2829_v51 = vld [vmem:[#allocation2 + $0x4] sm:$0xf]  ;;  %v2830_v48 = vld [vmem:[#allocation2 + $0x8] sm:$0xf] }
0x17e5   :  { %v5309_v22 = vcombine.low %v2828_v16, %v2829_v51 }
0x17e7   :  { %5887 = vmatprep.mubr.msk.bf16.mxu0 %vm333_vm3, %v5309_v22 }
0x17e8   :  { %v2831_v3 = vld [vmem:[#allocation2 + $0xc] sm:$0xf] }
0x17e9   :  { %v5310_v27 = vcombine.low %v2830_v48, %v2831_v3  ;;  %v3010_v9 = vpop.permute.xlu1 %3009 }
0x17eb   :  { %5888 = vmatmul.mubr.msk.bf16.vlgmr.msra.gmra.mxu0 %vm333_vm3, %v5310_v27 }
0x17ec   :  { %5911 = vmatprep.mubr.msk.bf16.mxu0 %vm81_vm0, %v6094_v50 }
0x17ed   :  { %v3015_v45 = vpop.permute.xlu0 %3014  ;;  %v7499_v22 = vpop.permute.xlu1 %3004 }
0x17f1   :  { %v3000_v48 = vpop.permute.xlu0 %2999 }
0x18ab   :  { %v5889_v0 = vpop.f32.mrf.mxu0 }
0x18ac   :  { %v2931_v29 = vadd.f32 %v5889_v0, %v2826_v15 }
0x18ad   :  { %v2914_v24 = vpop.f32.mrf.mxu0 }
0x18ae   :  { %v2935_v56 = vadd.f32 %v7480_v57, %v2931_v29  ;;  %v2929_v32 = vadd.f32 %v2914_v24, %v2824_v59 }
0x18af   :  { %v5890_v33 = vpop.f32.mrf.mxu0 }
0x18b0   :  { %v2939_v8 = vmul.f32 -1.0, %v2935_v56  ;;  %v2933_v31 = vadd.f32 %v7480_v57, %v2929_v32  ;;  %v2932_v60 = vadd.f32 %v5890_v33, %v2827_v40 }
0x18b1   :  { %v2917_v54 = vpop.f32.mrf.mxu0 }
0x18b2   :  { %v2945_v41 = vmul.f32 1.442695, %v2939_v8  ;;  %v2937_v38 = vmul.f32 -1.0, %v2933_v31  ;;  %v2936_v19 = vadd.f32 %v7480_v57, %v2932_v60  ;;  %v2930_v37 = vadd.f32 %v2917_v54, %v2825_v39 }
0x18b4   :  { %6276 = vpow2.f32 %v2945_v41  ;;  %v2941_v6 = vmul.f32 1.442695, %v2937_v38  ;;  %v2940_v42 = vmul.f32 -1.0, %v2936_v19  ;;  %v2934_v46 = vadd.f32 %v7480_v57, %v2930_v37 }
0x18b6   :  { %6278 = vpow2.f32 %v2941_v6  ;;  %v2947_v35 = vmul.f32 1.442695, %v2940_v42  ;;  %v2938_v62 = vmul.f32 -1.0, %v2934_v46 }
0x18b8   :  { %6280 = vpow2.f32 %v2947_v35  ;;  %v2943_v25 = vmul.f32 1.442695, %v2938_v62 }
0x18ba   :  { %6282 = vpow2.f32 %v2943_v25 }
0x18c1   :  { %v6277_v49 = vpop.eup %6276 }
0x18c2   :  { %2957 = vrot.lane.b32.xlu1 %v6277_v49, %s6424_s14  ;;  %v2991_v21 = vmul.f32 %v6277_v49, %v2935_v56 }
0x18c3   :  { %v6279_v17 = vpop.eup %6278 }
0x18c4   :  { %2953 = vrot.lane.b32.xlu0 %v6279_v17, %s6424_s14  ;;  %v2989_v43 = vmul.f32 %v6279_v17, %v2933_v31  ;;  %v2995_v51 = vmul.f32 %v6277_v49, %v2991_v21 }
0x18c5   :  { %v6281_v61 = vpop.eup %6280 }
0x18c6   :  { %2959 = vrot.lane.b32.xlu1 %v6281_v61, %s6424_s14  ;;  %v2992_v16 = vmul.f32 %v6281_v61, %v2936_v19  ;;  %v2993_v3 = vmul.f32 %v6279_v17, %v2989_v43  ;;  %v3019_v0 = vmul.f32 %v3010_v9, %v2995_v51  ;;  %v7513_v17 = vld [vmem:[%s8158_s1 + $0x8] sm:$0xff]   ;;  %v3144_v43 = vsub.f32 1.0, %v7408_v7 }
0x18c7   :  { %v6283_v14 = vpop.eup %6282 }
0x18c8   :  { %v2990_v27 = vmul.f32 %v6283_v14, %v2934_v46  ;;  %v2996_v15 = vmul.f32 %v6281_v61, %v2992_v16  ;;  %v3017_v24 = vmul.f32 %v3000_v48, %v2993_v3  ;;  %v5525_v60 = vpack.c.bf16 %v3019_v0, %v3019_v0 }
0x18ca   :  { %2955 = vrot.lane.b32.xlu1 %v6283_v14, %s6424_s14  ;;  %v3020_v8 = vmul.f32 %v3015_v45, %v2996_v15  ;;  %v2994_v39 = vmul.f32 %v6283_v14, %v2990_v27  ;;  %v5523_v37 = vpack.c.bf16 %v3017_v24, %v3017_v24  ;;  %v3142_v27 = vsub.f32 1.0, %v7411_v26 }
0x18cc   :  { %v5526_v42 = vpack.c.bf16 %v3020_v8, %v3020_v8 }
0x1934   :  { %v2958_v29 = vpop.permute.xlu1 %2957 }
0x1935   :  { %v2967_v59 = vmul.f32 %v2958_v29, %v2935_v56  ;;  %v3018_v56 = vmul.f32 %v7499_v22, %v2994_v39  ;;  %v3170_v29 = vmul.f32 %v7411_v26, %v7284_v1  ;;  %v6429_v1 = vmov 5  }
0x1936   :  { %v2954_v32 = vpop.permute.xlu0 %2953  ;;  %6038 = vset.pattern.permute.xlu0 %v6429_v1  ;;  %6039 = vset.pattern.permute.xlu1 %v6429_v1 }
0x1937   :  { %v5521_v40 = vpack.c.bf16 %v2967_v59, %v2967_v59  ;;  %v2965_v33 = vmul.f32 %v2954_v32, %v2933_v31  ;;  %v5524_v25 = vpack.c.bf16 %v3018_v56, %v3018_v56 }
0x1938   :  { %v2960_v54 = vpop.permute.xlu1 %2959 }
0x1939   :  { %2987 = vst.msk [vmem:[#allocation2 + $0x8] sm:$0xf] %vm257_vm1, %v5521_v40  ;;  %v5519_v41 = vpack.c.bf16 %v2965_v33, %v2965_v33  ;;  %v2968_v38 = vmul.f32 %v2960_v54, %v2936_v19  ;;  %v3173_v33 = vmul.f32 %v7418_v30, %v7286_v58  ;;  %v6096_v58 = vld [vmem:[%s8159_s2 + $0x8] sm:$0xff]  }
0x193a   :  { %3039 = vst.msk [vmem:[#allocation2 + $0x8] sm:$0xf] %vm274_vm2, %v5525_v60 }
0x193b   :  { %2985 = vst.msk [vmem:[#allocation2] sm:$0xf] %vm257_vm1, %v5519_v41  ;;  %v5522_v6 = vpack.c.bf16 %v2968_v38, %v2968_v38  ;;  %v6097_v41 = vld [vmem:[%s8159_s2] sm:$0xff]  }
0x193c   :  { %3037 = vst.msk [vmem:[#allocation2] sm:$0xf] %vm274_vm2, %v5523_v37  ;;  %v2956_v31 = vpop.permute.xlu1 %2955 }
0x193d   :  { %2988 = vst.msk [vmem:[#allocation2 + $0xc] sm:$0xf] %vm257_vm1, %v5522_v6  ;;  %v2966_v35 = vmul.f32 %v2956_v31, %v2934_v46  ;;  %v3143_v6 = vsub.f32 1.0, %v7423_v18  ;;  %v3138_v31 = vmul.f32 %v7411_v26, %v7303_v63 }
0x193e   :  { %3040 = vst.msk [vmem:[#allocation2 + $0xc] sm:$0xf] %vm274_vm2, %v5526_v42 }
0x193f   :  { %v5520_v62 = vpack.c.bf16 %v2966_v35, %v2966_v35  ;;  %v3139_v35 = vmul.f32 %v7423_v18, %v7305_v53 }
0x1941   :  { %2986 = vst.msk [vmem:[#allocation2 + $0x4] sm:$0xf] %vm257_vm1, %v5520_v62 }
0x1942   :  { %3038 = vst.msk [vmem:[#allocation2 + $0x4] sm:$0xf] %vm274_vm2, %v5524_v25 }
0x1945   :  { %v6092_v19 = vld [vmem:[#allocation2 + $0x8] sm:$0xff]  }
0x1946   :  { %5891 = vmatprep.subr.bf16.mxu1 %v6092_v19 }
0x1947   :  { %5892 = vmatpush3.bf16.msra.mxu1 %v6092_v19 }
0x1949   :  { %v6093_v49 = vld [vmem:[#allocation2] sm:$0xff]  }
0x194a   :  { %5893 = vmatprep.subr.bf16.mxu1 %v6093_v49 }
0x194b   :  { %5894 = vmatpush3.bf16.msra.mxu1 %v6093_v49 }
0x194c   :  { %5899 = vmatprep.subr.bf16.mxu1 %v6096_v58 }
0x194e   :  { %5896 = vmatmul.mubr.msk.bf16.vlgmr.msra.gmra.mxu1 %vm81_vm0, %v7513_v17 }
0x194f   :  { %5900 = vmatpush3.bf16.msra.mxu1 %v6096_v58 }
0x1950   :  { %5901 = vmatprep.subr.bf16.mxu1 %v6097_v41 }
0x1953   :  { %5902 = vmatpush3.bf16.msra.mxu1 %v6097_v41 }
0x1a0e   :  { %v5897_v46 = vpop.f32.mrf.mxu1 }
0x1a0f   :  { %v3132_v61 = vmul.f32 %v5897_v46, %v3010_v9  ;;  %v3172_v9 = vmul.f32 %v7408_v7, %v7280_v52 }
0x1a10   :  { %v3111_v14 = vpop.f32.mrf.mxu1 }
0x1a11   :  { %v3136_v50 = vmax.f32 %v3132_v61, 0.0  ;;  %6284 = vtanh.f32 %v3111_v14  ;;  %v3130_v21 = vmul.f32 %v3111_v14, %v3000_v48  ;;  %v3145_v48 = vsub.f32 1.0, %v7418_v30 }
0x1a12   :  { %v5898_v16 = vpop.f32.mrf.mxu1  ;;  %6286 = vtanh.f32 %v5897_v46  ;;  %v3140_v46 = vmul.f32 %v7408_v7, %v7314_v11 }
0x1a13   :  { %v3134_v51 = vmax.f32 %v3130_v21, 0.0  ;;  %v3133_v3 = vmul.f32 %v5898_v16, %v3015_v45  ;;  %v3176_v15 = vmul.f32 %v3144_v43, %v3136_v50  ;;  %v3141_v50 = vmul.f32 %v7418_v30, %v7316_v55 }
0x1a14   :  { %v3114_v0 = vpop.f32.mrf.mxu1  ;;  %v3171_v55 = vmul.f32 %v7423_v18, %v7347_v12 }
0x1a15   :  { %v3137_v59 = vmax.f32 %v3133_v3, 0.0  ;;  %6288 = vtanh.f32 %v3114_v0  ;;  %v3174_v24 = vmul.f32 %v3142_v27, %v3134_v51  ;;  %v7524_v32 = vadd.f32 %v3176_v15, %v3172_v9 }
0x1a16   :  { %6290 = vtanh.f32 %v5898_v16  ;;  %v3131_v14 = vmul.f32 %v3114_v0, %v7499_v22 }
0x1a17   :  { %v7526_v40 = vadd.f32 %v3174_v24, %v3170_v29  ;;  %v3177_v45 = vmul.f32 %v3145_v48, %v3137_v59 }
0x1a19   :  { %v7530_v8 = vadd.f32 %v3177_v45, %v3173_v33 }
0x1a1e   :  { %v6285_v52 = vpop.eup %6284 }
0x1a1f   :  { %3150 = vrot.lane.b32.xlu0 %v6285_v52, %s6423_s25  ;;  %v6287_v60 = vpop.eup %6286 }
0x1a22   :  { %v6289_v39 = vpop.eup %6288 }
0x1a23   :  { %3154 = vrot.lane.b32.xlu0 %v6287_v60, %s6423_s25  ;;  %3152 = vrot.lane.b32.xlu1 %v6289_v39, %s6423_s25  ;;  %v6291_v54 = vpop.eup %6290 }
0x1a27   :  { %3156 = vrot.lane.b32.xlu1 %v6291_v54, %s6423_s25 }
0x1a91   :  { %v3151_v38 = vpop.permute.xlu0 %3150 }
0x1a92   :  { %v3162_v37 = vmul.f32 %v3151_v38, %v3142_v27 }
0x1a94   :  { %v7547_v25 = vadd.f32 %v3162_v37, %v3138_v31 }
0x1a95   :  { %v3155_v42 = vpop.permute.xlu0 %3154  ;;  %v3153_v56 = vpop.permute.xlu1 %3152 }
0x1a96   :  { %v3163_v62 = vmul.f32 %v3153_v56, %v3143_v6  ;;  %v3164_v19 = vmul.f32 %v3155_v42, %v3144_v43  ;;  %v3135_v43 = vmax.f32 %v3131_v14, 0.0 }
0x1a98   :  { %v7549_v49 = vadd.f32 %v3163_v62, %v3139_v35  ;;  %v7558_v53 = vadd.f32 %v3164_v19, %v3140_v46  ;;  %v3175_v7 = vmul.f32 %v3143_v6, %v3135_v43  ;;  %v6098_v43 = vld [vmem:[%s8160_s3 + $0x18] sm:$0xff]  }
0x1a99   :  { %v3157_v61 = vpop.permute.xlu1 %3156  ;;  %5915 = vmatprep.subr.bf16.mxu1 %v6098_v43 }
0x1a9a   :  { %v3165_v21 = vmul.f32 %v3157_v61, %v3145_v48  ;;  %v3214_v63 = vpack.c.bf16 %v7549_v49, %v7547_v25  ;;  %v7571_v30 = vadd.f32 %v3175_v7, %v3171_v55  ;;  %v6099_v7 = vld [vmem:[%s8160_s3 + $0x10] sm:$0xff]  }
0x1a9c   :  { %v7560_v26 = vadd.f32 %v3165_v21, %v3141_v50  ;;  %3222 = vrot.lane.b32.xlu0 %v3214_v63, %s6424_s14 }
0x1a9e   :  { %v3215_v11 = vpack.c.bf16 %v7560_v26, %v7558_v53 }
0x1aa0   :  { %3202 = vperm.xlu0 %6038, %v7322_v34   ;;  %3224 = vrot.lane.b32.xlu1 %v3215_v11, %s6424_s14 }
0x1aa4   :  { %3197 = vperm.xlu0 %6038, %v7331_v44   ;;  %3207 = vperm.xlu1 %6039, %v7336_v23  }
0x1aa8   :  { %3418 = vrot.lane.b32.xlu0 %v7571_v30, %s6424_s14  ;;  %3192 = vperm.xlu1 %6039, %v7345_v13  }
0x1aa9   :  { %6041 = vset.pattern.permute.xlu0 %v6422_v2 }
0x1aac   :  { %3422 = vrot.lane.b32.xlu0 %v7530_v8, %s6424_s14  ;;  %3416 = vrot.lane.b32.xlu1 %v7526_v40, %s6424_s14 }
0x1aad   :  { %6040 = vset.pattern.permute.xlu1 %v6422_v2 }
0x1ab0   :  { %3378 = vrot.lane.b32.xlu0 %v7549_v49, %s6424_s14  ;;  %3420 = vrot.lane.b32.xlu1 %v7524_v32, %s6424_s14 }
0x1ab4   :  { %3382 = vrot.lane.b32.xlu0 %v7560_v26, %s6424_s14  ;;  %3376 = vrot.lane.b32.xlu1 %v7547_v25, %s6424_s14 }
0x1ab8   :  { %3380 = vrot.lane.b32.xlu1 %v7558_v53, %s6424_s14 }
0x1b0e   :  { %v3223_v34 = vpop.permute.xlu0 %3222 }
0x1b0f   :  { %5903 = vmatprep.mubr.msk.bf16.mxu1 %vm81_vm0, %v3223_v34 }
0x1b12   :  { %v3225_v44 = vpop.permute.xlu1 %3224 }
0x1b13   :  { %5904 = vmatmul.mubr.msk.bf16.vlgmr.msra.gmra.mxu1 %vm81_vm0, %v3225_v44 }
0x1b14   :  { %5916 = vmatpush3.bf16.msra.mxu1 %v6098_v43 }
0x1b15   :  { %5917 = vmatprep.subr.bf16.mxu1 %v6099_v7 }
0x1b18   :  { %5918 = vmatpush3.bf16.msra.mxu1 %v6099_v7 }
0x1b1b   :  { %v7596_v13 = vpop.permute.xlu0 %3202 }
0x1b1c   :  { %v3212_v18 = vmul.f32 %v7377_v36, %v7596_v13 }
0x1b1f   :  { %v7594_v23 = vpop.permute.xlu1 %3207  ;;  %v7606_v27 = vpop.permute.xlu0 %3197 }
0x1b20   :  { %v3213_v22 = vmul.f32 %v7377_v36, %v7594_v23  ;;  %v3211_v0 = vmul.f32 %v7377_v36, %v7606_v27 }
0x1b23   :  { %v7602_v16 = vpop.permute.xlu1 %3192  ;;  %v3419_v62 = vpop.permute.xlu0 %3418 }
0x1b24   :  { %v3210_v3 = vmul.f32 %v7377_v36, %v7602_v16 }
0x1b27   :  { %v3423_v63 = vpop.permute.xlu0 %3422 }
0x1b2b   :  { %v3379_v11 = vpop.permute.xlu0 %3378 }
0x1bd3   :  { %v5905_v12 = vpop.f32.mrf.mxu1 }
0x1bd4   :  { %v3295_v29 = vadd.f32 %v5905_v12, %v3212_v18  ;;  %v6100_v18 = vld [vmem:[%s8160_s3 + $0x8] sm:$0xff]  }
0x1bd5   :  { %v3278_v51 = vpop.f32.mrf.mxu1  ;;  %5919 = vmatprep.subr.bf16.mxu1 %v6100_v18 }
0x1bd6   :  { %v3293_v24 = vadd.f32 %v3278_v51, %v3210_v3  ;;  %5920 = vmatpush3.bf16.msra.mxu1 %v6100_v18 }
0x1bd7   :  { %v5906_v15 = vpop.f32.mrf.mxu1 }
0x1bd8   :  { %v3296_v9 = vadd.f32 %v5906_v15, %v3213_v22  ;;  %v6101_v22 = vld [vmem:[%s8160_s3] sm:$0xff]  }
0x1bd9   :  { %v3281_v59 = vpop.f32.mrf.mxu1  ;;  %5921 = vmatprep.subr.bf16.mxu1 %v6101_v22 }
0x1bda   :  { %v3298_v48 = vpack.c.bf16 %v3296_v9, %v3295_v29  ;;  %v3294_v45 = vadd.f32 %v3281_v59, %v3211_v0  ;;  %v3383_v29 = vpop.permute.xlu0 %3382  ;;  %5922 = vmatpush3.bf16.msra.mxu1 %v6101_v22 }
0x1bdc   :  { %v3297_v33 = vpack.c.bf16 %v3294_v45, %v3293_v24  ;;  %5907 = vmatprep.subr.bf16.mxu0 %v3298_v48 }
0x1bdd   :  { %5908 = vmatpush3.bf16.msra.mxu0 %v3298_v48 }
0x1bde   :  { %5909 = vmatprep.subr.bf16.mxu0 %v3297_v33 }
0x1be1   :  { %5910 = vmatpush3.bf16.msra.mxu0 %v3297_v33 }
0x1be4   :  { %5912 = vmatmul.mubr.msk.bf16.vlgmr.msra.gmra.mxu0 %vm81_vm0, %v7513_v17  ;;  %v3417_v17 = vpop.permute.xlu1 %3416 }
0x1be8   :  { %v3421_v61 = vpop.permute.xlu1 %3420 }
0x1ca4   :  { %v5913_v1 = vpop.f32.mrf.mxu0 }
0x1ca5   :  { %v3342_v52 = vadd.f32 %v7396_v47, %v5913_v1 }
0x1ca6   :  { %v3333_v60 = vpop.f32.mrf.mxu0 }
0x1ca7   :  { %v5339_v39 = vmul.f32 -1.442695, %v3342_v52  ;;  %v3334_v36 = vadd.f32 %v7396_v47, %v3333_v60 }
0x1ca8   :  { %v5914_v54 = vpop.f32.mrf.mxu0 }
0x1ca9   :  { %6292 = vpow2.f32 %v5339_v39  ;;  %v5337_v58 = vmul.f32 -1.442695, %v3334_v36  ;;  %v3345_v41 = vadd.f32 %v7396_v47, %v5914_v54 }
0x1caa   :  { %v3336_v38 = vpop.f32.mrf.mxu0 }
0x1cab   :  { %6294 = vpow2.f32 %v5337_v58  ;;  %v5340_v37 = vmul.f32 -1.442695, %v3345_v41  ;;  %v3337_v6 = vadd.f32 %v7396_v47, %v3336_v38  ;;  %v3377_v47 = vpop.permute.xlu1 %3376 }
0x1cad   :  { %6296 = vpow2.f32 %v5340_v37  ;;  %v5338_v42 = vmul.f32 -1.442695, %v3337_v6 }
0x1caf   :  { %6298 = vpow2.f32 %v5338_v42  ;;  %v3381_v34 = vpop.permute.xlu1 %3380 }
0x1cb6   :  { %v6293_v56 = vpop.eup %6292 }
0x1cb7   :  { %v3362_v31 = vadd.f32 1.0, %v6293_v56 }
0x1cb8   :  { %v6295_v35 = vpop.eup %6294 }
0x1cb9   :  { %6300 = vrcp.f32 %v3362_v31  ;;  %v3360_v19 = vadd.f32 1.0, %v6295_v35  ;;  %v3463_v31 = vmul.f32 %v7471_v5, %v7594_v23 }
0x1cba   :  { %v6297_v46 = vpop.eup %6296 }
0x1cbb   :  { %6302 = vrcp.f32 %v3360_v19  ;;  %v3363_v14 = vadd.f32 1.0, %v6297_v46  ;;  %v3461_v46 = vmul.f32 %v7471_v5, %v7606_v27 }
0x1cbc   :  { %v6299_v50 = vpop.eup %6298 }
0x1cbd   :  { %6304 = vrcp.f32 %v3363_v14  ;;  %v3361_v21 = vadd.f32 1.0, %v6299_v50 }
0x1cbf   :  { %6306 = vrcp.f32 %v3361_v21 }
0x1cc6   :  { %v7622_v55 = vpop.eup %6300 }
0x1cc7   :  { %v3390_v44 = vmul.f32 %v7622_v55, %v3381_v34  ;;  %v3430_v48 = vmul.f32 %v7622_v55, %v3421_v61 }
0x1cc8   :  { %v7625_v12 = vpop.eup %6302 }
0x1cc9   :  { %v5529_v51 = vpack.c.bf16 %v3390_v44, %v3390_v44  ;;  %v3388_v3 = vmul.f32 %v7625_v12, %v3377_v47  ;;  %v3428_v15 = vmul.f32 %v7625_v12, %v3417_v17  ;;  %v5533_v36 = vpack.c.bf16 %v3430_v48, %v3430_v48 }
0x1cca   :  { %v7635_v0 = vpop.eup %6304 }
0x1ccb   :  { %3410 = vst.msk [vmem:[#allocation2 + $0x8] sm:$0xf] %vm257_vm1, %v5529_v51  ;;  %v5527_v9 = vpack.c.bf16 %v3388_v3, %v3388_v3  ;;  %v3391_v59 = vmul.f32 %v7635_v0, %v3383_v29  ;;  %v5531_v24 = vpack.c.bf16 %v3428_v15, %v3428_v15  ;;  %v3431_v54 = vmul.f32 %v7635_v0, %v3423_v63 }
0x1ccc   :  { %v7640_v45 = vpop.eup %6306 }
0x1ccd   :  { %3408 = vst.msk [vmem:[#allocation2] sm:$0xf] %vm257_vm1, %v5527_v9  ;;  %v5530_v33 = vpack.c.bf16 %v3391_v59, %v3391_v59  ;;  %v3389_v1 = vmul.f32 %v7640_v45, %v3379_v11  ;;  %3444 = vrot.lane.b32.xlu1 %v5531_v24, %s6423_s25  ;;  %v3429_v52 = vmul.f32 %v7640_v45, %v3419_v62 }
0x1cce   :  { %v5534_v58 = vpack.c.bf16 %v3431_v54, %v3431_v54 }
0x1ccf   :  { %3411 = vst.msk [vmem:[#allocation2 + $0xc] sm:$0xf] %vm257_vm1, %v5530_v33  ;;  %v5528_v60 = vpack.c.bf16 %v3389_v1, %v3389_v1  ;;  %v5532_v39 = vpack.c.bf16 %v3429_v52, %v3429_v52 }
0x1cd1   :  { %3409 = vst.msk [vmem:[#allocation2 + $0x4] sm:$0xf] %vm257_vm1, %v5528_v60  ;;  %3446 = vrot.lane.b32.xlu0 %v5532_v39, %s6423_s25  ;;  %3448 = vrot.lane.b32.xlu1 %v5533_v36, %s6423_s25 }
0x1cd5   :  { %3450 = vrot.lane.b32.xlu0 %v5534_v58, %s6423_s25  ;;  %3645 = vperm.xlu1 %6040, %v7440_v20  }
0x1cd9   :  { %3650 = vperm.xlu0 %6041, %v7447_v4   ;;  %3640 = vperm.xlu1 %6040, %v7452_v28   ;;  %v3462_v4 = vmul.f32 %v7471_v5, %v7596_v13 }
0x1cdd   :  { %3635 = vperm.xlu0 %6041, %v7459_v10   ;;  %v3460_v10 = vmul.f32 %v7471_v5, %v7602_v16 }
0x1d3f   :  { %v3445_v41 = vpop.permute.xlu1 %3444 }
0x1d40   :  { %3456 = vst.msk [vmem:[#allocation2] sm:$0xf] %vm274_vm2, %v3445_v41 }
0x1d43   :  { %v3447_v38 = vpop.permute.xlu0 %3446  ;;  %v3449_v37 = vpop.permute.xlu1 %3448 }
0x1d44   :  { %3457 = vst.msk [vmem:[#allocation2 + $0x4] sm:$0xf] %vm274_vm2, %v3447_v38  ;;  %3458 = vst.msk [vmem:[#allocation2 + $0x8] sm:$0xf] %vm274_vm2, %v3449_v37 }
0x1d47   :  { %v3451_v6 = vpop.permute.xlu0 %3450 }
0x1d48   :  { %3459 = vst.msk [vmem:[#allocation2 + $0xc] sm:$0xf] %vm274_vm2, %v3451_v6 }
0x1d4b   :  { %v6102_v42 = vld [vmem:[#allocation2] sm:$0xff]  }
0x1d4c   :  { %5923 = vmatprep.mubr.msk.bf16.mxu1 %vm333_vm3, %v6102_v42 }
0x1d4f   :  { %v6103_v20 = vld [vmem:[#allocation2 + $0x8] sm:$0xff]  }
0x1d50   :  { %5924 = vmatmul.mubr.msk.bf16.vlgmr.msra.gmra.mxu1 %vm333_vm3, %v6103_v20  ;;  %v3646_v15 = vpop.permute.xlu1 %3645 }
0x1d54   :  { %v3651_v51 = vpop.permute.xlu0 %3650  ;;  %v7683_v24 = vpop.permute.xlu1 %3640 }
0x1d58   :  { %v3636_v48 = vpop.permute.xlu0 %3635 }
0x1e10   :  { %v5925_v28 = vpop.f32.mrf.mxu1 }
0x1e11   :  { %v3567_v17 = vadd.f32 %v5925_v28, %v3462_v4 }
0x1e12   :  { %v3550_v56 = vpop.f32.mrf.mxu1 }
0x1e13   :  { %v3571_v35 = vadd.f32 %v7480_v57, %v3567_v17  ;;  %v3565_v62 = vadd.f32 %v3550_v56, %v3460_v10 }
0x1e14   :  { %v5926_v19 = vpop.f32.mrf.mxu1 }
0x1e15   :  { %v3575_v61 = vmul.f32 -1.0, %v3571_v35  ;;  %v3569_v14 = vadd.f32 %v7480_v57, %v3565_v62  ;;  %v3568_v13 = vadd.f32 %v5926_v19, %v3463_v31 }
0x1e16   :  { %v3553_v50 = vpop.f32.mrf.mxu1 }
0x1e17   :  { %v3581_v21 = vmul.f32 1.442695, %v3575_v61  ;;  %v3573_v63 = vmul.f32 -1.0, %v3569_v14  ;;  %v3572_v16 = vadd.f32 %v7480_v57, %v3568_v13  ;;  %v3566_v47 = vadd.f32 %v3553_v50, %v3461_v46  ;;  %v7697_v13 = vld [vmem:[%s8158_s1 + $0x8] sm:$0xff]  }
0x1e19   :  { %6308 = vpow2.f32 %v3581_v21  ;;  %v3577_v43 = vmul.f32 1.442695, %v3573_v63  ;;  %v3576_v23 = vmul.f32 -1.0, %v3572_v16  ;;  %v3570_v11 = vadd.f32 %v7480_v57, %v3566_v47  ;;  %v6106_v57 = vld [vmem:[%s8158_s1] sm:$0xff]  }
0x1e1a   :  { %5931 = vmatprep.mubr.msk.bf16.mxu0 %vm81_vm0, %v6106_v57  ;;  %5947 = vmatprep.mubr.msk.bf16.mxu1 %vm81_vm0, %v6106_v57 }
0x1e1b   :  { %6310 = vpow2.f32 %v3577_v43  ;;  %v3583_v7 = vmul.f32 1.442695, %v3576_v23  ;;  %v3574_v34 = vmul.f32 -1.0, %v3570_v11  ;;  %v3780_v43 = vsub.f32 1.0, %v7622_v55 }
0x1e1d   :  { %6312 = vpow2.f32 %v3583_v7  ;;  %v3579_v5 = vmul.f32 1.442695, %v3574_v34  ;;  %v3778_v34 = vsub.f32 1.0, %v7625_v12 }
0x1e1f   :  { %6314 = vpow2.f32 %v3579_v5 }
0x1e26   :  { %v6309_v27 = vpop.eup %6308 }
0x1e27   :  { %3593 = vrot.lane.b32.xlu1 %v6309_v27, %s6424_s14  ;;  %v3627_v3 = vmul.f32 %v6309_v27, %v3571_v35 }
0x1e28   :  { %v6311_v44 = vpop.eup %6310 }
0x1e29   :  { %3589 = vrot.lane.b32.xlu0 %v6311_v44, %s6424_s14  ;;  %v3625_v29 = vmul.f32 %v6311_v44, %v3569_v14  ;;  %v3631_v59 = vmul.f32 %v6309_v27, %v3627_v3  ;;  %v3781_v3 = vsub.f32 1.0, %v7635_v0 }
0x1e2a   :  { %v6313_v18 = vpop.eup %6312 }
0x1e2b   :  { %3595 = vrot.lane.b32.xlu1 %v6313_v18, %s6424_s14  ;;  %v3628_v9 = vmul.f32 %v6313_v18, %v3572_v16  ;;  %v3629_v33 = vmul.f32 %v6311_v44, %v3625_v29  ;;  %v3655_v52 = vmul.f32 %v3646_v15, %v3631_v59  ;;  %v3806_v44 = vmul.f32 %v7625_v12, %v7526_v40 }
0x1e2c   :  { %v6315_v22 = vpop.eup %6314 }
0x1e2d   :  { %v3632_v1 = vmul.f32 %v6313_v18, %v3628_v9  ;;  %v3626_v60 = vmul.f32 %v6315_v22, %v3570_v11  ;;  %v3653_v54 = vmul.f32 %v3636_v48, %v3629_v33  ;;  %v5541_v6 = vpack.c.bf16 %v3655_v52, %v3655_v52  ;;  %v6109_v52 = vld [vmem:[%s8159_s2] sm:$0xff]  }
0x1e2e   :  { %v3808_v18 = vmul.f32 %v7622_v55, %v7524_v32  ;;  %v6430_v32 = vmov 6  }
0x1e2f   :  { %3591 = vrot.lane.b32.xlu1 %v6315_v22, %s6424_s14  ;;  %v3656_v37 = vmul.f32 %v3651_v51, %v3632_v1  ;;  %v3630_v42 = vmul.f32 %v6315_v22, %v3626_v60  ;;  %v5539_v10 = vpack.c.bf16 %v3653_v54, %v3653_v54  ;;  %6042 = vset.pattern.permute.xlu0 %v6430_v32 }
0x1e30   :  { %6043 = vset.pattern.permute.xlu1 %v6430_v32 }
0x1e31   :  { %v5542_v56 = vpack.c.bf16 %v3656_v37, %v3656_v37  ;;  %v3654_v31 = vmul.f32 %v7683_v24, %v3630_v42 }
0x1e33   :  { %v5540_v46 = vpack.c.bf16 %v3654_v31, %v3654_v31 }
0x1e99   :  { %v3594_v39 = vpop.permute.xlu1 %3593 }
0x1e9a   :  { %v3603_v36 = vmul.f32 %v3594_v39, %v3571_v35 }
0x1e9b   :  { %v3590_v58 = vpop.permute.xlu0 %3589 }
0x1e9c   :  { %v5537_v41 = vpack.c.bf16 %v3603_v36, %v3603_v36  ;;  %v3601_v38 = vmul.f32 %v3590_v58, %v3569_v14  ;;  %v3779_v36 = vsub.f32 1.0, %v7640_v45 }
0x1e9d   :  { %v3596_v20 = vpop.permute.xlu1 %3595 }
0x1e9e   :  { %3623 = vst.msk [vmem:[#allocation2 + $0x8] sm:$0xf] %vm257_vm1, %v5537_v41  ;;  %v5535_v4 = vpack.c.bf16 %v3601_v38, %v3601_v38  ;;  %v3604_v28 = vmul.f32 %v3596_v20, %v3572_v16  ;;  %v3774_v41 = vmul.f32 %v7625_v12, %v7547_v25  ;;  %v3775_v38 = vmul.f32 %v7640_v45, %v7549_v49 }
0x1e9f   :  { %3675 = vst.msk [vmem:[#allocation2 + $0x8] sm:$0xf] %vm274_vm2, %v5541_v6  ;;  %v3777_v25 = vmul.f32 %v7635_v0, %v7560_v26  ;;  %v7759_v26 = vld [vmem:[%s8157_s0 + $0x8] sm:$0xff] }
0x1ea0   :  { %3621 = vst.msk [vmem:[#allocation2] sm:$0xf] %vm257_vm1, %v5535_v4  ;;  %v5538_v17 = vpack.c.bf16 %v3604_v28, %v3604_v28  ;;  %v3776_v4 = vmul.f32 %v7622_v55, %v7558_v53  ;;  %v7750_v53 = vld [vmem:[%s8157_s0 + $0x10] sm:$0xff] }
0x1ea1   :  { %3673 = vst.msk [vmem:[#allocation2] sm:$0xf] %vm274_vm2, %v5539_v10  ;;  %v3592_v35 = vpop.permute.xlu1 %3591 }
0x1ea2   :  { %3624 = vst.msk [vmem:[#allocation2 + $0xc] sm:$0xf] %vm257_vm1, %v5538_v17  ;;  %v3602_v62 = vmul.f32 %v3592_v35, %v3570_v11  ;;  %v3807_v35 = vmul.f32 %v7640_v45, %v7571_v30 }
0x1ea3   :  { %3676 = vst.msk [vmem:[#allocation2 + $0xc] sm:$0xf] %vm274_vm2, %v5542_v56 }
0x1ea4   :  { %v5536_v19 = vpack.c.bf16 %v3602_v62, %v3602_v62  ;;  %v7773_v62 = vld [vmem:[%s8157_s0] sm:$0xff] }
0x1ea6   :  { %3622 = vst.msk [vmem:[#allocation2 + $0x4] sm:$0xf] %vm257_vm1, %v5536_v19 }
0x1ea7   :  { %3674 = vst.msk [vmem:[#allocation2 + $0x4] sm:$0xf] %vm274_vm2, %v5540_v46 }
0x1eaa   :  { %v6104_v61 = vld [vmem:[#allocation2 + $0x8] sm:$0xff]  }
0x1eab   :  { %5927 = vmatprep.subr.bf16.mxu0 %v6104_v61 }
0x1eac   :  { %5928 = vmatpush3.bf16.msra.mxu0 %v6104_v61 }
0x1eae   :  { %v6105_v14 = vld [vmem:[#allocation2] sm:$0xff]  }
0x1eaf   :  { %5929 = vmatprep.subr.bf16.mxu0 %v6105_v14 }
0x1eb0   :  { %5930 = vmatpush3.bf16.msra.mxu0 %v6105_v14 }
0x1eb3   :  { %5932 = vmatmul.mubr.msk.bf16.vlgmr.msra.gmra.mxu0 %vm81_vm0, %v7697_v13 }
0x1f73   :  { %v5933_v50 = vpop.f32.mrf.mxu0 }
0x1f74   :  { %v3768_v21 = vmul.f32 %v5933_v50, %v3646_v15 }
0x1f75   :  { %v3747_v63 = vpop.f32.mrf.mxu0 }
0x1f76   :  { %v3772_v16 = vmax.f32 %v3768_v21, 0.0  ;;  %6316 = vtanh.f32 %v3747_v63  ;;  %v3766_v47 = vmul.f32 %v3747_v63, %v3636_v48 }
0x1f77   :  { %v5934_v23 = vpop.f32.mrf.mxu0  ;;  %6318 = vtanh.f32 %v5933_v50  ;;  %v7805_v50 = vld [vmem:[%s8161_s4] ss:$0 sm:$0xff] }
0x1f78   :  { %v3770_v11 = vmax.f32 %v3766_v47, 0.0  ;;  %v3769_v7 = vmul.f32 %v5934_v23, %v3651_v51  ;;  %v3812_v5 = vmul.f32 %v3780_v43, %v3772_v16  ;;  %v3809_v51 = vmul.f32 %v7635_v0, %v7530_v8  ;;  %v6108_v8 = vld [vmem:[%s8159_s2 + $0x8] sm:$0xff]   ;;  %v7764_v0 = vld [vmem:[%s8157_s0 + $0x18] sm:$0xff] }
0x1f79   :  { %v3750_v27 = vpop.f32.mrf.mxu0  ;;  %5935 = vmatprep.subr.bf16.mxu0 %v6108_v8 }
0x1f7a   :  { %v3773_v22 = vmax.f32 %v3769_v7, 0.0  ;;  %6320 = vtanh.f32 %v3750_v27  ;;  %v3810_v57 = vmul.f32 %v3778_v34, %v3770_v11  ;;  %v7708_v15 = vadd.f32 %v3812_v5, %v3808_v18  ;;  %5936 = vmatpush3.bf16.msra.mxu0 %v6108_v8 }
0x1f7b   :  { %6322 = vtanh.f32 %v5934_v23  ;;  %5937 = vmatprep.subr.bf16.mxu0 %v6109_v52  ;;  %v3767_v10 = vmul.f32 %v3750_v27, %v7683_v24 }
0x1f7c   :  { %v7710_v29 = vadd.f32 %v3810_v57, %v3806_v44  ;;  %v3813_v9 = vmul.f32 %v3781_v3, %v3773_v22 }
0x1f7d   :  { %v3771_v55 = vmax.f32 %v3767_v10, 0.0 }
0x1f7e   :  { %v7714_v59 = vadd.f32 %v3813_v9, %v3809_v51  ;;  %5938 = vmatpush3.bf16.msra.mxu0 %v6109_v52  ;;  %v7824_v51 = vld [vmem:[%s8161_s4 + $0x1] ss:$0 sm:$0xff] }
0x1f7f   :  { %v3811_v31 = vmul.f32 %v3779_v36, %v3771_v55  ;;  %v6110_v55 = vld [vmem:[%s8160_s3 + $0x18] sm:$0xff]  }
0x1f80   :  { %5951 = vmatprep.subr.bf16.mxu0 %v6110_v55 }
0x1f81   :  { %v7775_v19 = vadd.f32 %v3811_v31, %v3807_v35  ;;  %v6111_v31 = vld [vmem:[%s8160_s3 + $0x10] sm:$0xff]  }
0x1f83   :  { %v6317_v40 = vpop.eup %6316 }
0x1f84   :  { %3786 = vrot.lane.b32.xlu0 %v6317_v40, %s6423_s25  ;;  %v6319_v48 = vpop.eup %6318 }
0x1f87   :  { %v6321_v33 = vpop.eup %6320 }
0x1f88   :  { %3790 = vrot.lane.b32.xlu0 %v6319_v48, %s6423_s25  ;;  %3788 = vrot.lane.b32.xlu1 %v6321_v33, %s6423_s25  ;;  %v6323_v1 = vpop.eup %6322 }
0x1f8c   :  { %3792 = vrot.lane.b32.xlu1 %v6323_v1, %s6423_s25 }
0x1ff6   :  { %v3787_v60 = vpop.permute.xlu0 %3786 }
0x1ff7   :  { %v3798_v39 = vmul.f32 %v3787_v60, %v3778_v34 }
0x1ff9   :  { %v7731_v6 = vadd.f32 %v3798_v39, %v3774_v41 }
0x1ffa   :  { %v3791_v54 = vpop.permute.xlu0 %3790  ;;  %v3789_v58 = vpop.permute.xlu1 %3788 }
0x1ffb   :  { %v3799_v37 = vmul.f32 %v3789_v58, %v3779_v36  ;;  %v3800_v42 = vmul.f32 %v3791_v54, %v3780_v43 }
0x1ffd   :  { %v7733_v20 = vadd.f32 %v3799_v37, %v3775_v38  ;;  %v7742_v49 = vadd.f32 %v3800_v42, %v3776_v4 }
0x1ffe   :  { %v3793_v28 = vpop.permute.xlu1 %3792 }
0x1fff   :  { %v3850_v17 = vpack.c.bf16 %v7733_v20, %v7731_v6  ;;  %v3801_v12 = vmul.f32 %v3793_v28, %v3781_v3 }
0x2001   :  { %v7744_v56 = vadd.f32 %v3801_v12, %v3777_v25  ;;  %3858 = vrot.lane.b32.xlu0 %v3850_v17, %s6424_s14 }
0x2003   :  { %v3851_v24 = vpack.c.bf16 %v7744_v56, %v7742_v49 }
0x2005   :  { %3838 = vperm.xlu0 %6042, %v7750_v53   ;;  %3860 = vrot.lane.b32.xlu1 %v3851_v24, %s6424_s14 }
0x2009   :  { %3833 = vperm.xlu0 %6042, %v7759_v26   ;;  %3843 = vperm.xlu1 %6043, %v7764_v0  }
0x200d   :  { %4054 = vrot.lane.b32.xlu0 %v7775_v19, %s6424_s14  ;;  %3828 = vperm.xlu1 %6043, %v7773_v62  }
0x200e   :  { %6045 = vset.pattern.permute.xlu0 %v6422_v2 }
0x2011   :  { %4058 = vrot.lane.b32.xlu0 %v7714_v59, %s6424_s14  ;;  %4052 = vrot.lane.b32.xlu1 %v7710_v29, %s6424_s14 }
0x2012   :  { %6044 = vset.pattern.permute.xlu1 %v6422_v2 }
0x2015   :  { %4014 = vrot.lane.b32.xlu0 %v7733_v20, %s6424_s14  ;;  %4056 = vrot.lane.b32.xlu1 %v7708_v15, %s6424_s14 }
0x2019   :  { %4018 = vrot.lane.b32.xlu0 %v7744_v56, %s6424_s14  ;;  %4012 = vrot.lane.b32.xlu1 %v7731_v6, %s6424_s14 }
0x201d   :  { %4016 = vrot.lane.b32.xlu1 %v7742_v49, %s6424_s14 }
0x2073   :  { %v3859_v30 = vpop.permute.xlu0 %3858 }
0x2074   :  { %5939 = vmatprep.mubr.msk.bf16.mxu0 %vm81_vm0, %v3859_v30 }
0x2077   :  { %v3861_v45 = vpop.permute.xlu1 %3860 }
0x2078   :  { %5940 = vmatmul.mubr.msk.bf16.vlgmr.msra.gmra.mxu0 %vm81_vm0, %v3861_v45 }
0x2079   :  { %5952 = vmatpush3.bf16.msra.mxu0 %v6110_v55 }
0x207a   :  { %5953 = vmatprep.subr.bf16.mxu0 %v6111_v31 }
0x207d   :  { %5954 = vmatpush3.bf16.msra.mxu0 %v6111_v31 }
0x2080   :  { %v7800_v61 = vpop.permute.xlu0 %3838 }
0x2081   :  { %v3848_v21 = vmul.f32 %v7805_v50, %v7800_v61 }
0x2084   :  { %v7798_v46 = vpop.permute.xlu1 %3843  ;;  %v7815_v23 = vpop.permute.xlu0 %3833 }
0x2085   :  { %v3849_v63 = vmul.f32 %v7805_v50, %v7798_v46  ;;  %v3847_v7 = vmul.f32 %v7805_v50, %v7815_v23 }
0x2088   :  { %v7811_v16 = vpop.permute.xlu1 %3828  ;;  %v4055_v38 = vpop.permute.xlu0 %4054 }
0x2089   :  { %v3846_v43 = vmul.f32 %v7805_v50, %v7811_v16 }
0x208c   :  { %v4053_v36 = vpop.permute.xlu1 %4052  ;;  %v4059_v25 = vpop.permute.xlu0 %4058 }
0x2090   :  { %v4057_v4 = vpop.permute.xlu1 %4056  ;;  %v4015_v24 = vpop.permute.xlu0 %4014 }
0x2094   :  { %v4013_v12 = vpop.permute.xlu1 %4012 }
0x2098   :  { %v4017_v30 = vpop.permute.xlu1 %4016 }
0x2138   :  { %v5941_v14 = vpop.f32.mrf.mxu0 }
0x2139   :  { %v3931_v34 = vadd.f32 %v5941_v14, %v3848_v21  ;;  %v6112_v21 = vld [vmem:[%s8160_s3 + $0x8] sm:$0xff]  }
0x213a   :  { %v3914_v47 = vpop.f32.mrf.mxu0  ;;  %5955 = vmatprep.subr.bf16.mxu0 %v6112_v21 }
0x213b   :  { %v3929_v44 = vadd.f32 %v3914_v47, %v3846_v43  ;;  %5956 = vmatpush3.bf16.msra.mxu0 %v6112_v21 }
0x213c   :  { %v5942_v11 = vpop.f32.mrf.mxu0 }
0x213d   :  { %v3932_v5 = vadd.f32 %v5942_v11, %v3849_v63  ;;  %v6113_v63 = vld [vmem:[%s8160_s3] sm:$0xff]  }
0x213e   :  { %v3917_v27 = vpop.f32.mrf.mxu0  ;;  %5957 = vmatprep.subr.bf16.mxu0 %v6113_v63 }
0x213f   :  { %v3934_v18 = vpack.c.bf16 %v3932_v5, %v3931_v34  ;;  %v3930_v22 = vadd.f32 %v3917_v27, %v3847_v7  ;;  %v4019_v34 = vpop.permute.xlu0 %4018  ;;  %5958 = vmatpush3.bf16.msra.mxu0 %v6113_v63 }
0x2141   :  { %v3933_v57 = vpack.c.bf16 %v3930_v22, %v3929_v44  ;;  %5943 = vmatprep.subr.bf16.mxu1 %v3934_v18 }
0x2142   :  { %5944 = vmatpush3.bf16.msra.mxu1 %v3934_v18 }
0x2143   :  { %5945 = vmatprep.subr.bf16.mxu1 %v3933_v57 }
0x2146   :  { %5946 = vmatpush3.bf16.msra.mxu1 %v3933_v57 }
0x2149   :  { %5948 = vmatmul.mubr.msk.bf16.vlgmr.msra.gmra.mxu1 %vm81_vm0, %v7697_v13 }
0x2209   :  { %v5949_v3 = vpop.f32.mrf.mxu1 }
0x220a   :  { %v3978_v9 = vadd.f32 %v7824_v51, %v5949_v3 }
0x220b   :  { %v3969_v40 = vpop.f32.mrf.mxu1 }
0x220c   :  { %v5379_v32 = vmul.f32 -1.442695, %v3978_v9  ;;  %v3970_v48 = vadd.f32 %v7824_v51, %v3969_v40 }
0x220d   :  { %v5950_v33 = vpop.f32.mrf.mxu1 }
0x220e   :  { %6324 = vpow2.f32 %v5379_v32  ;;  %v5377_v1 = vmul.f32 -1.442695, %v3970_v48  ;;  %v3981_v8 = vadd.f32 %v7824_v51, %v5950_v33 }
0x220f   :  { %v3972_v52 = vpop.f32.mrf.mxu1 }
0x2210   :  { %6326 = vpow2.f32 %v5377_v1  ;;  %v5380_v13 = vmul.f32 -1.442695, %v3981_v8  ;;  %v3973_v60 = vadd.f32 %v7824_v51, %v3972_v52  ;;  %v7868_v1 = vld [vmem:[%s8162_s5 + $0x10] sm:$0xff]  ;;  %v7875_v52 = vld [vmem:[%s8162_s5 + $0x18] sm:$0xff] }
0x2212   :  { %6328 = vpow2.f32 %v5380_v13  ;;  %v5378_v39 = vmul.f32 -1.442695, %v3973_v60  ;;  %v7880_v13 = vld [vmem:[%s8162_s5 + $0x8] sm:$0xff]  ;;  %v7887_v60 = vld [vmem:[%s8162_s5] sm:$0xff] }
0x2214   :  { %6330 = vpow2.f32 %v5378_v39 }
0x221b   :  { %v6325_v54 = vpop.eup %6324 }
0x221c   :  { %v3998_v58 = vadd.f32 1.0, %v6325_v54 }
0x221d   :  { %v6327_v41 = vpop.eup %6326 }
0x221e   :  { %6332 = vrcp.f32 %v3998_v58  ;;  %v3996_v37 = vadd.f32 1.0, %v6327_v41 }
0x221f   :  { %v6329_v42 = vpop.eup %6328 }
0x2220   :  { %6334 = vrcp.f32 %v3996_v37  ;;  %v3999_v28 = vadd.f32 1.0, %v6329_v42  ;;  %v7899_v37 = vld [vmem:[%s8161_s4 + $0x2] ss:$0 sm:$0xff] }
0x2221   :  { %v6331_v10 = vpop.eup %6330  ;;  %v4098_v42 = vmul.f32 %v7899_v37, %v7800_v61  ;;  %v4097_v61 = vmul.f32 %v7899_v37, %v7815_v23 }
0x2222   :  { %6336 = vrcp.f32 %v3999_v28  ;;  %v3997_v17 = vadd.f32 1.0, %v6331_v10  ;;  %v4096_v28 = vmul.f32 %v7899_v37, %v7811_v16 }
0x2224   :  { %6338 = vrcp.f32 %v3997_v17 }
0x222b   :  { %v7836_v35 = vpop.eup %6332 }
0x222c   :  { %v4026_v45 = vmul.f32 %v7836_v35, %v4017_v30  ;;  %v4066_v18 = vmul.f32 %v7836_v35, %v4057_v4 }
0x222d   :  { %v7839_v14 = vpop.eup %6334 }
0x222e   :  { %v5545_v47 = vpack.c.bf16 %v4026_v45, %v4026_v45  ;;  %v4024_v43 = vmul.f32 %v7839_v14, %v4013_v12  ;;  %v4064_v11 = vmul.f32 %v7839_v14, %v4053_v36  ;;  %v5549_v48 = vpack.c.bf16 %v4066_v18, %v4066_v18  ;;  %v7910_v12 = vld [vmem:[%s8161_s4 + $0x3] ss:$0 sm:$0xff] }
0x222f   :  { %v7849_v7 = vpop.eup %6336 }
0x2230   :  { %4046 = vst.msk [vmem:[#allocation2 + $0x8] sm:$0xf] %vm257_vm1, %v5545_v47  ;;  %v5543_v5 = vpack.c.bf16 %v4024_v43, %v4024_v43  ;;  %v4027_v27 = vmul.f32 %v7849_v7, %v4019_v34  ;;  %v5547_v44 = vpack.c.bf16 %v4064_v11, %v4064_v11  ;;  %v4067_v33 = vmul.f32 %v7849_v7, %v4059_v25 }
0x2231   :  { %v7854_v22 = vpop.eup %6338  ;;  %v4099_v25 = vmul.f32 %v7899_v37, %v7798_v46 }
0x2232   :  { %4044 = vst.msk [vmem:[#allocation2] sm:$0xf] %vm257_vm1, %v5543_v5  ;;  %v5546_v57 = vpack.c.bf16 %v4027_v27, %v4027_v27  ;;  %v4025_v3 = vmul.f32 %v7854_v22, %v4015_v24  ;;  %4080 = vrot.lane.b32.xlu1 %v5547_v44, %s6423_s25  ;;  %v4065_v9 = vmul.f32 %v7854_v22, %v4055_v38 }
0x2233   :  { %v5550_v8 = vpack.c.bf16 %v4067_v33, %v4067_v33 }
0x2234   :  { %4047 = vst.msk [vmem:[#allocation2 + $0xc] sm:$0xf] %vm257_vm1, %v5546_v57  ;;  %v5544_v40 = vpack.c.bf16 %v4025_v3, %v4025_v3  ;;  %v5548_v32 = vpack.c.bf16 %v4065_v9, %v4065_v9 }
0x2236   :  { %4045 = vst.msk [vmem:[#allocation2 + $0x4] sm:$0xf] %vm257_vm1, %v5544_v40  ;;  %4082 = vrot.lane.b32.xlu0 %v5548_v32, %s6423_s25  ;;  %4084 = vrot.lane.b32.xlu1 %v5549_v48, %s6423_s25  ;;  %v6118_v40 = vld [vmem:[%s8158_s1] sm:$0xff]  }
0x2237   :  { %5967 = vmatprep.mubr.msk.bf16.mxu1 %vm81_vm0, %v6118_v40 }
0x223a   :  { %4086 = vrot.lane.b32.xlu0 %v5550_v8, %s6423_s25  ;;  %4281 = vperm.xlu1 %6044, %v7868_v1  }
0x223e   :  { %4286 = vperm.xlu0 %6045, %v7875_v52   ;;  %4276 = vperm.xlu1 %6044, %v7880_v13  }
0x2242   :  { %4271 = vperm.xlu0 %6045, %v7887_v60  }
0x22a4   :  { %v4081_v39 = vpop.permute.xlu1 %4080 }
0x22a5   :  { %4092 = vst.msk [vmem:[#allocation2] sm:$0xf] %vm274_vm2, %v4081_v39 }
0x22a8   :  { %v4083_v36 = vpop.permute.xlu0 %4082  ;;  %v4085_v54 = vpop.permute.xlu1 %4084 }
0x22a9   :  { %4093 = vst.msk [vmem:[#allocation2 + $0x4] sm:$0xf] %vm274_vm2, %v4083_v36  ;;  %4094 = vst.msk [vmem:[#allocation2 + $0x8] sm:$0xf] %vm274_vm2, %v4085_v54 }
0x22ac   :  { %v4087_v58 = vpop.permute.xlu0 %4086 }
0x22ad   :  { %4095 = vst.msk [vmem:[#allocation2 + $0xc] sm:$0xf] %vm274_vm2, %v4087_v58 }
0x22b0   :  { %v6114_v41 = vld [vmem:[#allocation2] sm:$0xff]  }
0x22b1   :  { %5959 = vmatprep.mubr.msk.bf16.mxu0 %vm333_vm3, %v6114_v41 }
0x22b4   :  { %v6115_v38 = vld [vmem:[#allocation2 + $0x8] sm:$0xff]  }
0x22b5   :  { %5960 = vmatmul.mubr.msk.bf16.vlgmr.msra.gmra.mxu0 %vm333_vm3, %v6115_v38  ;;  %v4282_v33 = vpop.permute.xlu1 %4281 }
0x22b6   :  { %5983 = vmatprep.mubr.msk.bf16.mxu0 %vm81_vm0, %v6118_v40 }
0x22b9   :  { %v4287_v32 = vpop.permute.xlu0 %4286  ;;  %v7927_v54 = vpop.permute.xlu1 %4276 }
0x22bd   :  { %v4272_v58 = vpop.permute.xlu0 %4271 }
0x2375   :  { %v5961_v4 = vpop.f32.mrf.mxu0 }
0x2376   :  { %v4203_v10 = vadd.f32 %v5961_v4, %v4098_v42 }
0x2377   :  { %v4186_v17 = vpop.f32.mrf.mxu0 }
0x2378   :  { %v4207_v55 = vadd.f32 %v7910_v12, %v4203_v10  ;;  %v4201_v24 = vadd.f32 %v4186_v17, %v4096_v28 }
0x2379   :  { %v5962_v31 = vpop.f32.mrf.mxu0 }
0x237a   :  { %v4211_v30 = vmul.f32 -1.0, %v4207_v55  ;;  %v4205_v16 = vadd.f32 %v7910_v12, %v4201_v24  ;;  %v4204_v45 = vadd.f32 %v5962_v31, %v4099_v25 }
0x237b   :  { %v4189_v21 = vpop.f32.mrf.mxu0 }
0x237c   :  { %v4217_v63 = vmul.f32 1.442695, %v4211_v30  ;;  %v4209_v47 = vmul.f32 -1.0, %v4205_v16  ;;  %v4208_v46 = vadd.f32 %v7910_v12, %v4204_v45  ;;  %v4202_v43 = vadd.f32 %v4189_v21, %v4097_v61 }
0x237e   :  { %6340 = vpow2.f32 %v4217_v63  ;;  %v4213_v11 = vmul.f32 1.442695, %v4209_v47  ;;  %v4212_v34 = vmul.f32 -1.0, %v4208_v46  ;;  %v4206_v5 = vadd.f32 %v7910_v12, %v4202_v43 }
0x2380   :  { %6342 = vpow2.f32 %v4213_v11  ;;  %v4219_v27 = vmul.f32 1.442695, %v4212_v34  ;;  %v4210_v44 = vmul.f32 -1.0, %v4206_v5 }
0x2382   :  { %6344 = vpow2.f32 %v4219_v27  ;;  %v4215_v23 = vmul.f32 1.442695, %v4210_v44 }
0x2384   :  { %6346 = vpow2.f32 %v4215_v23 }
0x238b   :  { %v6341_v18 = vpop.eup %6340 }
0x238c   :  { %4229 = vrot.lane.b32.xlu1 %v6341_v18, %s6424_s14  ;;  %v4263_v48 = vmul.f32 %v6341_v18, %v4207_v55 }
0x238d   :  { %v6343_v57 = vpop.eup %6342 }
0x238e   :  { %4225 = vrot.lane.b32.xlu0 %v6343_v57, %s6424_s14  ;;  %v4261_v8 = vmul.f32 %v6343_v57, %v4205_v16  ;;  %v4267_v36 = vmul.f32 %v6341_v18, %v4263_v48 }
0x238f   :  { %v6345_v3 = vpop.eup %6344 }
0x2390   :  { %4231 = vrot.lane.b32.xlu1 %v6345_v3, %s6424_s14  ;;  %v4264_v39 = vmul.f32 %v6345_v3, %v4208_v46  ;;  %v4265_v41 = vmul.f32 %v6343_v57, %v4261_v8  ;;  %v4291_v42 = vmul.f32 %v4282_v33, %v4267_v36  ;;  %v7941_v57 = vld [vmem:[%s8158_s1 + $0x8] sm:$0xff]   ;;  %v4416_v8 = vsub.f32 1.0, %v7836_v35 }
0x2391   :  { %v6347_v9 = vpop.eup %6346 }
0x2392   :  { %v4268_v38 = vmul.f32 %v6345_v3, %v4264_v39  ;;  %v4262_v4 = vmul.f32 %v6347_v9, %v4206_v5  ;;  %v4289_v17 = vmul.f32 %v4272_v58, %v4265_v41  ;;  %v5557_v30 = vpack.c.bf16 %v4291_v42, %v4291_v42 }
0x2394   :  { %4227 = vrot.lane.b32.xlu1 %v6347_v9, %s6424_s14  ;;  %v4292_v61 = vmul.f32 %v4287_v32, %v4268_v38  ;;  %v4266_v45 = vmul.f32 %v6347_v9, %v4262_v4  ;;  %v5555_v43 = vpack.c.bf16 %v4289_v17, %v4289_v17  ;;  %v4414_v38 = vsub.f32 1.0, %v7839_v14 }
0x2396   :  { %v5558_v34 = vpack.c.bf16 %v4292_v61, %v4292_v61 }
0x23fe   :  { %v4230_v28 = vpop.permute.xlu1 %4229 }
0x23ff   :  { %v4239_v10 = vmul.f32 %v4230_v28, %v4207_v55  ;;  %v4290_v55 = vmul.f32 %v7927_v54, %v4266_v45  ;;  %v4442_v28 = vmul.f32 %v7839_v14, %v7710_v29 }
0x2400   :  { %v4226_v25 = vpop.permute.xlu0 %4225 }
0x2401   :  { %v5553_v24 = vpack.c.bf16 %v4239_v10, %v4239_v10  ;;  %v4237_v31 = vmul.f32 %v4226_v25, %v4205_v16  ;;  %v5556_v23 = vpack.c.bf16 %v4290_v55, %v4290_v55 }
0x2402   :  { %v4232_v21 = vpop.permute.xlu1 %4231 }
0x2403   :  { %4259 = vst.msk [vmem:[#allocation2 + $0x8] sm:$0xf] %vm257_vm1, %v5553_v24  ;;  %v5551_v63 = vpack.c.bf16 %v4237_v31, %v4237_v31  ;;  %v4240_v47 = vmul.f32 %v4232_v21, %v4208_v46 }
0x2404   :  { %4311 = vst.msk [vmem:[#allocation2 + $0x8] sm:$0xf] %vm274_vm2, %v5557_v30 }
0x2405   :  { %4257 = vst.msk [vmem:[#allocation2] sm:$0xf] %vm257_vm1, %v5551_v63  ;;  %v5554_v11 = vpack.c.bf16 %v4240_v47, %v4240_v47  ;;  %v6121_v63 = vld [vmem:[%s8159_s2] sm:$0xff]  }
0x2406   :  { %4309 = vst.msk [vmem:[#allocation2] sm:$0xf] %vm274_vm2, %v5555_v43  ;;  %v4228_v16 = vpop.permute.xlu1 %4227 }
0x2407   :  { %4260 = vst.msk [vmem:[#allocation2 + $0xc] sm:$0xf] %vm257_vm1, %v5554_v11  ;;  %v4238_v27 = vmul.f32 %v4228_v16, %v4206_v5  ;;  %v4415_v11 = vsub.f32 1.0, %v7854_v22  ;;  %v4410_v16 = vmul.f32 %v7839_v14, %v7731_v6  ;;  %v4413_v6 = vmul.f32 %v7849_v7, %v7744_v56 }
0x2408   :  { %4312 = vst.msk [vmem:[#allocation2 + $0xc] sm:$0xf] %vm274_vm2, %v5558_v34 }
0x2409   :  { %v5552_v44 = vpack.c.bf16 %v4238_v27, %v4238_v27  ;;  %v4411_v27 = vmul.f32 %v7854_v22, %v7733_v20 }
0x240b   :  { %4258 = vst.msk [vmem:[#allocation2 + $0x4] sm:$0xf] %vm257_vm1, %v5552_v44 }
0x240c   :  { %4310 = vst.msk [vmem:[#allocation2 + $0x4] sm:$0xf] %vm274_vm2, %v5556_v23 }
0x240f   :  { %v6116_v46 = vld [vmem:[#allocation2 + $0x8] sm:$0xff]  }
0x2410   :  { %5963 = vmatprep.subr.bf16.mxu1 %v6116_v46 }
0x2411   :  { %5964 = vmatpush3.bf16.msra.mxu1 %v6116_v46 }
0x2413   :  { %v6117_v18 = vld [vmem:[#allocation2] sm:$0xff]  }
0x2414   :  { %5965 = vmatprep.subr.bf16.mxu1 %v6117_v18 }
0x2415   :  { %5966 = vmatpush3.bf16.msra.mxu1 %v6117_v18 }
0x2418   :  { %5968 = vmatmul.mubr.msk.bf16.vlgmr.msra.gmra.mxu1 %vm81_vm0, %v7941_v57 }
0x24d8   :  { %v5969_v5 = vpop.f32.mrf.mxu1 }
0x24d9   :  { %v4404_v3 = vmul.f32 %v5969_v5, %v4282_v33  ;;  %v4444_v33 = vmul.f32 %v7836_v35, %v7708_v15  ;;  %v6431_v15 = vmov 7  }
0x24da   :  { %v4383_v9 = vpop.f32.mrf.mxu1  ;;  %6047 = vset.pattern.permute.xlu1 %v6431_v15  ;;  %6046 = vset.pattern.permute.xlu0 %v6431_v15 }
0x24db   :  { %v4408_v40 = vmax.f32 %v4404_v3, 0.0  ;;  %6348 = vtanh.f32 %v4383_v9  ;;  %v4402_v48 = vmul.f32 %v4383_v9, %v4272_v58  ;;  %v4417_v58 = vsub.f32 1.0, %v7849_v7 }
0x24dc   :  { %v5970_v39 = vpop.f32.mrf.mxu1  ;;  %6350 = vtanh.f32 %v5969_v5  ;;  %v4412_v5 = vmul.f32 %v7836_v35, %v7742_v49 }
0x24dd   :  { %v4406_v36 = vmax.f32 %v4402_v48, 0.0  ;;  %v4405_v41 = vmul.f32 %v5970_v39, %v4287_v32  ;;  %v4448_v42 = vmul.f32 %v4416_v8, %v4408_v40  ;;  %v4445_v32 = vmul.f32 %v7849_v7, %v7714_v59  ;;  %v6120_v59 = vld [vmem:[%s8159_s2 + $0x8] sm:$0xff]  }
0x24de   :  { %v4386_v4 = vpop.f32.mrf.mxu1  ;;  %5971 = vmatprep.subr.bf16.mxu1 %v6120_v59 }
0x24df   :  { %v4409_v10 = vmax.f32 %v4405_v41, 0.0  ;;  %6352 = vtanh.f32 %v4386_v4  ;;  %v4446_v17 = vmul.f32 %v4414_v38, %v4406_v36  ;;  %v7952_v25 = vadd.f32 %v4448_v42, %v4444_v33  ;;  %5972 = vmatpush3.bf16.msra.mxu1 %v6120_v59 }
0x24e0   :  { %6354 = vtanh.f32 %v5970_v39  ;;  %5973 = vmatprep.subr.bf16.mxu1 %v6121_v63  ;;  %v4403_v9 = vmul.f32 %v4386_v4, %v7927_v54  ;;  %v4443_v54 = vmul.f32 %v7854_v22, %v7775_v19 }
0x24e1   :  { %v7954_v24 = vadd.f32 %v4446_v17, %v4442_v28  ;;  %v4449_v31 = vmul.f32 %v4417_v58, %v4409_v10 }
0x24e3   :  { %v7958_v61 = vadd.f32 %v4449_v31, %v4445_v32  ;;  %5974 = vmatpush3.bf16.msra.mxu1 %v6121_v63 }
0x24e8   :  { %v6349_v29 = vpop.eup %6348 }
0x24e9   :  { %4422 = vrot.lane.b32.xlu0 %v6349_v29, %s6423_s25  ;;  %v6351_v30 = vpop.eup %6350 }
0x24ec   :  { %v6353_v45 = vpop.eup %6352 }
0x24ed   :  { %4426 = vrot.lane.b32.xlu0 %v6351_v30, %s6423_s25  ;;  %4424 = vrot.lane.b32.xlu1 %v6353_v45, %s6423_s25  ;;  %v6355_v21 = vpop.eup %6354 }
0x24f1   :  { %4428 = vrot.lane.b32.xlu1 %v6355_v21, %s6423_s25 }
0x255b   :  { %v4423_v47 = vpop.permute.xlu0 %4422 }
0x255c   :  { %v4434_v43 = vmul.f32 %v4423_v47, %v4414_v38 }
0x255e   :  { %v7975_v23 = vadd.f32 %v4434_v43, %v4410_v16 }
0x255f   :  { %v4427_v34 = vpop.permute.xlu0 %4426  ;;  %v4425_v55 = vpop.permute.xlu1 %4424 }
0x2560   :  { %v4435_v44 = vmul.f32 %v4425_v55, %v4415_v11  ;;  %v4436_v46 = vmul.f32 %v4427_v34, %v4416_v8  ;;  %v4407_v8 = vmax.f32 %v4403_v9, 0.0 }
0x2562   :  { %v7977_v18 = vadd.f32 %v4435_v44, %v4411_v27  ;;  %v7986_v20 = vadd.f32 %v4436_v46, %v4412_v5  ;;  %v4447_v35 = vmul.f32 %v4415_v11, %v4407_v8 }
0x2563   :  { %v4429_v3 = vpop.permute.xlu1 %4428 }
0x2564   :  { %v4486_v40 = vpack.c.bf16 %v7977_v18, %v7975_v23  ;;  %v4437_v14 = vmul.f32 %v4429_v3, %v4417_v58  ;;  %v7999_v56 = vadd.f32 %v4447_v35, %v4443_v54 }
0x2566   :  { %v7988_v48 = vadd.f32 %v4437_v14, %v4413_v6  ;;  %4494 = vrot.lane.b32.xlu0 %v4486_v40, %s6424_s14  ;;  %v6122_v14 = vld [vmem:[%s8160_s3 + $0x18] sm:$0xff]  }
0x2567   :  { %5987 = vmatprep.subr.bf16.mxu1 %v6122_v14 }
0x2568   :  { %v4487_v49 = vpack.c.bf16 %v7988_v48, %v7986_v20 }
0x256a   :  { %4474 = vperm.xlu0 %6046, %v7750_v53   ;;  %4496 = vrot.lane.b32.xlu1 %v4487_v49, %s6424_s14  ;;  %v6123_v49 = vld [vmem:[%s8160_s3 + $0x10] sm:$0xff]  }
0x256e   :  { %4469 = vperm.xlu0 %6046, %v7759_v26   ;;  %4479 = vperm.xlu1 %6047, %v7764_v0  }
0x2572   :  { %4690 = vrot.lane.b32.xlu0 %v7999_v56, %s6424_s14  ;;  %4464 = vperm.xlu1 %6047, %v7773_v62  }
0x2573   :  { %6049 = vset.pattern.permute.xlu0 %v6422_v2 }
0x2576   :  { %4694 = vrot.lane.b32.xlu0 %v7958_v61, %s6424_s14  ;;  %4688 = vrot.lane.b32.xlu1 %v7954_v24, %s6424_s14 }
0x2577   :  { %6048 = vset.pattern.permute.xlu1 %v6422_v2 }
0x257a   :  { %4650 = vrot.lane.b32.xlu0 %v7977_v18, %s6424_s14  ;;  %4692 = vrot.lane.b32.xlu1 %v7952_v25, %s6424_s14 }
0x257e   :  { %4654 = vrot.lane.b32.xlu0 %v7988_v48, %s6424_s14  ;;  %4648 = vrot.lane.b32.xlu1 %v7975_v23, %s6424_s14 }
0x2582   :  { %4652 = vrot.lane.b32.xlu1 %v7986_v20, %s6424_s14 }
0x25d8   :  { %v4495_v53 = vpop.permute.xlu0 %4494 }
0x25d9   :  { %5975 = vmatprep.mubr.msk.bf16.mxu1 %vm81_vm0, %v4495_v53 }
0x25dc   :  { %v4497_v26 = vpop.permute.xlu1 %4496 }
0x25dd   :  { %5976 = vmatmul.mubr.msk.bf16.vlgmr.msra.gmra.mxu1 %vm81_vm0, %v4497_v26 }
0x25de   :  { %5988 = vmatpush3.bf16.msra.mxu1 %v6122_v14 }
0x25df   :  { %5989 = vmatprep.subr.bf16.mxu1 %v6123_v49 }
0x25e2   :  { %5990 = vmatpush3.bf16.msra.mxu1 %v6123_v49 }
0x25e5   :  { %v8024_v0 = vpop.permute.xlu0 %4474 }
0x25e6   :  { %v4484_v19 = vmul.f32 %v7805_v50, %v8024_v0 }
0x25e9   :  { %v8022_v2 = vpop.permute.xlu1 %4479  ;;  %v8034_v41 = vpop.permute.xlu0 %4469 }
0x25ea   :  { %v4485_v7 = vmul.f32 %v7805_v50, %v8022_v2  ;;  %v4483_v42 = vmul.f32 %v7805_v50, %v8034_v41 }
0x25ed   :  { %v8030_v22 = vpop.permute.xlu1 %4464  ;;  %v4691_v27 = vpop.permute.xlu0 %4690 }
0x25ee   :  { %v4482_v36 = vmul.f32 %v7805_v50, %v8030_v22 }
0x25f1   :  { %v4695_v6 = vpop.permute.xlu0 %4694 }
0x25f5   :  { %v4651_v8 = vpop.permute.xlu0 %4650 }
0x269d   :  { %v5977_v62 = vpop.f32.mrf.mxu1 }
0x269e   :  { %v4567_v4 = vadd.f32 %v5977_v62, %v4484_v19  ;;  %v6124_v62 = vld [vmem:[%s8160_s3 + $0x8] sm:$0xff]   ;;  %v6125_v19 = vld [vmem:[%s8160_s3] sm:$0xff]  }
0x269f   :  { %v4550_v39 = vpop.f32.mrf.mxu1  ;;  %5991 = vmatprep.subr.bf16.mxu1 %v6124_v62 }
0x26a0   :  { %v4565_v10 = vadd.f32 %v4550_v39, %v4482_v36  ;;  %5992 = vmatpush3.bf16.msra.mxu1 %v6124_v62 }
0x26a1   :  { %v5978_v38 = vpop.f32.mrf.mxu1  ;;  %5993 = vmatprep.subr.bf16.mxu1 %v6125_v19 }
0x26a2   :  { %v4568_v28 = vadd.f32 %v5978_v38, %v4485_v7 }
0x26a3   :  { %v4553_v33 = vpop.f32.mrf.mxu1 }
0x26a4   :  { %v4570_v17 = vpack.c.bf16 %v4568_v28, %v4567_v4  ;;  %v4566_v58 = vadd.f32 %v4553_v33, %v4483_v42  ;;  %v4655_v42 = vpop.permute.xlu0 %4654  ;;  %5994 = vmatpush3.bf16.msra.mxu1 %v6125_v19 }
0x26a6   :  { %v4569_v32 = vpack.c.bf16 %v4566_v58, %v4565_v10  ;;  %5979 = vmatprep.subr.bf16.mxu0 %v4570_v17 }
0x26a7   :  { %5980 = vmatpush3.bf16.msra.mxu0 %v4570_v17 }
0x26a8   :  { %5981 = vmatprep.subr.bf16.mxu0 %v4569_v32 }
0x26ab   :  { %5982 = vmatpush3.bf16.msra.mxu0 %v4569_v32 }
0x26ae   :  { %5984 = vmatmul.mubr.msk.bf16.vlgmr.msra.gmra.mxu0 %vm81_vm0, %v7941_v57  ;;  %v4689_v57 = vpop.permute.xlu1 %4688 }
0x26b2   :  { %v4693_v5 = vpop.permute.xlu1 %4692 }
0x276e   :  { %v5985_v31 = vpop.f32.mrf.mxu0 }
0x276f   :  { %v4614_v29 = vadd.f32 %v7824_v51, %v5985_v31 }
0x2770   :  { %v4605_v15 = vpop.f32.mrf.mxu0 }
0x2771   :  { %v5419_v30 = vmul.f32 -1.442695, %v4614_v29  ;;  %v4606_v50 = vadd.f32 %v7824_v51, %v4605_v15 }
0x2772   :  { %v5986_v45 = vpop.f32.mrf.mxu0 }
0x2773   :  { %6356 = vpow2.f32 %v5419_v30  ;;  %v5417_v21 = vmul.f32 -1.442695, %v4606_v50  ;;  %v4617_v59 = vadd.f32 %v7824_v51, %v5986_v45 }
0x2774   :  { %v4608_v63 = vpop.f32.mrf.mxu0 }
0x2775   :  { %6358 = vpow2.f32 %v5417_v21  ;;  %v5420_v47 = vmul.f32 -1.442695, %v4617_v59  ;;  %v4609_v43 = vadd.f32 %v7824_v51, %v4608_v63  ;;  %v4649_v51 = vpop.permute.xlu1 %4648 }
0x2777   :  { %6360 = vpow2.f32 %v5420_v47  ;;  %v5418_v11 = vmul.f32 -1.442695, %v4609_v43 }
0x2779   :  { %6362 = vpow2.f32 %v5418_v11  ;;  %v4653_v54 = vpop.permute.xlu1 %4652 }
0x2780   :  { %v6357_v34 = vpop.eup %6356 }
0x2781   :  { %v4634_v55 = vadd.f32 1.0, %v6357_v34  ;;  %v4735_v34 = vmul.f32 %v7899_v37, %v8022_v2 }
0x2782   :  { %v6359_v16 = vpop.eup %6358 }
0x2783   :  { %6364 = vrcp.f32 %v4634_v55  ;;  %v4632_v44 = vadd.f32 1.0, %v6359_v16 }
0x2784   :  { %v6361_v46 = vpop.eup %6360 }
0x2785   :  { %6366 = vrcp.f32 %v4632_v44  ;;  %v4635_v3 = vadd.f32 1.0, %v6361_v46  ;;  %v4733_v44 = vmul.f32 %v7899_v37, %v8034_v41 }
0x2786   :  { %v6363_v9 = vpop.eup %6362 }
0x2787   :  { %6368 = vrcp.f32 %v4635_v3  ;;  %v4633_v40 = vadd.f32 1.0, %v6363_v9 }
0x2789   :  { %6370 = vrcp.f32 %v4633_v40 }
0x2790   :  { %v8050_v35 = vpop.eup %6364 }
0x2791   :  { %v4662_v53 = vmul.f32 %v8050_v35, %v4653_v54  ;;  %v4702_v10 = vmul.f32 %v8050_v35, %v4693_v5 }
0x2792   :  { %v8053_v26 = vpop.eup %6366 }
0x2793   :  { %v5561_v7 = vpack.c.bf16 %v4662_v53, %v4662_v53  ;;  %v4660_v39 = vmul.f32 %v8053_v26, %v4649_v51  ;;  %v4700_v36 = vmul.f32 %v8053_v26, %v4689_v57  ;;  %v5565_v30 = vpack.c.bf16 %v4702_v10, %v4702_v10 }
0x2794   :  { %v8063_v38 = vpop.eup %6368 }
0x2795   :  { %4682 = vst.msk [vmem:[#allocation2 + $0x8] sm:$0xf] %vm257_vm1, %v5561_v7  ;;  %v5559_v4 = vpack.c.bf16 %v4660_v39, %v4660_v39  ;;  %v4663_v28 = vmul.f32 %v8063_v38, %v4655_v42  ;;  %v5563_v33 = vpack.c.bf16 %v4700_v36, %v4700_v36  ;;  %v4703_v50 = vmul.f32 %v8063_v38, %v4695_v6 }
0x2796   :  { %v8068_v17 = vpop.eup %6370 }
0x2797   :  { %4680 = vst.msk [vmem:[#allocation2] sm:$0xf] %vm257_vm1, %v5559_v4  ;;  %v5562_v58 = vpack.c.bf16 %v4663_v28, %v4663_v28  ;;  %v4661_v32 = vmul.f32 %v8068_v17, %v4651_v8  ;;  %4716 = vrot.lane.b32.xlu1 %v5563_v33, %s6423_s25  ;;  %v4701_v31 = vmul.f32 %v8068_v17, %v4691_v27 }
0x2798   :  { %v5566_v45 = vpack.c.bf16 %v4703_v50, %v4703_v50 }
0x2799   :  { %4683 = vst.msk [vmem:[#allocation2 + $0xc] sm:$0xf] %vm257_vm1, %v5562_v58  ;;  %v5560_v29 = vpack.c.bf16 %v4661_v32, %v4661_v32  ;;  %v5564_v15 = vpack.c.bf16 %v4701_v31, %v4701_v31 }
0x279b   :  { %4681 = vst.msk [vmem:[#allocation2 + $0x4] sm:$0xf] %vm257_vm1, %v5560_v29  ;;  %4718 = vrot.lane.b32.xlu0 %v5564_v15, %s6423_s25  ;;  %4720 = vrot.lane.b32.xlu1 %v5565_v30, %s6423_s25 }
0x279f   :  { %4722 = vrot.lane.b32.xlu0 %v5566_v45, %s6423_s25  ;;  %4917 = vperm.xlu1 %6048, %v7868_v1  }
0x27a3   :  { %4922 = vperm.xlu0 %6049, %v7875_v52   ;;  %4912 = vperm.xlu1 %6048, %v7880_v13   ;;  %v4734_v52 = vmul.f32 %v7899_v37, %v8024_v0 }
0x27a7   :  { %4907 = vperm.xlu0 %6049, %v7887_v60   ;;  %v4732_v60 = vmul.f32 %v7899_v37, %v8030_v22 }
0x2809   :  { %v4717_v21 = vpop.permute.xlu1 %4716 }
0x280a   :  { %4728 = vst.msk [vmem:[#allocation2] sm:$0xf] %vm274_vm2, %v4717_v21 }
0x280d   :  { %v4719_v59 = vpop.permute.xlu0 %4718  ;;  %v4721_v63 = vpop.permute.xlu1 %4720 }
0x280e   :  { %4729 = vst.msk [vmem:[#allocation2 + $0x4] sm:$0xf] %vm274_vm2, %v4719_v59  ;;  %4730 = vst.msk [vmem:[#allocation2 + $0x8] sm:$0xf] %vm274_vm2, %v4721_v63 }
0x2811   :  { %v4723_v47 = vpop.permute.xlu0 %4722 }
0x2812   :  { %4731 = vst.msk [vmem:[#allocation2 + $0xc] sm:$0xf] %vm274_vm2, %v4723_v47 }
0x2815   :  { %v6126_v43 = vld [vmem:[#allocation2] sm:$0xff]  }
0x2816   :  { %5995 = vmatprep.mubr.msk.bf16.mxu1 %vm333_vm3, %v6126_v43 }
0x2819   :  { %v6127_v1 = vld [vmem:[#allocation2 + $0x8] sm:$0xff]  }
0x281a   :  { %5996 = vmatmul.mubr.msk.bf16.vlgmr.msra.gmra.mxu1 %vm333_vm3, %v6127_v1  ;;  %v4918_v39 = vpop.permute.xlu1 %4917 }
0x281e   :  { %v4923_v19 = vpop.permute.xlu0 %4922  ;;  %v4913_v28 = vpop.permute.xlu1 %4912 }
0x2822   :  { %v4908_v33 = vpop.permute.xlu0 %4907 }
0x28da   :  { %v5997_v13 = vpop.f32.mrf.mxu1 }
0x28db   :  { %v4839_v11 = vadd.f32 %v5997_v13, %v4734_v52 }
0x28dc   :  { %v4822_v57 = vpop.f32.mrf.mxu1 }
0x28dd   :  { %v4843_v55 = vadd.f32 %v7910_v12, %v4839_v11  ;;  %v4837_v16 = vadd.f32 %v4822_v57, %v4732_v60 }
0x28de   :  { %v5998_v27 = vpop.f32.mrf.mxu1 }
0x28df   :  { %v4847_v46 = vmul.f32 -1.0, %v4843_v55  ;;  %v4841_v5 = vadd.f32 %v7910_v12, %v4837_v16  ;;  %v4840_v0 = vadd.f32 %v5998_v27, %v4735_v34 }
0x28e0   :  { %v4825_v3 = vpop.f32.mrf.mxu1 }
0x28e1   :  { %v4853_v9 = vmul.f32 1.442695, %v4847_v46  ;;  %v4845_v40 = vmul.f32 -1.0, %v4841_v5  ;;  %v4844_v22 = vadd.f32 %v7910_v12, %v4840_v0  ;;  %v4838_v6 = vadd.f32 %v4825_v3, %v4733_v44 }
0x28e3   :  { %6372 = vpow2.f32 %v4853_v9  ;;  %v4849_v51 = vmul.f32 1.442695, %v4845_v40  ;;  %v4848_v2 = vmul.f32 -1.0, %v4844_v22  ;;  %v4842_v14 = vadd.f32 %v7910_v12, %v4838_v6  ;;  %v6130_v12 = vld [vmem:[%s8158_s1] sm:$0xff]  }
0x28e4   :  { %6003 = vmatprep.mubr.msk.bf16.mxu0 %vm81_vm0, %v6130_v12  ;;  %v5052_v6 = vsub.f32 1.0, %v8050_v35 }
0x28e5   :  { %6374 = vpow2.f32 %v4849_v51  ;;  %v4855_v8 = vmul.f32 1.442695, %v4848_v2  ;;  %v4846_v49 = vmul.f32 -1.0, %v4842_v14 }
0x28e7   :  { %6376 = vpow2.f32 %v4855_v8  ;;  %v4851_v37 = vmul.f32 1.442695, %v4846_v49  ;;  %v5050_v8 = vsub.f32 1.0, %v8053_v26 }
0x28e9   :  { %6378 = vpow2.f32 %v4851_v37 }
0x28f0   :  { %v6373_v41 = vpop.eup %6372 }
0x28f1   :  { %4865 = vrot.lane.b32.xlu1 %v6373_v41, %s6424_s14  ;;  %v4899_v7 = vmul.f32 %v6373_v41, %v4843_v55 }
0x28f2   :  { %v6375_v54 = vpop.eup %6374 }
0x28f3   :  { %4861 = vrot.lane.b32.xlu0 %v6375_v54, %s6424_s14  ;;  %v4897_v36 = vmul.f32 %v6375_v54, %v4841_v5  ;;  %v4903_v4 = vmul.f32 %v6373_v41, %v4899_v7  ;;  %v5078_v41 = vmul.f32 %v8053_v26, %v7954_v24  ;;  %v5079_v24 = vmul.f32 %v8068_v17, %v7999_v56 }
0x28f4   :  { %v6377_v53 = vpop.eup %6376 }
0x28f5   :  { %4867 = vrot.lane.b32.xlu1 %v6377_v53, %s6424_s14  ;;  %v4900_v42 = vmul.f32 %v6377_v53, %v4844_v22  ;;  %v4901_v10 = vmul.f32 %v6375_v54, %v4897_v36  ;;  %v4927_v32 = vmul.f32 %v4918_v39, %v4903_v4  ;;  %v5080_v54 = vmul.f32 %v8050_v35, %v7952_v25 }
0x28f6   :  { %v6379_v62 = vpop.eup %6378  ;;  %v5051_v4 = vsub.f32 1.0, %v8068_v17 }
0x28f7   :  { %v4904_v58 = vmul.f32 %v6377_v53, %v4900_v42  ;;  %v4898_v31 = vmul.f32 %v6379_v62, %v4842_v14  ;;  %v4925_v30 = vmul.f32 %v4908_v33, %v4901_v10  ;;  %v5573_v63 = vpack.c.bf16 %v4927_v32, %v4927_v32 }
0x28f8   :  { %v5053_v53 = vsub.f32 1.0, %v8063_v38 }
0x28f9   :  { %4863 = vrot.lane.b32.xlu1 %v6379_v62, %s6424_s14  ;;  %v4928_v59 = vmul.f32 %v4923_v19, %v4904_v58  ;;  %v4902_v47 = vmul.f32 %v6379_v62, %v4898_v31  ;;  %v5571_v13 = vpack.c.bf16 %v4925_v30, %v4925_v30 }
0x28fb   :  { %v5574_v11 = vpack.c.bf16 %v4928_v59, %v4928_v59  ;;  %v4926_v57 = vmul.f32 %v4913_v28, %v4902_v47 }
0x28fd   :  { %v5572_v27 = vpack.c.bf16 %v4926_v57, %v4926_v57 }
0x2963   :  { %v4866_v29 = vpop.permute.xlu1 %4865 }
0x2964   :  { %v4875_v15 = vmul.f32 %v4866_v29, %v4843_v55 }
0x2965   :  { %v4862_v50 = vpop.permute.xlu0 %4861 }
0x2966   :  { %v5569_v45 = vpack.c.bf16 %v4875_v15, %v4875_v15  ;;  %v4873_v21 = vmul.f32 %v4862_v50, %v4841_v5  ;;  %v6131_v5 = vld [vmem:[%s8158_s1 + $0x8] sm:$0xff]   ;;  %v5046_v15 = vmul.f32 %v8053_v26, %v7975_v23  ;;  %v5049_v23 = vmul.f32 %v8063_v38, %v7988_v48  ;;  %s6432_s1 = smov [#allocation3]  }
0x2967   :  { %v4868_v43 = vpop.permute.xlu1 %4867 }
0x2968   :  { %4895 = vst.msk [vmem:[#allocation2 + $0x8] sm:$0xf] %vm257_vm1, %v5569_v45  ;;  %v5567_v1 = vpack.c.bf16 %v4873_v21, %v4873_v21  ;;  %v4876_v52 = vmul.f32 %v4868_v43, %v4844_v22  ;;  %v5048_v21 = vmul.f32 %v8050_v35, %v7986_v20 }
0x2969   :  { %4947 = vst.msk [vmem:[#allocation2 + $0x8] sm:$0xf] %vm274_vm2, %v5573_v63  ;;  %v5047_v63 = vmul.f32 %v8068_v17, %v7977_v18 }
0x296a   :  { %4893 = vst.msk [vmem:[#allocation2] sm:$0xf] %vm257_vm1, %v5567_v1  ;;  %v5570_v60 = vpack.c.bf16 %v4876_v52, %v4876_v52 }
0x296b   :  { %4945 = vst.msk [vmem:[#allocation2] sm:$0xf] %vm274_vm2, %v5571_v13  ;;  %v4864_v34 = vpop.permute.xlu1 %4863 }
0x296c   :  { %4896 = vst.msk [vmem:[#allocation2 + $0xc] sm:$0xf] %vm257_vm1, %v5570_v60  ;;  %v4874_v55 = vmul.f32 %v4864_v34, %v4842_v14 }
0x296d   :  { %4948 = vst.msk [vmem:[#allocation2 + $0xc] sm:$0xf] %vm274_vm2, %v5574_v11 }
0x296e   :  { %v5568_v16 = vpack.c.bf16 %v4874_v55, %v4874_v55 }
0x2970   :  { %4894 = vst.msk [vmem:[#allocation2 + $0x4] sm:$0xf] %vm257_vm1, %v5568_v16 }
0x2971   :  { %4946 = vst.msk [vmem:[#allocation2 + $0x4] sm:$0xf] %vm274_vm2, %v5572_v27 }
0x2974   :  { %v6128_v44 = vld [vmem:[#allocation2 + $0x8] sm:$0xff]  }
0x2975   :  { %5999 = vmatprep.subr.bf16.mxu0 %v6128_v44 }
0x2976   :  { %6000 = vmatpush3.bf16.msra.mxu0 %v6128_v44 }
0x2978   :  { %v6129_v46 = vld [vmem:[#allocation2] sm:$0xff]  }
0x2979   :  { %6001 = vmatprep.subr.bf16.mxu0 %v6129_v46 }
0x297a   :  { %6002 = vmatpush3.bf16.msra.mxu0 %v6129_v46 }
0x297d   :  { %6004 = vmatmul.mubr.msk.bf16.vlgmr.msra.gmra.mxu0 %vm81_vm0, %v6131_v5 }
0x2a3d   :  { %v6005_v0 = vpop.f32.mrf.mxu0 }
0x2a3e   :  { %v5040_v3 = vmul.f32 %v6005_v0, %v4918_v39 }
0x2a3f   :  { %v5019_v9 = vpop.f32.mrf.mxu0 }
0x2a40   :  { %v5044_v40 = vmax.f32 %v5040_v3, 0.0  ;;  %6380 = vtanh.f32 %v5019_v9  ;;  %v5038_v22 = vmul.f32 %v5019_v9, %v4908_v33 }
0x2a41   :  { %v6006_v51 = vpop.f32.mrf.mxu0  ;;  %6382 = vtanh.f32 %v6005_v0 }
0x2a42   :  { %v5042_v2 = vmax.f32 %v5038_v22, 0.0  ;;  %v5041_v14 = vmul.f32 %v6006_v51, %v4923_v19  ;;  %v5084_v49 = vmul.f32 %v5052_v6, %v5044_v40  ;;  %v5081_v19 = vmul.f32 %v8063_v38, %v7958_v61 }
0x2a43   :  { %v5022_v37 = vpop.f32.mrf.mxu0 }
0x2a44   :  { %v5045_v62 = vmax.f32 %v5041_v14, 0.0  ;;  %6384 = vtanh.f32 %v5022_v37  ;;  %v5039_v12 = vmul.f32 %v5022_v37, %v4913_v28  ;;  %v5082_v7 = vmul.f32 %v5050_v8, %v5042_v2 }
0x2a45   :  { %v5088_v39 = vadd.f32 %v5084_v49, %v5080_v54  ;;  %6386 = vtanh.f32 %v6006_v51 }
0x2a46   :  { %v5043_v36 = vmax.f32 %v5039_v12, 0.0  ;;  %v5086_v42 = vadd.f32 %v5082_v7, %v5078_v41  ;;  %v5085_v33 = vmul.f32 %v5053_v53, %v5045_v62 }
0x2a48   :  { %v5083_v25 = vmul.f32 %v5051_v4, %v5043_v36  ;;  %v5089_v10 = vadd.f32 %v5085_v33, %v5081_v19 }
0x2a4a   :  { %v5087_v58 = vadd.f32 %v5083_v25, %v5079_v24 }
0x2a4d   :  { %v6381_v32 = vpop.eup %6380 }
0x2a4e   :  { %5058 = vrot.lane.b32.xlu0 %v6381_v32, %s6423_s25  ;;  %v6383_v28 = vpop.eup %6382 }
0x2a51   :  { %v6385_v31 = vpop.eup %6384 }
0x2a52   :  { %5062 = vrot.lane.b32.xlu0 %v6383_v28, %s6423_s25  ;;  %5060 = vrot.lane.b32.xlu1 %v6385_v31, %s6423_s25  ;;  %v6387_v61 = vpop.eup %6386 }
0x2a56   :  { %5064 = vrot.lane.b32.xlu1 %v6387_v61, %s6423_s25  ;;  %s5120_s25 = sshll.u32 %s6432_s1, 4  ;;  %s5121_s25 = int_to_ptr.vmem [resolvable:$true] %s5120_s25 }
0x2a57   :  { %p6405_p1 = scmp.lt.s32.totalorder %s5121_s25, %s5121_s25 }
0x2ac0   :  { %v5059_v29 = vpop.permute.xlu0 %5058 }
0x2ac1   :  { %v5070_v56 = vmul.f32 %v5059_v29, %v5050_v8 }
0x2ac3   :  { %v5074_v30 = vadd.f32 %v5070_v56, %v5046_v15 }
0x2ac4   :  { %v5063_v50 = vpop.permute.xlu0 %5062  ;;  %v5061_v45 = vpop.permute.xlu1 %5060 }
0x2ac5   :  { %v5072_v59 = vmul.f32 %v5063_v50, %v5052_v6  ;;  %v5071_v47 = vmul.f32 %v5061_v45, %v5051_v4  ;;  %5094 = vrot.lane.b32.xlu0 %v5074_v30, %s6424_s14 }
0x2ac7   :  { %v5076_v43 = vadd.f32 %v5072_v59, %v5048_v21  ;;  %v5075_v1 = vadd.f32 %v5071_v47, %v5047_v63 }
0x2ac8   :  { %v5065_v52 = vpop.permute.xlu1 %5064 }
0x2ac9   :  { %v5073_v26 = vmul.f32 %v5065_v52, %v5053_v53  ;;  %5098 = vrot.lane.b32.xlu0 %v5076_v43, %s6424_s14  ;;  %5096 = vrot.lane.b32.xlu1 %v5075_v1, %s6424_s14 }
0x2acb   :  { %v5077_v13 = vadd.f32 %v5073_v26, %v5049_v23 }
0x2acd   :  { %5100 = vrot.lane.b32.xlu1 %v5077_v13, %s6424_s14  ;;  %s6400_s14 = scalar_lea.vmem %s5121_s25, 512 }
0x2ace   :  { %p6401_p0 = scmp.ne.s32.totalorder %s5121_s25, %s6400_s14  ;;  %p6406_p2 = scmp.lt.s32.totalorder %s6400_s14, %s6400_s14 }
0x2ad0   :  { %p6407_p3 = por %p6406_p2, %p6405_p1 }
0x2ad2   :  { %p6408_p4 = pnand %p6407_p3, %p6401_p0 }
0x2b37   :  { %v5095_v20 = vpop.permute.xlu0 %5094 }
0x2b38   :  { %5106 = vst.msk [vmem:[#allocation3] sm:$0xff] %vm81_vm0, %v5095_v20 }
0x2b39   :  { %5111 = vst.msk [vmem:[#allocation3] sm:$0xff] %vm5110_vm4, %v5086_v42 }
0x2b3b   :  { %v5099_v18 = vpop.permute.xlu0 %5098  ;;  %v5097_v35 = vpop.permute.xlu1 %5096 }
0x2b3c   :  { %5108 = vst.msk [vmem:[#allocation3 + $0x10] sm:$0xff] %vm81_vm0, %v5099_v18  ;;  %5107 = vst.msk [vmem:[#allocation3 + $0x8] sm:$0xff] %vm81_vm0, %v5097_v35 }
0x2b3d   :  { %5113 = vst.msk [vmem:[#allocation3 + $0x10] sm:$0xff] %vm5110_vm4, %v5088_v39  ;;  %5112 = vst.msk [vmem:[#allocation3 + $0x8] sm:$0xff] %vm5110_vm4, %v5087_v58 }
0x2b3f   :  { %v5101_v48 = vpop.permute.xlu1 %5100 }
0x2b40   :  { %5109 = vst.msk [vmem:[#allocation3 + $0x18] sm:$0xff] %vm81_vm0, %v5101_v48 }
0x2b41   :  { %5114 = vst.msk [vmem:[#allocation3 + $0x18] sm:$0xff] %vm5110_vm4, %v5089_v10 }
0x2b42   :  { %6411 = shalt.err (!%p6408_p4)
}
0x2b43   :  { %s6433_s21 = smov 128   ;;  %s6434_s22 = smov 8  }
0x2b44   :  { %5126 = dma.vmem_to_hbm [thread:$0]  %s5121_s25, 512, %s8163_s6, [#allocation4], %s6433_s21, %s6433_s21, %s6434_s22  }
0x2b45   :  { %6420 = dma.done.wait [#allocation4], 512  }
0x2b46   :  { %6421 = vsyncadd [#allocation4], 4294966784 }
0x2b47   :  { %5130 = vsyncpa [#allocation4], 1 }

</bundles_post_ra>
